<compile_context>
chip_gen: v5e
topology: v5e:2x2
jax: 0.10.0
libtpu: 0.0.40
codegen_flags: <defaults>
</compile_context>

<pallas_src>
import math

import jax
import jax.numpy as jnp
from jax.experimental import pallas as pl
from jax.experimental.pallas import tpu as pltpu

ACT_DTYPE = jnp.bfloat16
EXPANSION = 4
RESNET50_CFG = [(64, 3, 1), (128, 4, 2), (256, 6, 2), (512, 3, 2)]

TM = 512            # max rows per tile (bf16 sublane packing: multiples of 16)
TN = 512            # max output cols per tile (lane-dense: multiples of 128)
TK = 1024           # max K per grid step for the K-reduction path
FULLK_MAX = 2048    # padded K up to this runs as a single full-K matmul
MIN_PALLAS_M = 128  # below this M, fall back to a fused XLA dot

_VMEM_LIMIT_CACHE = None


def _vmem_limit_bytes():
    """~75% of the chip's physical VMEM: ~48 MiB on v7x, ~96 MiB on v5e/v6e."""
    global _VMEM_LIMIT_CACHE
    if _VMEM_LIMIT_CACHE is None:
        cap = 64 * 1024 * 1024          # conservative fallback (v7x physical)
        try:
            cap = int(pltpu.get_tpu_info().vmem_capacity_bytes)
        except Exception:
            pass
        _VMEM_LIMIT_CACHE = min((cap * 3) // 4, 112 * 1024 * 1024)
    return _VMEM_LIMIT_CACHE


def _round_up(x, m):
    return (x + m - 1) // m * m


# --------------------------- Pallas matmul kernels ---------------------------
# Full-K variants: 2-D (M, N) grid; the whole reduction happens inside one
# jnp.dot, so there is no fp32 VMEM accumulator and no init/finalize phases.

def _mm_fullk_kernel(a_ref, b_ref, o_ref):
    o_ref[...] = jnp.dot(a_ref[...], b_ref[...],
                         preferred_element_type=jnp.float32).astype(o_ref.dtype)


def _mm_fullk_relu_kernel(a_ref, b_ref, o_ref):
    acc = jnp.dot(a_ref[...], b_ref[...], preferred_element_type=jnp.float32)
    o_ref[...] = jnp.maximum(acc, 0.0).astype(o_ref.dtype)


def _mm_fullk_add_relu_kernel(a_ref, b_ref, r_ref, o_ref):
    acc = jnp.dot(a_ref[...], b_ref[...], preferred_element_type=jnp.float32)
    acc = acc + r_ref[...].astype(jnp.float32)
    o_ref[...] = jnp.maximum(acc, 0.0).astype(o_ref.dtype)


# K-reduction variants (large-K im2col'd convs): 3-D grid with the reduction
# axis last, fp32 VMEM accumulator, fused ReLU / residual add at the last step.

def _mm_kernel(a_ref, b_ref, o_ref, acc_ref):
    k = pl.program_id(2)

    @pl.when(k == 0)
    def _():
        acc_ref[...] = jnp.zeros_like(acc_ref)

    acc_ref[...] += jnp.dot(a_ref[...], b_ref[...],
                            preferred_element_type=jnp.float32)

    @pl.when(k == pl.num_programs(2) - 1)
    def _():
        o_ref[...] = acc_ref[...].astype(o_ref.dtype)


def _mm_relu_kernel(a_ref, b_ref, o_ref, acc_ref):
    k = pl.program_id(2)

    @pl.when(k == 0)
    def _():
        acc_ref[...] = jnp.zeros_like(acc_ref)

    acc_ref[...] += jnp.dot(a_ref[...], b_ref[...],
                            preferred_element_type=jnp.float32)

    @pl.when(k == pl.num_programs(2) - 1)
    def _():
        o_ref[...] = jnp.maximum(acc_ref[...], 0.0).astype(o_ref.dtype)


def _mm_add_relu_kernel(a_ref, b_ref, r_ref, o_ref, acc_ref):
    k = pl.program_id(2)

    @pl.when(k == 0)
    def _():
        acc_ref[...] = jnp.zeros_like(acc_ref)

    acc_ref[...] += jnp.dot(a_ref[...], b_ref[...],
                            preferred_element_type=jnp.float32)

    @pl.when(k == pl.num_programs(2) - 1)
    def _():
        acc = acc_ref[...] + r_ref[...].astype(jnp.float32)
        o_ref[...] = jnp.maximum(acc, 0.0).astype(o_ref.dtype)


# ----------------------------- Pallas wrappers ------------------------------

def _matmul_pallas(a, b, residual=None, relu=False, out_dtype=ACT_DTYPE):
    """bf16 MXU matmul (fp32 accumulation) with fused ReLU / residual add."""
    m, k_dim = a.shape
    _, n = b.shape

    a = a.astype(jnp.bfloat16)
    b = b.astype(jnp.bfloat16)
    if residual is not None:
        residual = residual.astype(jnp.bfloat16)

    # Degenerate-M fallback (review item): an M<128 pass wastes most MXU rows
    # and is dominated by pallas_call/padding overhead -- let XLA fuse it.
    if m < MIN_PALLAS_M:
        acc = jnp.dot(a, b, preferred_element_type=jnp.float32)
        if residual is not None:
            acc = jnp.maximum(acc + residual.astype(jnp.float32), 0.0)
        elif relu:
            acc = jnp.maximum(acc, 0.0)
        return acc.astype(out_dtype)

    kp = _round_up(k_dim, 128)
    full_k = kp <= FULLK_MAX

    tm = min(TM, _round_up(m, 16))        # bf16 sublane packing
    mp = _round_up(m, tm)
    tn = min(TN, _round_up(n, 128))       # lane-dense output tiles
    if mp // tm == 1 and n > 128:
        # Keep >=2 parallel tiles so a v7x megacore can shard the grid.
        tn = min(tn, _round_up(_round_up(n, 128) // 2, 128))
    np_ = _round_up(n, tn)

    if full_k:
        tk = kp                            # whole reduction in one kernel body
    else:
        tk = 128
        for cand in range(TK, 127, -128):  # largest 128-multiple dividing kp
            if kp % cand == 0:
                tk = cand
                break

    if (mp, kp) != (m, k_dim):
        a = jnp.pad(a, ((0, mp - m), (0, kp - k_dim)))
    if (kp, np_) != (k_dim, n):
        b = jnp.pad(b, ((0, kp - k_dim), (0, np_ - n)))
    if residual is not None and (mp, np_) != (m, n):
        residual = jnp.pad(residual, ((0, mp - m), (0, np_ - n)))

    bytes_accessed = 2 * (mp * kp + kp * np_ + mp * np_)
    if residual is not None:
        bytes_accessed += 2 * mp * np_
    cost = pl.CostEstimate(flops=2 * mp * np_ * kp, transcendentals=0,
                           bytes_accessed=bytes_accessed)

    if full_k:
        in_specs = [pl.BlockSpec((tm, tk), lambda i, j: (i, 0)),
                    pl.BlockSpec((tk, tn), lambda i, j: (0, j))]
        args = [a, b]
        if residual is not None:
            in_specs.append(pl.BlockSpec((tm, tn), lambda i, j: (i, j)))
            args.append(residual)
            kernel = _mm_fullk_add_relu_kernel
        else:
            kernel = _mm_fullk_relu_kernel if relu else _mm_fullk_kernel
        out = pl.pallas_call(
            kernel,
            out_shape=jax.ShapeDtypeStruct((mp, np_), out_dtype),
            grid_spec=pltpu.PrefetchScalarGridSpec(
                num_scalar_prefetch=0,
                grid=(mp // tm, np_ // tn),
                in_specs=in_specs,
                out_specs=pl.BlockSpec((tm, tn), lambda i, j: (i, j))),
            compiler_params=pltpu.CompilerParams(
                dimension_semantics=("parallel", "parallel"),
                vmem_limit_bytes=_vmem_limit_bytes()),
            cost_estimate=cost,
        )(*args)
    else:
        in_specs = [pl.BlockSpec((tm, tk), lambda i, j, k: (i, k)),
                    pl.BlockSpec((tk, tn), lambda i, j, k: (k, j))]
        args = [a, b]
        if residual is not None:
            in_specs.append(pl.BlockSpec((tm, tn), lambda i, j, k: (i, j)))
            args.append(residual)
            kernel = _mm_add_relu_kernel
        else:
            kernel = _mm_relu_kernel if relu else _mm_kernel
        out = pl.pallas_call(
            kernel,
            out_shape=jax.ShapeDtypeStruct((mp, np_), out_dtype),
            grid_spec=pltpu.PrefetchScalarGridSpec(
                num_scalar_prefetch=0,
                grid=(mp // tm, np_ // tn, kp // tk),
                in_specs=in_specs,
                out_specs=pl.BlockSpec((tm, tn), lambda i, j, k: (i, j)),
                scratch_shapes=[pltpu.VMEM((tm, tn), jnp.float32)]),
            compiler_params=pltpu.CompilerParams(
                dimension_semantics=("parallel", "parallel", "arbitrary"),
                vmem_limit_bytes=_vmem_limit_bytes()),
            cost_estimate=cost,
        )(*args)

    if (mp, np_) != (m, n):
        out = out[:m, :n]
    return out


def conv2d(x, w, *, stride=1, padding=0, relu=False, residual=None):
    """x: [N,H,W,Cin] NHWC bf16, w: [Kh,Kw,Cin,Cout] bf16 -> [N,Ho,Wo,Cout]."""
    n, h, wid, cin = x.shape
    kh, kw, _, cout = w.shape
    ho = (h + 2 * padding - kh) // stride + 1
    wo = (wid + 2 * padding - kw) // stride + 1

    if kh == 1 and kw == 1 and padding == 0:
        # 1x1 conv fast path: no im2col at all.
        # TODO(synk): for stride=2 downsample convs, read the strided rows via
        # the A BlockSpec instead of this XLA strided-slice copy.
        xs = x[:, ::stride, ::stride, :] if stride > 1 else x
        a = xs.reshape(n * ho * wo, cin)
    else:
        # TODO(synk): gather the kh*kw shifted windows inside the kernel
        # (pl.ANY activation + manual DMA) to remove the im2col HBM duplication.
        xp = jnp.pad(x, ((0, 0), (padding, padding), (padding, padding), (0, 0)))
        patches = [xp[:, i:i + stride * ho:stride, j:j + stride * wo:stride, :]
                   for i in range(kh) for j in range(kw)]
        a = jnp.concatenate(patches, axis=-1).reshape(n * ho * wo, kh * kw * cin)

    b = w.reshape(kh * kw * cin, cout)
    r = residual.reshape(n * ho * wo, cout) if residual is not None else None
    out = _matmul_pallas(a, b, residual=r, relu=relu)
    return out.reshape(n, ho, wo, cout)


def maxpool2d(x, *, kernel=3, stride=2, padding=1):
    """3x3/s2/p1 max pool.  Per the perf review this is a fused XLA
    jnp.maximum tree over strided windows (~one read + one write of the map,
    no 9x HBM window stack, no lane-sparse Pallas store)."""
    n, h, w, c = x.shape
    ho = (h + 2 * padding - kernel) // stride + 1
    wo = (w + 2 * padding - kernel) // stride + 1
    xp = jnp.pad(x, ((0, 0), (padding, padding), (padding, padding), (0, 0)),
                 constant_values=-jnp.inf)
    out = None
    for i in range(kernel):
        for j in range(kernel):
            win = xp[:, i:i + stride * ho:stride, j:j + stride * wo:stride, :]
            out = win if out is None else jnp.maximum(out, win)
    return out


# ----------------------------- Model definition -----------------------------

def _conv_weight(key, kh, kw, cin, cout):
    # nn.init.kaiming_normal_(mode='fan_out', nonlinearity='relu'), stored bf16
    # once so the MXU reads bf16 weight panels straight from HBM.
    fan_out = cout * kh * kw
    std = math.sqrt(2.0 / fan_out)
    w = jax.random.normal(key, (kh, kw, cin, cout), jnp.float32) * std
    return w.astype(ACT_DTYPE)


def build_params(key):
    keys = iter(jax.random.split(key, 256))
    params = {"conv1": _conv_weight(next(keys), 7, 7, 3, 64), "layers": []}
    inplanes = 64
    for planes, nblocks, stride in RESNET50_CFG:
        blocks = []
        for b in range(nblocks):
            s = stride if b == 0 else 1
            blk = {
                "conv1": _conv_weight(next(keys), 1, 1, inplanes, planes),
                "conv2": _conv_weight(next(keys), 3, 3, planes, planes),
                "conv3": _conv_weight(next(keys), 1, 1, planes, planes * EXPANSION),
            }
            if s != 1 or inplanes != planes * EXPANSION:
                blk["down"] = _conv_weight(next(keys), 1, 1, inplanes,
                                           planes * EXPANSION)
            blocks.append(blk)
            inplanes = planes * EXPANSION
        params["layers"].append(blocks)
    return params


def bottleneck(x, blk, stride):
    out = conv2d(x, blk["conv1"], stride=1, padding=0, relu=True)
    out = conv2d(out, blk["conv2"], stride=stride, padding=1, relu=True)
    if "down" in blk:
        identity = conv2d(x, blk["down"], stride=stride, padding=0)
    else:
        identity = x
    # conv3 + residual add + final ReLU fused into one matmul kernel.
    return conv2d(out, blk["conv3"], stride=1, padding=0, residual=identity)


def resnet_forward(params, x_nchw):
    x = jnp.transpose(x_nchw, (0, 2, 3, 1)).astype(ACT_DTYPE)  # NCHW -> NHWC bf16
    x = conv2d(x, params["conv1"], stride=2, padding=3, relu=True)
    x = maxpool2d(x, kernel=3, stride=2, padding=1)
    for (planes, nblocks, stride), blocks in zip(RESNET50_CFG, params["layers"]):
        for bi, blk in enumerate(blocks):
            x = bottleneck(x, blk, stride if bi == 0 else 1)
    x = x.astype(jnp.float32)
    return jnp.transpose(x, (0, 3, 1, 2))  # back to NCHW


# ---------------------------------- main ------------------------------------

if __name__ == "__main__":
    key = jax.random.PRNGKey(0)
    pkey, xkey = jax.random.split(key)
    params = build_params(pkey)

    # Small NCHW input consistent with the module: 3 input channels; 32x32 is
    # the smallest spatial size that survives the five stride-2 stages.
    x = jax.random.normal(xkey, (2, 3, 32, 32), jnp.float32)

    forward = jax.jit(resnet_forward)
    out = jax.block_until_ready(forward(params, x))

    # 32 -> conv1(s2) 16 -> maxpool(s2) 8 -> layer2 4 -> layer3 2 -> layer4 1
    assert out.shape == (2, 512 * EXPANSION, 1, 1), out.shape
    assert bool(jnp.all(jnp.isfinite(out)))
    print("KERNEL_OK")
</pallas_src>

<mosaic_0001>
module attributes {stable_mosaic.version = 11 : i64} {
  func.func @_mm_fullk_relu_kernel(%arg0: i32, %arg1: i32, %arg2: memref<512x256xbf16, #tpu.memory_space<vmem>>, %arg3: memref<256x128xbf16, #tpu.memory_space<vmem>>, %arg4: memref<512x128xbf16, #tpu.memory_space<vmem>>) attributes {dimension_semantics = [#tpu.dimension_semantics<parallel>, #tpu.dimension_semantics<parallel>], iteration_bounds = array<i64: 1, 1>, scalar_prefetch = 0 : i64, scratch_operands = 0 : i64, tpu.core_type = #tpu.core_type<tc>, window_params = [{transform_indices = @transform_0, window_bounds = array<i64: 512, 256>}, {transform_indices = @transform_1, window_bounds = array<i64: 256, 128>}, {transform_indices = @transform_2, window_bounds = array<i64: 512, 128>}]} {
    %c0 = arith.constant 0 : index
    %c0_0 = arith.constant 0 : index
    %0 = vector.load %arg2[%c0, %c0_0] : memref<512x256xbf16, #tpu.memory_space<vmem>>, vector<512x256xbf16>
    %c0_1 = arith.constant 0 : index
    %c0_2 = arith.constant 0 : index
    %1 = vector.load %arg3[%c0_1, %c0_2] : memref<256x128xbf16, #tpu.memory_space<vmem>>, vector<256x128xbf16>
    %cst = arith.constant dense<0.000000e+00> : vector<512x128xf32>
    %2 = tpu.matmul %0, %1, %cst {dimension_numbers = #tpu.dot_dimension_numbers<[1], [0], [0], [1], [0, 0, 1, 1], [], []>} : vector<512x256xbf16>, vector<256x128xbf16>, vector<512x128xf32> -> vector<512x128xf32>
    %cst_3 = arith.constant 0.000000e+00 : f32
    %3 = vector.broadcast %cst_3 : f32 to vector<512x128xf32>
    %4 = arith.maximumf %2, %3 : vector<512x128xf32>
    %5 = arith.truncf %4 : vector<512x128xf32> to vector<512x128xbf16>
    %c0_4 = arith.constant 0 : index
    %c0_5 = arith.constant 0 : index
    %6 = vector.load %arg4[%c0_4, %c0_5] : memref<512x128xbf16, #tpu.memory_space<vmem>>, vector<512x128xbf16>
    tpu.vector_store %arg4[%c0_4, %c0_5], %5 {strides = array<i32>} : memref<512x128xbf16, #tpu.memory_space<vmem>>, vector<512x128xbf16>,
    return
  }
  func.func @transform_0(%arg0: i32, %arg1: i32) -> (i32, i32) {
    %c0_i32 = arith.constant 0 : i32
    %c0_i32_0 = arith.constant 0 : i32
    return %arg0, %c0_i32 : i32, i32
  }
  func.func @transform_1(%arg0: i32, %arg1: i32) -> (i32, i32) {
    %c0_i32 = arith.constant 0 : i32
    %c0_i32_0 = arith.constant 0 : i32
    return %c0_i32, %arg1 : i32, i32
  }
  func.func @transform_2(%arg0: i32, %arg1: i32) -> (i32, i32) {
    %c0_i32 = arith.constant 0 : i32
    return %arg0, %arg1 : i32, i32
  }
}

module attributes {stable_mosaic.version = 11 : i64} {
  func.func @_mm_fullk_relu_kernel(%arg0: i32, %arg1: i32, %arg2: memref<128x128xbf16, #tpu.memory_space<vmem>>, %arg3: memref<128x128xbf16, #tpu.memory_space<vmem>>, %arg4: memref<128x128xbf16, #tpu.memory_space<vmem>>) attributes {dimension_semantics = [#tpu.dimension_semantics<parallel>, #tpu.dimension_semantics<parallel>], iteration_bounds = array<i64: 1, 1>, scalar_prefetch = 0 : i64, scratch_operands = 0 : i64, tpu.core_type = #tpu.core_type<tc>, window_params = [{transform_indices = @transform_0, window_bounds = array<i64: 128, 128>}, {transform_indices = @transform_1, window_bounds = array<i64: 128, 128>}, {transform_indices = @transform_2, window_bounds = array<i64: 128, 128>}]} {
    %c0 = arith.constant 0 : index
    %c0_0 = arith.constant 0 : index
    %0 = vector.load %arg2[%c0, %c0_0] : memref<128x128xbf16, #tpu.memory_space<vmem>>, vector<128x128xbf16>
    %c0_1 = arith.constant 0 : index
    %c0_2 = arith.constant 0 : index
    %1 = vector.load %arg3[%c0_1, %c0_2] : memref<128x128xbf16, #tpu.memory_space<vmem>>, vector<128x128xbf16>
    %cst = arith.constant dense<0.000000e+00> : vector<128x128xf32>
    %2 = tpu.matmul %0, %1, %cst {dimension_numbers = #tpu.dot_dimension_numbers<[1], [0], [0], [1], [0, 0, 1, 1], [], []>} : vector<128x128xbf16>, vector<128x128xbf16>, vector<128x128xf32> -> vector<128x128xf32>
    %cst_3 = arith.constant 0.000000e+00 : f32
    %3 = vector.broadcast %cst_3 : f32 to vector<128x128xf32>
    %4 = arith.maximumf %2, %3 : vector<128x128xf32>
    %5 = arith.truncf %4 : vector<128x128xf32> to vector<128x128xbf16>
    %c0_4 = arith.constant 0 : index
    %c0_5 = arith.constant 0 : index
    %6 = vector.load %arg4[%c0_4, %c0_5] : memref<128x128xbf16, #tpu.memory_space<vmem>>, vector<128x128xbf16>
    tpu.vector_store %arg4[%c0_4, %c0_5], %5 {strides = array<i32>} : memref<128x128xbf16, #tpu.memory_space<vmem>>, vector<128x128xbf16>,
    return
  }
  func.func @transform_0(%arg0: i32, %arg1: i32) -> (i32, i32) {
    %c0_i32 = arith.constant 0 : i32
    %c0_i32_0 = arith.constant 0 : i32
    return %arg0, %c0_i32 : i32, i32
  }
  func.func @transform_1(%arg0: i32, %arg1: i32) -> (i32, i32) {
    %c0_i32 = arith.constant 0 : i32
    %c0_i32_0 = arith.constant 0 : i32
    return %c0_i32, %arg1 : i32, i32
  }
  func.func @transform_2(%arg0: i32, %arg1: i32) -> (i32, i32) {
    %c0_i32 = arith.constant 0 : i32
    return %arg0, %arg1 : i32, i32
  }
}

module attributes {stable_mosaic.version = 11 : i64} {
  func.func @_mm_fullk_relu_kernel(%arg0: i32, %arg1: i32, %arg2: memref<128x640xbf16, #tpu.memory_space<vmem>>, %arg3: memref<640x128xbf16, #tpu.memory_space<vmem>>, %arg4: memref<128x128xbf16, #tpu.memory_space<vmem>>) attributes {dimension_semantics = [#tpu.dimension_semantics<parallel>, #tpu.dimension_semantics<parallel>], iteration_bounds = array<i64: 1, 1>, scalar_prefetch = 0 : i64, scratch_operands = 0 : i64, tpu.core_type = #tpu.core_type<tc>, window_params = [{transform_indices = @transform_0, window_bounds = array<i64: 128, 640>}, {transform_indices = @transform_1, window_bounds = array<i64: 640, 128>}, {transform_indices = @transform_2, window_bounds = array<i64: 128, 128>}]} {
    %c0 = arith.constant 0 : index
    %c0_0 = arith.constant 0 : index
    %0 = vector.load %arg2[%c0, %c0_0] : memref<128x640xbf16, #tpu.memory_space<vmem>>, vector<128x640xbf16>
    %c0_1 = arith.constant 0 : index
    %c0_2 = arith.constant 0 : index
    %1 = vector.load %arg3[%c0_1, %c0_2] : memref<640x128xbf16, #tpu.memory_space<vmem>>, vector<640x128xbf16>
    %cst = arith.constant dense<0.000000e+00> : vector<128x128xf32>
    %2 = tpu.matmul %0, %1, %cst {dimension_numbers = #tpu.dot_dimension_numbers<[1], [0], [0], [1], [0, 0, 1, 1], [], []>} : vector<128x640xbf16>, vector<640x128xbf16>, vector<128x128xf32> -> vector<128x128xf32>
    %cst_3 = arith.constant 0.000000e+00 : f32
    %3 = vector.broadcast %cst_3 : f32 to vector<128x128xf32>
    %4 = arith.maximumf %2, %3 : vector<128x128xf32>
    %5 = arith.truncf %4 : vector<128x128xf32> to vector<128x128xbf16>
    %c0_4 = arith.constant 0 : index
    %c0_5 = arith.constant 0 : index
    %6 = vector.load %arg4[%c0_4, %c0_5] : memref<128x128xbf16, #tpu.memory_space<vmem>>, vector<128x128xbf16>
    tpu.vector_store %arg4[%c0_4, %c0_5], %5 {strides = array<i32>} : memref<128x128xbf16, #tpu.memory_space<vmem>>, vector<128x128xbf16>,
    return
  }
  func.func @transform_0(%arg0: i32, %arg1: i32) -> (i32, i32) {
    %c0_i32 = arith.constant 0 : i32
    %c0_i32_0 = arith.constant 0 : i32
    return %arg0, %c0_i32 : i32, i32
  }
  func.func @transform_1(%arg0: i32, %arg1: i32) -> (i32, i32) {
    %c0_i32 = arith.constant 0 : i32
    %c0_i32_0 = arith.constant 0 : i32
    return %c0_i32, %arg1 : i32, i32
  }
  func.func @transform_2(%arg0: i32, %arg1: i32) -> (i32, i32) {
    %c0_i32 = arith.constant 0 : i32
    return %arg0, %arg1 : i32, i32
  }
}

module attributes {stable_mosaic.version = 11 : i64} {
  func.func @_mm_fullk_kernel(%arg0: i32, %arg1: i32, %arg2: memref<128x128xbf16, #tpu.memory_space<vmem>>, %arg3: memref<128x128xbf16, #tpu.memory_space<vmem>>, %arg4: memref<128x128xbf16, #tpu.memory_space<vmem>>) attributes {dimension_semantics = [#tpu.dimension_semantics<parallel>, #tpu.dimension_semantics<parallel>], iteration_bounds = array<i64: 1, 2>, scalar_prefetch = 0 : i64, scratch_operands = 0 : i64, tpu.core_type = #tpu.core_type<tc>, window_params = [{transform_indices = @transform_0, window_bounds = array<i64: 128, 128>}, {transform_indices = @transform_1, window_bounds = array<i64: 128, 128>}, {transform_indices = @transform_2, window_bounds = array<i64: 128, 128>}]} {
    %c0 = arith.constant 0 : index
    %c0_0 = arith.constant 0 : index
    %0 = vector.load %arg2[%c0, %c0_0] : memref<128x128xbf16, #tpu.memory_space<vmem>>, vector<128x128xbf16>
    %c0_1 = arith.constant 0 : index
    %c0_2 = arith.constant 0 : index
    %1 = vector.load %arg3[%c0_1, %c0_2] : memref<128x128xbf16, #tpu.memory_space<vmem>>, vector<128x128xbf16>
    %cst = arith.constant dense<0.000000e+00> : vector<128x128xf32>
    %2 = tpu.matmul %0, %1, %cst {dimension_numbers = #tpu.dot_dimension_numbers<[1], [0], [0], [1], [0, 0, 1, 1], [], []>} : vector<128x128xbf16>, vector<128x128xbf16>, vector<128x128xf32> -> vector<128x128xf32>
    %3 = arith.truncf %2 : vector<128x128xf32> to vector<128x128xbf16>
    %c0_3 = arith.constant 0 : index
    %c0_4 = arith.constant 0 : index
    %4 = vector.load %arg4[%c0_3, %c0_4] : memref<128x128xbf16, #tpu.memory_space<vmem>>, vector<128x128xbf16>
    tpu.vector_store %arg4[%c0_3, %c0_4], %3 {strides = array<i32>} : memref<128x128xbf16, #tpu.memory_space<vmem>>, vector<128x128xbf16>,
    return
  }
  func.func @transform_0(%arg0: i32, %arg1: i32) -> (i32, i32) {
    %c0_i32 = arith.constant 0 : i32
    %c0_i32_0 = arith.constant 0 : i32
    return %arg0, %c0_i32 : i32, i32
  }
  func.func @transform_1(%arg0: i32, %arg1: i32) -> (i32, i32) {
    %c0_i32 = arith.constant 0 : i32
    %c0_i32_0 = arith.constant 0 : i32
    return %c0_i32, %arg1 : i32, i32
  }
  func.func @transform_2(%arg0: i32, %arg1: i32) -> (i32, i32) {
    %c0_i32 = arith.constant 0 : i32
    return %arg0, %arg1 : i32, i32
  }
}

module attributes {stable_mosaic.version = 11 : i64} {
  func.func @_mm_fullk_add_relu_kernel(%arg0: i32, %arg1: i32, %arg2: memref<128x128xbf16, #tpu.memory_space<vmem>>, %arg3: memref<128x128xbf16, #tpu.memory_space<vmem>>, %arg4: memref<128x128xbf16, #tpu.memory_space<vmem>>, %arg5: memref<128x128xbf16, #tpu.memory_space<vmem>>) attributes {dimension_semantics = [#tpu.dimension_semantics<parallel>, #tpu.dimension_semantics<parallel>], iteration_bounds = array<i64: 1, 2>, scalar_prefetch = 0 : i64, scratch_operands = 0 : i64, tpu.core_type = #tpu.core_type<tc>, window_params = [{transform_indices = @transform_0, window_bounds = array<i64: 128, 128>}, {transform_indices = @transform_1, window_bounds = array<i64: 128, 128>}, {transform_indices = @transform_2, window_bounds = array<i64: 128, 128>}, {transform_indices = @transform_3, window_bounds = array<i64: 128, 128>}]} {
    %c0 = arith.constant 0 : index
    %c0_0 = arith.constant 0 : index
    %0 = vector.load %arg2[%c0, %c0_0] : memref<128x128xbf16, #tpu.memory_space<vmem>>, vector<128x128xbf16>
    %c0_1 = arith.constant 0 : index
    %c0_2 = arith.constant 0 : index
    %1 = vector.load %arg3[%c0_1, %c0_2] : memref<128x128xbf16, #tpu.memory_space<vmem>>, vector<128x128xbf16>
    %cst = arith.constant dense<0.000000e+00> : vector<128x128xf32>
    %2 = tpu.matmul %0, %1, %cst {dimension_numbers = #tpu.dot_dimension_numbers<[1], [0], [0], [1], [0, 0, 1, 1], [], []>} : vector<128x128xbf16>, vector<128x128xbf16>, vector<128x128xf32> -> vector<128x128xf32>
    %c0_3 = arith.constant 0 : index
    %c0_4 = arith.constant 0 : index
    %3 = vector.load %arg4[%c0_3, %c0_4] : memref<128x128xbf16, #tpu.memory_space<vmem>>, vector<128x128xbf16>
    %4 = arith.extf %3 : vector<128x128xbf16> to vector<128x128xf32>
    %5 = arith.addf %2, %4 : vector<128x128xf32>
    %cst_5 = arith.constant 0.000000e+00 : f32
    %6 = vector.broadcast %cst_5 : f32 to vector<128x128xf32>
    %7 = arith.maximumf %5, %6 : vector<128x128xf32>
    %8 = arith.truncf %7 : vector<128x128xf32> to vector<128x128xbf16>
    %c0_6 = arith.constant 0 : index
    %c0_7 = arith.constant 0 : index
    %9 = vector.load %arg5[%c0_6, %c0_7] : memref<128x128xbf16, #tpu.memory_space<vmem>>, vector<128x128xbf16>
    tpu.vector_store %arg5[%c0_6, %c0_7], %8 {strides = array<i32>} : memref<128x128xbf16, #tpu.memory_space<vmem>>, vector<128x128xbf16>,
    return
  }
  func.func @transform_0(%arg0: i32, %arg1: i32) -> (i32, i32) {
    %c0_i32 = arith.constant 0 : i32
    %c0_i32_0 = arith.constant 0 : i32
    return %arg0, %c0_i32 : i32, i32
  }
  func.func @transform_1(%arg0: i32, %arg1: i32) -> (i32, i32) {
    %c0_i32 = arith.constant 0 : i32
    %c0_i32_0 = arith.constant 0 : i32
    return %c0_i32, %arg1 : i32, i32
  }
  func.func @transform_2(%arg0: i32, %arg1: i32) -> (i32, i32) {
    %c0_i32 = arith.constant 0 : i32
    return %arg0, %arg1 : i32, i32
  }
  func.func @transform_3(%arg0: i32, %arg1: i32) -> (i32, i32) {
    %c0_i32 = arith.constant 0 : i32
    return %arg0, %arg1 : i32, i32
  }
}

module attributes {stable_mosaic.version = 11 : i64} {
  func.func @_mm_fullk_relu_kernel(%arg0: i32, %arg1: i32, %arg2: memref<128x256xbf16, #tpu.memory_space<vmem>>, %arg3: memref<256x128xbf16, #tpu.memory_space<vmem>>, %arg4: memref<128x128xbf16, #tpu.memory_space<vmem>>) attributes {dimension_semantics = [#tpu.dimension_semantics<parallel>, #tpu.dimension_semantics<parallel>], iteration_bounds = array<i64: 1, 1>, scalar_prefetch = 0 : i64, scratch_operands = 0 : i64, tpu.core_type = #tpu.core_type<tc>, window_params = [{transform_indices = @transform_0, window_bounds = array<i64: 128, 256>}, {transform_indices = @transform_1, window_bounds = array<i64: 256, 128>}, {transform_indices = @transform_2, window_bounds = array<i64: 128, 128>}]} {
    %c0 = arith.constant 0 : index
    %c0_0 = arith.constant 0 : index
    %0 = vector.load %arg2[%c0, %c0_0] : memref<128x256xbf16, #tpu.memory_space<vmem>>, vector<128x256xbf16>
    %c0_1 = arith.constant 0 : index
    %c0_2 = arith.constant 0 : index
    %1 = vector.load %arg3[%c0_1, %c0_2] : memref<256x128xbf16, #tpu.memory_space<vmem>>, vector<256x128xbf16>
    %cst = arith.constant dense<0.000000e+00> : vector<128x128xf32>
    %2 = tpu.matmul %0, %1, %cst {dimension_numbers = #tpu.dot_dimension_numbers<[1], [0], [0], [1], [0, 0, 1, 1], [], []>} : vector<128x256xbf16>, vector<256x128xbf16>, vector<128x128xf32> -> vector<128x128xf32>
    %cst_3 = arith.constant 0.000000e+00 : f32
    %3 = vector.broadcast %cst_3 : f32 to vector<128x128xf32>
    %4 = arith.maximumf %2, %3 : vector<128x128xf32>
    %5 = arith.truncf %4 : vector<128x128xf32> to vector<128x128xbf16>
    %c0_4 = arith.constant 0 : index
    %c0_5 = arith.constant 0 : index
    %6 = vector.load %arg4[%c0_4, %c0_5] : memref<128x128xbf16, #tpu.memory_space<vmem>>, vector<128x128xbf16>
    tpu.vector_store %arg4[%c0_4, %c0_5], %5 {strides = array<i32>} : memref<128x128xbf16, #tpu.memory_space<vmem>>, vector<128x128xbf16>,
    return
  }
  func.func @transform_0(%arg0: i32, %arg1: i32) -> (i32, i32) {
    %c0_i32 = arith.constant 0 : i32
    %c0_i32_0 = arith.constant 0 : i32
    return %arg0, %c0_i32 : i32, i32
  }
  func.func @transform_1(%arg0: i32, %arg1: i32) -> (i32, i32) {
    %c0_i32 = arith.constant 0 : i32
    %c0_i32_0 = arith.constant 0 : i32
    return %c0_i32, %arg1 : i32, i32
  }
  func.func @transform_2(%arg0: i32, %arg1: i32) -> (i32, i32) {
    %c0_i32 = arith.constant 0 : i32
    return %arg0, %arg1 : i32, i32
  }
}

</mosaic_0001>

<bundles_post_ra>
// kernel: resnet_forward.12
= control target key start
LH: loop header
LB: loop body
LE: loop exit
PB: predicated region body
PF: predicated region fallthrough
CT: control target
= control target key end

     0   :  { %s2207_s1 = inlined_call_operand.vmem [shape: bf16[256,128], index: 1, kind: input, shape index: {}]   ;;  %s2208_s0 = inlined_call_operand.vmem [shape: bf16[512,256], index: 0, kind: input, shape index: {}]   ;;  %s2209_s2 = inlined_call_operand.vmem [shape: bf16[512,128], index: 2, kind: output, shape index: {}]  }
   0x1   :  { %v1448_v0 = vld [vmem:[%s2207_s1 + $0x38] sm:$0xff]  ;;  %v1447_v2 = vld [vmem:[%s2207_s1 + $0x30] sm:$0xff]  ;;  %v1446_v4 = vld [vmem:[%s2207_s1 + $0x28] sm:$0xff] }
   0x2   :  { %v1456_v1 = vld [vmem:[%s2207_s1 + $0x78] sm:$0xff]  ;;  %523 = vmatpush.bf16.msra.mxu0 %v1448_v0  ;;  %1648 = vmatpush.bf16.msra.mxu2 %v1448_v0  ;;  %v1455_v3 = vld [vmem:[%s2207_s1 + $0x70] sm:$0xff]  ;;  %v1454_v5 = vld [vmem:[%s2207_s1 + $0x68] sm:$0xff] }
   0x3   :  { %692 = vmatpush.bf16.msra.mxu1 %v1456_v1  ;;  %1656 = vmatpush.bf16.msra.mxu3 %v1456_v1  ;;  %v1445_v6 = vld [vmem:[%s2207_s1 + $0x20] sm:$0xff]  ;;  %v1444_v8 = vld [vmem:[%s2207_s1 + $0x18] sm:$0xff]  ;;  %v1443_v10 = vld [vmem:[%s2207_s1 + $0x10] sm:$0xff] }
   0x4   :  { %v1453_v7 = vld [vmem:[%s2207_s1 + $0x60] sm:$0xff]  ;;  %v1452_v9 = vld [vmem:[%s2207_s1 + $0x58] sm:$0xff]  ;;  %v1451_v11 = vld [vmem:[%s2207_s1 + $0x50] sm:$0xff] }
   0x5   :  { %v1442_v12 = vld [vmem:[%s2207_s1 + $0x8] sm:$0xff]  ;;  %v1441_v14 = vld [vmem:[%s2207_s1] sm:$0xff]  ;;  %v1067_v28 = vld [vmem:[%s2208_s0 + $0x10] sm:$0xf] }
   0x6   :  { %524 = vmatpush.bf16.msra.mxu0 %v1447_v2  ;;  %1649 = vmatpush.bf16.msra.mxu2 %v1447_v2  ;;  %v1450_v13 = vld [vmem:[%s2207_s1 + $0x48] sm:$0xff]  ;;  %v1449_v15 = vld [vmem:[%s2207_s1 + $0x40] sm:$0xff]  ;;  %v1380_v29 = vld [vmem:[%s2208_s0 + $0x14] sm:$0xf0] }
   0x7   :  { %693 = vmatpush.bf16.msra.mxu1 %v1455_v3  ;;  %1657 = vmatpush.bf16.msra.mxu3 %v1455_v3  ;;  %v1059_v16 = vld [vmem:[%s2208_s0] sm:$0xf]  ;;  %v1378_v17 = vld [vmem:[%s2208_s0 + $0x4] sm:$0xf0]  ;;  %v1377_v20 = vld [vmem:[%s2208_s0 + $0x4] sm:$0xf]  ;;  %v1068_v36 = vor.u32 %v1380_v29, %v1067_v28 }
   0x8   :  { %v1187_v18 = vld [vmem:[%s2208_s0 + $0x100] sm:$0xf]  ;;  %v1410_v19 = vld [vmem:[%s2208_s0 + $0x104] sm:$0xf0]  ;;  %v1061_v21 = vld [vmem:[%s2208_s0 + $0x8] sm:$0xf0]  ;;  %v1060_v24 = vor.u32 %v1378_v17, %v1059_v16 }
   0x9   :  { %v1409_v22 = vld [vmem:[%s2208_s0 + $0x104] sm:$0xf]  ;;  %v1189_v23 = vld [vmem:[%s2208_s0 + $0x108] sm:$0xf0]  ;;  %v1188_v25 = vor.u32 %v1410_v19, %v1187_v18  ;;  %v1064_v26 = vor.u32 %v1377_v20, %v1061_v21  ;;  %v1195_v30 = vld [vmem:[%s2208_s0 + $0x110] sm:$0xf] }
   0xa   :  { %525 = vmatpush.bf16.msra.mxu0 %v1446_v4  ;;  %1650 = vmatpush.bf16.msra.mxu2 %v1446_v4  ;;  %v1192_v27 = vor.u32 %v1409_v22, %v1189_v23  ;;  %v1412_v31 = vld [vmem:[%s2208_s0 + $0x114] sm:$0xf0]  ;;  %v1379_v32 = vld [vmem:[%s2208_s0 + $0x14] sm:$0xf]  ;;  %v1069_v33 = vld [vmem:[%s2208_s0 + $0x18] sm:$0xf0] }
   0xb   :  { %694 = vmatpush.bf16.msra.mxu1 %v1454_v5  ;;  %1658 = vmatpush.bf16.msra.mxu3 %v1454_v5  ;;  %v1411_v34 = vld [vmem:[%s2208_s0 + $0x114] sm:$0xf]  ;;  %v1197_v35 = vld [vmem:[%s2208_s0 + $0x118] sm:$0xf0]  ;;  %v1196_v37 = vor.u32 %v1412_v31, %v1195_v30  ;;  %v1072_v38 = vor.u32 %v1379_v32, %v1069_v33  ;;  %v1075_v40 = vld [vmem:[%s2208_s0 + $0x20] sm:$0xf] }
   0xc   :  { %v1200_v39 = vor.u32 %v1411_v34, %v1197_v35  ;;  %v1382_v41 = vld [vmem:[%s2208_s0 + $0x24] sm:$0xf0]  ;;  %v1203_v42 = vld [vmem:[%s2208_s0 + $0x120] sm:$0xf]  ;;  %v1381_v44 = vld [vmem:[%s2208_s0 + $0x24] sm:$0xf] }
   0xd   :  { %v1414_v43 = vld [vmem:[%s2208_s0 + $0x124] sm:$0xf0]  ;;  %v1077_v45 = vld [vmem:[%s2208_s0 + $0x28] sm:$0xf0]  ;;  %v1413_v46 = vld [vmem:[%s2208_s0 + $0x124] sm:$0xf]  ;;  %v1076_v48 = vor.u32 %v1382_v41, %v1075_v40 }
   0xe   :  { %526 = vmatpush.bf16.msra.mxu0 %v1445_v6  ;;  %1651 = vmatpush.bf16.msra.mxu2 %v1445_v6  ;;  %v1205_v47 = vld [vmem:[%s2208_s0 + $0x128] sm:$0xf0]  ;;  %v1204_v49 = vor.u32 %v1414_v43, %v1203_v42  ;;  %v1080_v50 = vor.u32 %v1381_v44, %v1077_v45  ;;  %v1083_v52 = vld [vmem:[%s2208_s0 + $0x30] sm:$0xf]  ;;  %v1384_v53 = vld [vmem:[%s2208_s0 + $0x34] sm:$0xf0] }
   0xf   :  { %695 = vmatpush.bf16.msra.mxu1 %v1453_v7  ;;  %1659 = vmatpush.bf16.msra.mxu3 %v1453_v7  ;;  %v1208_v51 = vor.u32 %v1413_v46, %v1205_v47  ;;  %v1211_v54 = vld [vmem:[%s2208_s0 + $0x130] sm:$0xf]  ;;  %v1416_v55 = vld [vmem:[%s2208_s0 + $0x134] sm:$0xf0]  ;;  %v1383_v56 = vld [vmem:[%s2208_s0 + $0x34] sm:$0xf]  ;;  %v1084_v60 = vor.u32 %v1384_v53, %v1083_v52 }
  0x10   :  { %v1085_v57 = vld [vmem:[%s2208_s0 + $0x38] sm:$0xf0]  ;;  %v1415_v58 = vld [vmem:[%s2208_s0 + $0x134] sm:$0xf]  ;;  %v1212_v61 = vor.u32 %v1416_v55, %v1211_v54  ;;  %v1091_v0 = vld [vmem:[%s2208_s0 + $0x40] sm:$0xf] }
  0x11   :  { %v1213_v59 = vld [vmem:[%s2208_s0 + $0x138] sm:$0xf0]  ;;  %v1088_v62 = vor.u32 %v1383_v56, %v1085_v57  ;;  %v1386_v1 = vld [vmem:[%s2208_s0 + $0x44] sm:$0xf0]  ;;  %v1219_v2 = vld [vmem:[%s2208_s0 + $0x140] sm:$0xf] }
  0x12   :  { %527 = vmatpush.bf16.msra.mxu0 %v1444_v8  ;;  %1652 = vmatpush.bf16.msra.mxu2 %v1444_v8  ;;  %v1216_v63 = vor.u32 %v1415_v58, %v1213_v59  ;;  %v1418_v3 = vld [vmem:[%s2208_s0 + $0x144] sm:$0xf0]  ;;  %v1385_v4 = vld [vmem:[%s2208_s0 + $0x44] sm:$0xf]  ;;  %v1093_v5 = vld [vmem:[%s2208_s0 + $0x48] sm:$0xf0]  ;;  %v1092_v8 = vor.u32 %v1386_v1, %v1091_v0 }
  0x13   :  { %696 = vmatpush.bf16.msra.mxu1 %v1452_v9  ;;  %1660 = vmatpush.bf16.msra.mxu3 %v1452_v9  ;;  %v1417_v6 = vld [vmem:[%s2208_s0 + $0x144] sm:$0xf]  ;;  %v1221_v7 = vld [vmem:[%s2208_s0 + $0x148] sm:$0xf0]  ;;  %v1220_v9 = vor.u32 %v1418_v3, %v1219_v2  ;;  %v1387_v16 = vld [vmem:[%s2208_s0 + $0x54] sm:$0xf] }
  0x14   :  { %v1101_v17 = vld [vmem:[%s2208_s0 + $0x58] sm:$0xf0]  ;;  %v1419_v18 = vld [vmem:[%s2208_s0 + $0x154] sm:$0xf]  ;;  %v1389_v28 = vld [vmem:[%s2208_s0 + $0x64] sm:$0xf] }
  0x15   :  { %v1229_v19 = vld [vmem:[%s2208_s0 + $0x158] sm:$0xf0]  ;;  %v1104_v22 = vor.u32 %v1387_v16, %v1101_v17  ;;  %v1109_v29 = vld [vmem:[%s2208_s0 + $0x68] sm:$0xf0]  ;;  %v1421_v30 = vld [vmem:[%s2208_s0 + $0x164] sm:$0xf] }
  0x16   :  { %528 = vmatpush.bf16.msra.mxu0 %v1443_v10  ;;  %1653 = vmatpush.bf16.msra.mxu2 %v1443_v10  ;;  %v1096_v10 = vor.u32 %v1385_v4, %v1093_v5  ;;  %v1232_v23 = vor.u32 %v1419_v18, %v1229_v19  ;;  %v1237_v31 = vld [vmem:[%s2208_s0 + $0x168] sm:$0xf0]  ;;  %v1112_v34 = vor.u32 %v1389_v28, %v1109_v29  ;;  %v1391_v40 = vld [vmem:[%s2208_s0 + $0x74] sm:$0xf]  ;;  %v1117_v41 = vld [vmem:[%s2208_s0 + $0x78] sm:$0xf0] }
  0x17   :  { %697 = vmatpush.bf16.msra.mxu1 %v1451_v11  ;;  %1661 = vmatpush.bf16.msra.mxu3 %v1451_v11  ;;  %v1224_v11 = vor.u32 %v1417_v6, %v1221_v7  ;;  %v1240_v35 = vor.u32 %v1421_v30, %v1237_v31  ;;  %v1423_v42 = vld [vmem:[%s2208_s0 + $0x174] sm:$0xf]  ;;  %v1245_v43 = vld [vmem:[%s2208_s0 + $0x178] sm:$0xf0]  ;;  %v1120_v46 = vor.u32 %v1391_v40, %v1117_v41  ;;  %v1393_v52 = vld [vmem:[%s2208_s0 + $0x84] sm:$0xf] }
  0x18   :  { %v1248_v47 = vor.u32 %v1423_v42, %v1245_v43  ;;  %v1125_v53 = vld [vmem:[%s2208_s0 + $0x88] sm:$0xf0]  ;;  %v1425_v54 = vld [vmem:[%s2208_s0 + $0x184] sm:$0xf]  ;;  %v1131_v4 = vld [vmem:[%s2208_s0 + $0x90] sm:$0xf] }
  0x19   :  { %v1253_v55 = vld [vmem:[%s2208_s0 + $0x188] sm:$0xf0]  ;;  %v1128_v59 = vor.u32 %v1393_v52, %v1125_v53  ;;  %v1396_v5 = vld [vmem:[%s2208_s0 + $0x94] sm:$0xf0]  ;;  %v1259_v6 = vld [vmem:[%s2208_s0 + $0x190] sm:$0xf] }
  0x1a   :  { %529 = vmatpush.bf16.msra.mxu0 %v1442_v12  ;;  %1654 = vmatpush.bf16.msra.mxu2 %v1442_v12  ;;  %v1099_v12 = vld [vmem:[%s2208_s0 + $0x50] sm:$0xf]  ;;  %v1132_v18 = vor.u32 %v1396_v5, %v1131_v4  ;;  %v1397_v40 = vld [vmem:[%s2208_s0 + $0xa4] sm:$0xf]  ;;  %v1141_v41 = vld [vmem:[%s2208_s0 + $0xa8] sm:$0xf0] }
  0x1b   :  { %698 = vmatpush.bf16.msra.mxu1 %v1450_v13  ;;  %1662 = vmatpush.bf16.msra.mxu3 %v1450_v13  ;;  %v1388_v13 = vld [vmem:[%s2208_s0 + $0x54] sm:$0xf0]  ;;  %v1429_v42 = vld [vmem:[%s2208_s0 + $0x1a4] sm:$0xf]  ;;  %v1269_v43 = vld [vmem:[%s2208_s0 + $0x1a8] sm:$0xf0]  ;;  %v1144_v52 = vor.u32 %v1397_v40, %v1141_v41 }
  0x1c   :  { %v1100_v20 = vor.u32 %v1388_v13, %v1099_v12  ;;  %v1427_v12 = vld [vmem:[%s2208_s0 + $0x194] sm:$0xf]  ;;  %v1261_v13 = vld [vmem:[%s2208_s0 + $0x198] sm:$0xf0]  ;;  %v1272_v53 = vor.u32 %v1429_v42, %v1269_v43  ;;  %v1432_v5 = vld [vmem:[%s2208_s0 + $0x1b4] sm:$0xf0] }
  0x1e   :  { %530 = vmatpush.bf16.msra.mxu0 %v1441_v14  ;;  %1655 = vmatpush.bf16.msra.mxu2 %v1441_v14  ;;  %v1227_v14 = vld [vmem:[%s2208_s0 + $0x150] sm:$0xf] }
  0x1f   :  { %699 = vmatpush.bf16.msra.mxu1 %v1449_v15  ;;  %1663 = vmatpush.bf16.msra.mxu3 %v1449_v15  ;;  %v1420_v15 = vld [vmem:[%s2208_s0 + $0x154] sm:$0xf0] }
  0x20   :  { %v1228_v21 = vor.u32 %v1420_v15, %v1227_v14 }
  0x21   :  { %531 = vmatmul.bf16.vlgmr.msra.gmra.mxu0 %v1060_v24  ;;  %611 = vmatmul.bf16.vlgmr.msra.gmra.mxu2 %v1188_v25  ;;  %v1107_v24 = vld [vmem:[%s2208_s0 + $0x60] sm:$0xf]  ;;  %v1390_v25 = vld [vmem:[%s2208_s0 + $0x64] sm:$0xf0] }
  0x22   :  { %700 = vmatmul.bf16.vlgmr.msra.gmra.mxu1 %v1064_v26  ;;  %780 = vmatmul.bf16.vlgmr.msra.gmra.mxu3 %v1192_v27  ;;  %v1235_v26 = vld [vmem:[%s2208_s0 + $0x160] sm:$0xf]  ;;  %v1422_v27 = vld [vmem:[%s2208_s0 + $0x164] sm:$0xf0]  ;;  %v1108_v32 = vor.u32 %v1390_v25, %v1107_v24 }
  0x23   :  { %v1236_v33 = vor.u32 %v1422_v27, %v1235_v26 }
  0x31   :  { %536 = vmatmul.bf16.gmra.mxu0 %v1068_v36  ;;  %616 = vmatmul.bf16.gmra.mxu2 %v1196_v37  ;;  %v1115_v36 = vld [vmem:[%s2208_s0 + $0x70] sm:$0xf]  ;;  %v1392_v37 = vld [vmem:[%s2208_s0 + $0x74] sm:$0xf0] }
  0x32   :  { %705 = vmatmul.bf16.gmra.mxu1 %v1072_v38  ;;  %785 = vmatmul.bf16.gmra.mxu3 %v1200_v39  ;;  %v1243_v38 = vld [vmem:[%s2208_s0 + $0x170] sm:$0xf]  ;;  %v1424_v39 = vld [vmem:[%s2208_s0 + $0x174] sm:$0xf0]  ;;  %v1116_v44 = vor.u32 %v1392_v37, %v1115_v36  ;;  %v1267_v36 = vld [vmem:[%s2208_s0 + $0x1a0] sm:$0xf] }
  0x33   :  { %v1244_v45 = vor.u32 %v1424_v39, %v1243_v38  ;;  %v1430_v39 = vld [vmem:[%s2208_s0 + $0x1a4] sm:$0xf0] }
  0x41   :  { %541 = vmatmul.bf16.gmra.mxu0 %v1076_v48  ;;  %621 = vmatmul.bf16.gmra.mxu2 %v1204_v49  ;;  %v1123_v48 = vld [vmem:[%s2208_s0 + $0x80] sm:$0xf]  ;;  %v1394_v49 = vld [vmem:[%s2208_s0 + $0x84] sm:$0xf0] }
  0x42   :  { %710 = vmatmul.bf16.gmra.mxu1 %v1080_v50  ;;  %790 = vmatmul.bf16.gmra.mxu3 %v1208_v51  ;;  %v1251_v50 = vld [vmem:[%s2208_s0 + $0x180] sm:$0xf]  ;;  %v1426_v51 = vld [vmem:[%s2208_s0 + $0x184] sm:$0xf0]  ;;  %v1124_v56 = vor.u32 %v1394_v49, %v1123_v48  ;;  %v1268_v49 = vor.u32 %v1430_v39, %v1267_v36  ;;  %v1401_v36 = vld [vmem:[%s2208_s0 + $0xc4] sm:$0xf] }
  0x43   :  { %v1252_v57 = vor.u32 %v1426_v51, %v1251_v50  ;;  %v1285_v39 = vld [vmem:[%s2208_s0 + $0x1c8] sm:$0xf0] }
  0x51   :  { %546 = vmatmul.bf16.gmra.mxu0 %v1084_v60  ;;  %626 = vmatmul.bf16.gmra.mxu2 %v1212_v61  ;;  %v1256_v60 = vor.u32 %v1425_v54, %v1253_v55 }
  0x52   :  { %715 = vmatmul.bf16.gmra.mxu1 %v1088_v62  ;;  %795 = vmatmul.bf16.gmra.mxu3 %v1216_v63 }
  0x61   :  { %551 = vmatmul.bf16.gmra.mxu0 %v1092_v8  ;;  %631 = vmatmul.bf16.gmra.mxu2 %v1220_v9  ;;  %v1428_v9 = vld [vmem:[%s2208_s0 + $0x194] sm:$0xf0] }
  0x62   :  { %720 = vmatmul.bf16.gmra.mxu1 %v1096_v10  ;;  %800 = vmatmul.bf16.gmra.mxu3 %v1224_v11  ;;  %v1395_v10 = vld [vmem:[%s2208_s0 + $0x94] sm:$0xf]  ;;  %v1133_v11 = vld [vmem:[%s2208_s0 + $0x98] sm:$0xf0]  ;;  %v1260_v19 = vor.u32 %v1428_v9, %v1259_v6 }
  0x63   :  { %v1399_v6 = vld [vmem:[%s2208_s0 + $0xb4] sm:$0xf]  ;;  %v1277_v9 = vld [vmem:[%s2208_s0 + $0x1b8] sm:$0xf0] }
  0x71   :  { %556 = vmatmul.bf16.gmra.mxu0 %v1100_v20  ;;  %636 = vmatmul.bf16.gmra.mxu2 %v1228_v21 }
  0x72   :  { %725 = vmatmul.bf16.gmra.mxu1 %v1104_v22  ;;  %805 = vmatmul.bf16.gmra.mxu3 %v1232_v23  ;;  %v1136_v22 = vor.u32 %v1395_v10, %v1133_v11  ;;  %v1264_v23 = vor.u32 %v1427_v12, %v1261_v13 }
  0x81   :  { %561 = vmatmul.bf16.gmra.mxu0 %v1108_v32  ;;  %641 = vmatmul.bf16.gmra.mxu2 %v1236_v33 }
  0x82   :  { %730 = vmatmul.bf16.gmra.mxu1 %v1112_v34  ;;  %810 = vmatmul.bf16.gmra.mxu3 %v1240_v35  ;;  %v1139_v34 = vld [vmem:[%s2208_s0 + $0xa0] sm:$0xf]  ;;  %v1398_v35 = vld [vmem:[%s2208_s0 + $0xa4] sm:$0xf0] }
  0x83   :  { %v1140_v48 = vor.u32 %v1398_v35, %v1139_v34  ;;  %v1434_v35 = vld [vmem:[%s2208_s0 + $0x1c4] sm:$0xf0] }
  0x91   :  { %566 = vmatmul.bf16.gmra.mxu0 %v1116_v44  ;;  %646 = vmatmul.bf16.gmra.mxu2 %v1244_v45 }
  0x92   :  { %735 = vmatmul.bf16.gmra.mxu1 %v1120_v46  ;;  %815 = vmatmul.bf16.gmra.mxu3 %v1248_v47 }
  0x9e   :  { %v532_v58 = vpop.f32.mrf.mxu0 }
  0x9f   :  { %v701_v61 = vpop.f32.mrf.mxu1 }
  0xa0   :  { %v702_v0 = vadd.f32 %v701_v61, %v532_v58 }
  0xa1   :  { %571 = vmatmul.bf16.gmra.mxu0 %v1124_v56  ;;  %651 = vmatmul.bf16.gmra.mxu2 %v1252_v57 }
  0xa2   :  { %740 = vmatmul.bf16.gmra.mxu1 %v1128_v59  ;;  %820 = vmatmul.bf16.gmra.mxu3 %v1256_v60  ;;  %v861_v7 = vmax.f32 %v702_v0, 0.0  ;;  %v1147_v0 = vld [vmem:[%s2208_s0 + $0xb0] sm:$0xf] }
  0xa4   :  { %v612_v62 = vpop.f32.mrf.mxu2 }
  0xa5   :  { %v781_v63 = vpop.f32.mrf.mxu3 }
  0xa6   :  { %v534_v1 = vpop.f32.mrf.mxu0  ;;  %v782_v14 = vadd.f32 %v781_v63, %v612_v62 }
  0xa7   :  { %v703_v2 = vpop.f32.mrf.mxu1 }
  0xa8   :  { %v704_v3 = vadd.f32 %v703_v2, %v534_v1  ;;  %v893_v25 = vmax.f32 %v782_v14, 0.0  ;;  %v1400_v1 = vld [vmem:[%s2208_s0 + $0xb4] sm:$0xf0]  ;;  %v1275_v2 = vld [vmem:[%s2208_s0 + $0x1b0] sm:$0xf] }
  0xa9   :  { %v1148_v14 = vor.u32 %v1400_v1, %v1147_v0  ;;  %v1436_v1 = vld [vmem:[%s2208_s0 + $0x1d4] sm:$0xf0] }
  0xaa   :  { %v862_v8 = vmax.f32 %v704_v3, 0.0 }
  0xac   :  { %v1460_v15 = vpack.c.bf16 %v862_v8, %v861_v7  ;;  %v614_v16 = vpop.f32.mrf.mxu2  ;;  %v1149_v7 = vld [vmem:[%s2208_s0 + $0xb8] sm:$0xf0]  ;;  %v1431_v8 = vld [vmem:[%s2208_s0 + $0x1b4] sm:$0xf] }
  0xad   :  { %v783_v17 = vpop.f32.mrf.mxu3 }
  0xae   :  { %1461 = vst [vmem:[%s2209_s2] sm:$0xff] %v1460_v15   ;;  %v784_v20 = vadd.f32 %v783_v17, %v614_v16  ;;  %v537_v21 = vpop.f32.mrf.mxu0  ;;  %v1276_v15 = vor.u32 %v1432_v5, %v1275_v2  ;;  %v1403_v2 = vld [vmem:[%s2208_s0 + $0xd4] sm:$0xf]  ;;  %v1293_v5 = vld [vmem:[%s2208_s0 + $0x1d8] sm:$0xf0] }
  0xaf   :  { %v706_v24 = vpop.f32.mrf.mxu1 }
  0xb0   :  { %v894_v26 = vmax.f32 %v784_v20, 0.0  ;;  %v707_v30 = vadd.f32 %v706_v24, %v537_v21 }
  0xb1   :  { %576 = vmatmul.bf16.gmra.mxu0 %v1132_v18  ;;  %656 = vmatmul.bf16.gmra.mxu2 %v1260_v19  ;;  %v1152_v18 = vor.u32 %v1399_v6, %v1149_v7  ;;  %v1280_v19 = vor.u32 %v1431_v8, %v1277_v9 }
  0xb2   :  { %v1540_v27 = vpack.c.bf16 %v894_v26, %v893_v25  ;;  %745 = vmatmul.bf16.gmra.mxu1 %v1136_v22  ;;  %825 = vmatmul.bf16.gmra.mxu3 %v1264_v23  ;;  %v863_v37 = vmax.f32 %v707_v30, 0.0  ;;  %v1155_v30 = vld [vmem:[%s2208_s0 + $0xc0] sm:$0xf] }
  0xb4   :  { %1632 = vst [vmem:[%s2209_s2 + $0x80] sm:$0xff] %v1540_v27   ;;  %v617_v28 = vpop.f32.mrf.mxu2 }
  0xb5   :  { %v786_v29 = vpop.f32.mrf.mxu3 }
  0xb6   :  { %v539_v31 = vpop.f32.mrf.mxu0  ;;  %v787_v44 = vadd.f32 %v786_v29, %v617_v28 }
  0xb7   :  { %v708_v32 = vpop.f32.mrf.mxu1 }
  0xb8   :  { %v709_v33 = vadd.f32 %v708_v32, %v539_v31  ;;  %v895_v55 = vmax.f32 %v787_v44, 0.0  ;;  %v1402_v31 = vld [vmem:[%s2208_s0 + $0xc4] sm:$0xf0]  ;;  %v1283_v32 = vld [vmem:[%s2208_s0 + $0x1c0] sm:$0xf] }
  0xb9   :  { %v1156_v44 = vor.u32 %v1402_v31, %v1155_v30  ;;  %v1438_v31 = vld [vmem:[%s2208_s0 + $0x1e4] sm:$0xf0] }
  0xba   :  { %v864_v38 = vmax.f32 %v709_v33, 0.0 }
  0xbc   :  { %v1465_v45 = vpack.c.bf16 %v864_v38, %v863_v37  ;;  %v619_v46 = vpop.f32.mrf.mxu2  ;;  %v1157_v37 = vld [vmem:[%s2208_s0 + $0xc8] sm:$0xf0]  ;;  %v1433_v38 = vld [vmem:[%s2208_s0 + $0x1c4] sm:$0xf] }
  0xbd   :  { %v788_v47 = vpop.f32.mrf.mxu3 }
  0xbe   :  { %1617 = vst [vmem:[%s2209_s2 + $0x8] sm:$0xff] %v1465_v45   ;;  %v789_v50 = vadd.f32 %v788_v47, %v619_v46  ;;  %v542_v51 = vpop.f32.mrf.mxu0  ;;  %v1284_v45 = vor.u32 %v1434_v35, %v1283_v32  ;;  %v1405_v32 = vld [vmem:[%s2208_s0 + $0xe4] sm:$0xf]  ;;  %v1301_v35 = vld [vmem:[%s2208_s0 + $0x1e8] sm:$0xf0] }
  0xbf   :  { %v711_v54 = vpop.f32.mrf.mxu1 }
  0xc0   :  { %v896_v56 = vmax.f32 %v789_v50, 0.0  ;;  %v712_v60 = vadd.f32 %v711_v54, %v542_v51 }
  0xc1   :  { %581 = vmatmul.bf16.gmra.mxu0 %v1140_v48  ;;  %661 = vmatmul.bf16.gmra.mxu2 %v1268_v49  ;;  %v1160_v48 = vor.u32 %v1401_v36, %v1157_v37  ;;  %v1288_v49 = vor.u32 %v1433_v38, %v1285_v39 }
  0xc2   :  { %v1545_v57 = vpack.c.bf16 %v896_v56, %v895_v55  ;;  %750 = vmatmul.bf16.gmra.mxu1 %v1144_v52  ;;  %830 = vmatmul.bf16.gmra.mxu3 %v1272_v53  ;;  %v865_v3 = vmax.f32 %v712_v60, 0.0  ;;  %v1163_v60 = vld [vmem:[%s2208_s0 + $0xd0] sm:$0xf] }
  0xc4   :  { %1633 = vst [vmem:[%s2209_s2 + $0x88] sm:$0xff] %v1545_v57   ;;  %v622_v58 = vpop.f32.mrf.mxu2 }
  0xc5   :  { %v791_v59 = vpop.f32.mrf.mxu3 }
  0xc6   :  { %v544_v61 = vpop.f32.mrf.mxu0  ;;  %v792_v10 = vadd.f32 %v791_v59, %v622_v58 }
  0xc7   :  { %v713_v62 = vpop.f32.mrf.mxu1 }
  0xc8   :  { %v714_v63 = vadd.f32 %v713_v62, %v544_v61  ;;  %v897_v21 = vmax.f32 %v792_v10, 0.0  ;;  %v1404_v61 = vld [vmem:[%s2208_s0 + $0xd4] sm:$0xf0]  ;;  %v1291_v62 = vld [vmem:[%s2208_s0 + $0x1d0] sm:$0xf] }
  0xc9   :  { %v1164_v10 = vor.u32 %v1404_v61, %v1163_v60  ;;  %v1440_v61 = vld [vmem:[%s2208_s0 + $0x1f4] sm:$0xf0] }
  0xca   :  { %v866_v4 = vmax.f32 %v714_v63, 0.0 }
  0xcc   :  { %v1470_v11 = vpack.c.bf16 %v866_v4, %v865_v3  ;;  %v624_v12 = vpop.f32.mrf.mxu2  ;;  %v1165_v3 = vld [vmem:[%s2208_s0 + $0xd8] sm:$0xf0]  ;;  %v1435_v4 = vld [vmem:[%s2208_s0 + $0x1d4] sm:$0xf] }
  0xcd   :  { %v793_v13 = vpop.f32.mrf.mxu3 }
  0xce   :  { %1618 = vst [vmem:[%s2209_s2 + $0x10] sm:$0xff] %v1470_v11   ;;  %v794_v16 = vadd.f32 %v793_v13, %v624_v12  ;;  %v547_v17 = vpop.f32.mrf.mxu0  ;;  %v1292_v11 = vor.u32 %v1436_v1, %v1291_v62  ;;  %v1407_v62 = vld [vmem:[%s2208_s0 + $0xf4] sm:$0xf]  ;;  %v1309_v1 = vld [vmem:[%s2208_s0 + $0x1f8] sm:$0xf0] }
  0xcf   :  { %v716_v20 = vpop.f32.mrf.mxu1 }
  0xd0   :  { %v898_v22 = vmax.f32 %v794_v16, 0.0  ;;  %v717_v26 = vadd.f32 %v716_v20, %v547_v17 }
  0xd1   :  { %586 = vmatmul.bf16.gmra.mxu0 %v1148_v14  ;;  %666 = vmatmul.bf16.gmra.mxu2 %v1276_v15  ;;  %v1168_v14 = vor.u32 %v1403_v2, %v1165_v3  ;;  %v1296_v15 = vor.u32 %v1435_v4, %v1293_v5 }
  0xd2   :  { %v1550_v23 = vpack.c.bf16 %v898_v22, %v897_v21  ;;  %755 = vmatmul.bf16.gmra.mxu1 %v1152_v18  ;;  %835 = vmatmul.bf16.gmra.mxu3 %v1280_v19  ;;  %v867_v33 = vmax.f32 %v717_v26, 0.0  ;;  %v1171_v26 = vld [vmem:[%s2208_s0 + $0xe0] sm:$0xf] }
  0xd4   :  { %1634 = vst [vmem:[%s2209_s2 + $0x90] sm:$0xff] %v1550_v23   ;;  %v627_v24 = vpop.f32.mrf.mxu2 }
  0xd5   :  { %v796_v25 = vpop.f32.mrf.mxu3 }
  0xd6   :  { %v549_v27 = vpop.f32.mrf.mxu0  ;;  %v797_v40 = vadd.f32 %v796_v25, %v627_v24 }
  0xd7   :  { %v718_v28 = vpop.f32.mrf.mxu1 }
  0xd8   :  { %v719_v29 = vadd.f32 %v718_v28, %v549_v27  ;;  %v899_v51 = vmax.f32 %v797_v40, 0.0  ;;  %v1406_v27 = vld [vmem:[%s2208_s0 + $0xe4] sm:$0xf0]  ;;  %v1299_v28 = vld [vmem:[%s2208_s0 + $0x1e0] sm:$0xf] }
  0xd9   :  { %v1172_v40 = vor.u32 %v1406_v27, %v1171_v26 }
  0xda   :  { %v868_v34 = vmax.f32 %v719_v29, 0.0 }
  0xdc   :  { %v1475_v41 = vpack.c.bf16 %v868_v34, %v867_v33  ;;  %v629_v42 = vpop.f32.mrf.mxu2  ;;  %v1173_v33 = vld [vmem:[%s2208_s0 + $0xe8] sm:$0xf0]  ;;  %v1437_v34 = vld [vmem:[%s2208_s0 + $0x1e4] sm:$0xf] }
  0xdd   :  { %v798_v43 = vpop.f32.mrf.mxu3 }
  0xde   :  { %1619 = vst [vmem:[%s2209_s2 + $0x18] sm:$0xff] %v1475_v41   ;;  %v799_v46 = vadd.f32 %v798_v43, %v629_v42  ;;  %v552_v47 = vpop.f32.mrf.mxu0  ;;  %v1300_v41 = vor.u32 %v1438_v31, %v1299_v28 }
  0xdf   :  { %v721_v50 = vpop.f32.mrf.mxu1 }
  0xe0   :  { %v900_v52 = vmax.f32 %v799_v46, 0.0  ;;  %v722_v56 = vadd.f32 %v721_v50, %v552_v47 }
  0xe1   :  { %591 = vmatmul.bf16.gmra.mxu0 %v1156_v44  ;;  %671 = vmatmul.bf16.gmra.mxu2 %v1284_v45  ;;  %v1176_v44 = vor.u32 %v1405_v32, %v1173_v33  ;;  %v1304_v45 = vor.u32 %v1437_v34, %v1301_v35 }
  0xe2   :  { %v1555_v53 = vpack.c.bf16 %v900_v52, %v899_v51  ;;  %760 = vmatmul.bf16.gmra.mxu1 %v1160_v48  ;;  %840 = vmatmul.bf16.gmra.mxu3 %v1288_v49  ;;  %v869_v63 = vmax.f32 %v722_v56, 0.0  ;;  %v1179_v56 = vld [vmem:[%s2208_s0 + $0xf0] sm:$0xf] }
  0xe4   :  { %1635 = vst [vmem:[%s2209_s2 + $0x98] sm:$0xff] %v1555_v53   ;;  %v632_v54 = vpop.f32.mrf.mxu2 }
  0xe5   :  { %v801_v55 = vpop.f32.mrf.mxu3 }
  0xe6   :  { %v554_v57 = vpop.f32.mrf.mxu0  ;;  %v802_v6 = vadd.f32 %v801_v55, %v632_v54 }
  0xe7   :  { %v723_v58 = vpop.f32.mrf.mxu1 }
  0xe8   :  { %v724_v59 = vadd.f32 %v723_v58, %v554_v57  ;;  %v901_v17 = vmax.f32 %v802_v6, 0.0  ;;  %v1408_v57 = vld [vmem:[%s2208_s0 + $0xf4] sm:$0xf0]  ;;  %v1307_v58 = vld [vmem:[%s2208_s0 + $0x1f0] sm:$0xf] }
  0xe9   :  { %v1180_v6 = vor.u32 %v1408_v57, %v1179_v56 }
  0xea   :  { %v870_v0 = vmax.f32 %v724_v59, 0.0 }
  0xec   :  { %v1480_v7 = vpack.c.bf16 %v870_v0, %v869_v63  ;;  %v634_v8 = vpop.f32.mrf.mxu2  ;;  %v1181_v63 = vld [vmem:[%s2208_s0 + $0xf8] sm:$0xf0]  ;;  %v1439_v0 = vld [vmem:[%s2208_s0 + $0x1f4] sm:$0xf] }
  0xed   :  { %v803_v9 = vpop.f32.mrf.mxu3 }
  0xee   :  { %1620 = vst [vmem:[%s2209_s2 + $0x20] sm:$0xff] %v1480_v7   ;;  %v804_v12 = vadd.f32 %v803_v9, %v634_v8  ;;  %v557_v13 = vpop.f32.mrf.mxu0  ;;  %v1308_v7 = vor.u32 %v1440_v61, %v1307_v58 }
  0xef   :  { %v726_v16 = vpop.f32.mrf.mxu1 }
  0xf0   :  { %v902_v18 = vmax.f32 %v804_v12, 0.0  ;;  %v727_v22 = vadd.f32 %v726_v16, %v557_v13 }
  0xf1   :  { %596 = vmatmul.bf16.gmra.mxu0 %v1164_v10  ;;  %676 = vmatmul.bf16.gmra.mxu2 %v1292_v11  ;;  %v1184_v10 = vor.u32 %v1407_v62, %v1181_v63  ;;  %v1312_v11 = vor.u32 %v1439_v0, %v1309_v1 }
  0xf2   :  { %v1560_v19 = vpack.c.bf16 %v902_v18, %v901_v17  ;;  %765 = vmatmul.bf16.gmra.mxu1 %v1168_v14  ;;  %845 = vmatmul.bf16.gmra.mxu3 %v1296_v15  ;;  %v871_v29 = vmax.f32 %v727_v22, 0.0 }
  0xf4   :  { %1636 = vst [vmem:[%s2209_s2 + $0xa0] sm:$0xff] %v1560_v19   ;;  %v637_v20 = vpop.f32.mrf.mxu2 }
  0xf5   :  { %v806_v21 = vpop.f32.mrf.mxu3 }
  0xf6   :  { %v559_v23 = vpop.f32.mrf.mxu0  ;;  %v807_v36 = vadd.f32 %v806_v21, %v637_v20 }
  0xf7   :  { %v728_v24 = vpop.f32.mrf.mxu1 }
  0xf8   :  { %v729_v25 = vadd.f32 %v728_v24, %v559_v23  ;;  %v903_v47 = vmax.f32 %v807_v36, 0.0 }
  0xfa   :  { %v872_v30 = vmax.f32 %v729_v25, 0.0 }
  0xfc   :  { %v1485_v37 = vpack.c.bf16 %v872_v30, %v871_v29  ;;  %v639_v38 = vpop.f32.mrf.mxu2 }
  0xfd   :  { %v808_v39 = vpop.f32.mrf.mxu3 }
  0xfe   :  { %1621 = vst [vmem:[%s2209_s2 + $0x28] sm:$0xff] %v1485_v37   ;;  %v809_v42 = vadd.f32 %v808_v39, %v639_v38  ;;  %v562_v43 = vpop.f32.mrf.mxu0 }
  0xff   :  { %v731_v46 = vpop.f32.mrf.mxu1 }
 0x100   :  { %v904_v48 = vmax.f32 %v809_v42, 0.0  ;;  %v732_v52 = vadd.f32 %v731_v46, %v562_v43 }
 0x101   :  { %601 = vmatmul.bf16.gmra.mxu0 %v1172_v40  ;;  %681 = vmatmul.bf16.gmra.mxu2 %v1300_v41 }
 0x102   :  { %v1565_v49 = vpack.c.bf16 %v904_v48, %v903_v47  ;;  %770 = vmatmul.bf16.gmra.mxu1 %v1176_v44  ;;  %850 = vmatmul.bf16.gmra.mxu3 %v1304_v45  ;;  %v873_v59 = vmax.f32 %v732_v52, 0.0 }
 0x104   :  { %1637 = vst [vmem:[%s2209_s2 + $0xa8] sm:$0xff] %v1565_v49   ;;  %v642_v50 = vpop.f32.mrf.mxu2 }
 0x105   :  { %v811_v51 = vpop.f32.mrf.mxu3 }
 0x106   :  { %v564_v53 = vpop.f32.mrf.mxu0  ;;  %v812_v2 = vadd.f32 %v811_v51, %v642_v50 }
 0x107   :  { %v733_v54 = vpop.f32.mrf.mxu1 }
 0x108   :  { %v734_v55 = vadd.f32 %v733_v54, %v564_v53  ;;  %v905_v13 = vmax.f32 %v812_v2, 0.0 }
 0x10a   :  { %v874_v60 = vmax.f32 %v734_v55, 0.0 }
 0x10c   :  { %v1490_v3 = vpack.c.bf16 %v874_v60, %v873_v59  ;;  %v644_v4 = vpop.f32.mrf.mxu2 }
 0x10d   :  { %v813_v5 = vpop.f32.mrf.mxu3 }
 0x10e   :  { %1622 = vst [vmem:[%s2209_s2 + $0x30] sm:$0xff] %v1490_v3   ;;  %v814_v8 = vadd.f32 %v813_v5, %v644_v4  ;;  %v567_v9 = vpop.f32.mrf.mxu0 }
 0x10f   :  { %v736_v12 = vpop.f32.mrf.mxu1 }
 0x110   :  { %v906_v14 = vmax.f32 %v814_v8, 0.0  ;;  %v737_v18 = vadd.f32 %v736_v12, %v567_v9 }
 0x111   :  { %606 = vmatmul.bf16.gmra.mxu0 %v1180_v6  ;;  %686 = vmatmul.bf16.gmra.mxu2 %v1308_v7 }
 0x112   :  { %v1570_v15 = vpack.c.bf16 %v906_v14, %v905_v13  ;;  %775 = vmatmul.bf16.gmra.mxu1 %v1184_v10  ;;  %855 = vmatmul.bf16.gmra.mxu3 %v1312_v11  ;;  %v875_v22 = vmax.f32 %v737_v18, 0.0 }
 0x114   :  { %1638 = vst [vmem:[%s2209_s2 + $0xb0] sm:$0xff] %v1570_v15   ;;  %v647_v16 = vpop.f32.mrf.mxu2 }
 0x115   :  { %v816_v17 = vpop.f32.mrf.mxu3 }
 0x116   :  { %v569_v19 = vpop.f32.mrf.mxu0  ;;  %v817_v24 = vadd.f32 %v816_v17, %v647_v16 }
 0x117   :  { %v738_v20 = vpop.f32.mrf.mxu1 }
 0x118   :  { %v739_v21 = vadd.f32 %v738_v20, %v569_v19  ;;  %v907_v31 = vmax.f32 %v817_v24, 0.0 }
 0x11a   :  { %v876_v23 = vmax.f32 %v739_v21, 0.0 }
 0x11c   :  { %v1495_v25 = vpack.c.bf16 %v876_v23, %v875_v22  ;;  %v649_v26 = vpop.f32.mrf.mxu2 }
 0x11d   :  { %v818_v27 = vpop.f32.mrf.mxu3 }
 0x11e   :  { %1623 = vst [vmem:[%s2209_s2 + $0x38] sm:$0xff] %v1495_v25   ;;  %v819_v28 = vadd.f32 %v818_v27, %v649_v26  ;;  %v572_v29 = vpop.f32.mrf.mxu0 }
 0x11f   :  { %v741_v30 = vpop.f32.mrf.mxu1 }
 0x120   :  { %v908_v32 = vmax.f32 %v819_v28, 0.0  ;;  %v742_v36 = vadd.f32 %v741_v30, %v572_v29 }
 0x122   :  { %v1575_v33 = vpack.c.bf16 %v908_v32, %v907_v31  ;;  %v877_v40 = vmax.f32 %v742_v36, 0.0 }
 0x124   :  { %1639 = vst [vmem:[%s2209_s2 + $0xb8] sm:$0xff] %v1575_v33   ;;  %v652_v34 = vpop.f32.mrf.mxu2 }
 0x125   :  { %v821_v35 = vpop.f32.mrf.mxu3 }
 0x126   :  { %v574_v37 = vpop.f32.mrf.mxu0  ;;  %v822_v42 = vadd.f32 %v821_v35, %v652_v34 }
 0x127   :  { %v743_v38 = vpop.f32.mrf.mxu1 }
 0x128   :  { %v744_v39 = vadd.f32 %v743_v38, %v574_v37  ;;  %v909_v49 = vmax.f32 %v822_v42, 0.0 }
 0x12a   :  { %v878_v41 = vmax.f32 %v744_v39, 0.0 }
 0x12c   :  { %v1500_v43 = vpack.c.bf16 %v878_v41, %v877_v40  ;;  %v654_v44 = vpop.f32.mrf.mxu2 }
 0x12d   :  { %v823_v45 = vpop.f32.mrf.mxu3 }
 0x12e   :  { %1624 = vst [vmem:[%s2209_s2 + $0x40] sm:$0xff] %v1500_v43   ;;  %v824_v46 = vadd.f32 %v823_v45, %v654_v44  ;;  %v577_v47 = vpop.f32.mrf.mxu0 }
 0x12f   :  { %v746_v48 = vpop.f32.mrf.mxu1 }
 0x130   :  { %v910_v50 = vmax.f32 %v824_v46, 0.0  ;;  %v747_v54 = vadd.f32 %v746_v48, %v577_v47 }
 0x132   :  { %v1580_v51 = vpack.c.bf16 %v910_v50, %v909_v49  ;;  %v879_v58 = vmax.f32 %v747_v54, 0.0 }
 0x134   :  { %1640 = vst [vmem:[%s2209_s2 + $0xc0] sm:$0xff] %v1580_v51   ;;  %v657_v52 = vpop.f32.mrf.mxu2 }
 0x135   :  { %v826_v53 = vpop.f32.mrf.mxu3 }
 0x136   :  { %v579_v55 = vpop.f32.mrf.mxu0  ;;  %v827_v60 = vadd.f32 %v826_v53, %v657_v52 }
 0x137   :  { %v748_v56 = vpop.f32.mrf.mxu1 }
 0x138   :  { %v749_v57 = vadd.f32 %v748_v56, %v579_v55  ;;  %v911_v3 = vmax.f32 %v827_v60, 0.0 }
 0x13a   :  { %v880_v59 = vmax.f32 %v749_v57, 0.0 }
 0x13c   :  { %v1505_v61 = vpack.c.bf16 %v880_v59, %v879_v58  ;;  %v659_v62 = vpop.f32.mrf.mxu2 }
 0x13d   :  { %v828_v63 = vpop.f32.mrf.mxu3 }
 0x13e   :  { %1625 = vst [vmem:[%s2209_s2 + $0x48] sm:$0xff] %v1505_v61   ;;  %v829_v0 = vadd.f32 %v828_v63, %v659_v62  ;;  %v582_v1 = vpop.f32.mrf.mxu0 }
 0x13f   :  { %v751_v2 = vpop.f32.mrf.mxu1 }
 0x140   :  { %v912_v4 = vmax.f32 %v829_v0, 0.0  ;;  %v752_v8 = vadd.f32 %v751_v2, %v582_v1 }
 0x142   :  { %v1585_v5 = vpack.c.bf16 %v912_v4, %v911_v3  ;;  %v881_v12 = vmax.f32 %v752_v8, 0.0 }
 0x144   :  { %1641 = vst [vmem:[%s2209_s2 + $0xc8] sm:$0xff] %v1585_v5   ;;  %v662_v6 = vpop.f32.mrf.mxu2 }
 0x145   :  { %v831_v7 = vpop.f32.mrf.mxu3 }
 0x146   :  { %v584_v9 = vpop.f32.mrf.mxu0  ;;  %v832_v14 = vadd.f32 %v831_v7, %v662_v6 }
 0x147   :  { %v753_v10 = vpop.f32.mrf.mxu1 }
 0x148   :  { %v754_v11 = vadd.f32 %v753_v10, %v584_v9  ;;  %v913_v21 = vmax.f32 %v832_v14, 0.0 }
 0x14a   :  { %v882_v13 = vmax.f32 %v754_v11, 0.0 }
 0x14c   :  { %v1510_v15 = vpack.c.bf16 %v882_v13, %v881_v12  ;;  %v664_v16 = vpop.f32.mrf.mxu2 }
 0x14d   :  { %v833_v17 = vpop.f32.mrf.mxu3 }
 0x14e   :  { %1626 = vst [vmem:[%s2209_s2 + $0x50] sm:$0xff] %v1510_v15   ;;  %v834_v18 = vadd.f32 %v833_v17, %v664_v16  ;;  %v587_v19 = vpop.f32.mrf.mxu0 }
 0x14f   :  { %v756_v20 = vpop.f32.mrf.mxu1 }
 0x150   :  { %v914_v22 = vmax.f32 %v834_v18, 0.0  ;;  %v757_v26 = vadd.f32 %v756_v20, %v587_v19 }
 0x152   :  { %v1590_v23 = vpack.c.bf16 %v914_v22, %v913_v21  ;;  %v883_v30 = vmax.f32 %v757_v26, 0.0 }
 0x154   :  { %1642 = vst [vmem:[%s2209_s2 + $0xd0] sm:$0xff] %v1590_v23   ;;  %v667_v24 = vpop.f32.mrf.mxu2 }
 0x155   :  { %v836_v25 = vpop.f32.mrf.mxu3 }
 0x156   :  { %v589_v27 = vpop.f32.mrf.mxu0  ;;  %v837_v32 = vadd.f32 %v836_v25, %v667_v24 }
 0x157   :  { %v758_v28 = vpop.f32.mrf.mxu1 }
 0x158   :  { %v759_v29 = vadd.f32 %v758_v28, %v589_v27  ;;  %v915_v39 = vmax.f32 %v837_v32, 0.0 }
 0x15a   :  { %v884_v31 = vmax.f32 %v759_v29, 0.0 }
 0x15c   :  { %v1515_v33 = vpack.c.bf16 %v884_v31, %v883_v30  ;;  %v669_v34 = vpop.f32.mrf.mxu2 }
 0x15d   :  { %v838_v35 = vpop.f32.mrf.mxu3 }
 0x15e   :  { %1627 = vst [vmem:[%s2209_s2 + $0x58] sm:$0xff] %v1515_v33   ;;  %v839_v36 = vadd.f32 %v838_v35, %v669_v34  ;;  %v592_v37 = vpop.f32.mrf.mxu0 }
 0x15f   :  { %v761_v38 = vpop.f32.mrf.mxu1 }
 0x160   :  { %v916_v40 = vmax.f32 %v839_v36, 0.0  ;;  %v762_v44 = vadd.f32 %v761_v38, %v592_v37 }
 0x162   :  { %v1595_v41 = vpack.c.bf16 %v916_v40, %v915_v39  ;;  %v885_v48 = vmax.f32 %v762_v44, 0.0 }
 0x164   :  { %1643 = vst [vmem:[%s2209_s2 + $0xd8] sm:$0xff] %v1595_v41   ;;  %v672_v42 = vpop.f32.mrf.mxu2 }
 0x165   :  { %v841_v43 = vpop.f32.mrf.mxu3 }
 0x166   :  { %v594_v45 = vpop.f32.mrf.mxu0  ;;  %v842_v50 = vadd.f32 %v841_v43, %v672_v42 }
 0x167   :  { %v763_v46 = vpop.f32.mrf.mxu1 }
 0x168   :  { %v764_v47 = vadd.f32 %v763_v46, %v594_v45  ;;  %v917_v57 = vmax.f32 %v842_v50, 0.0 }
 0x16a   :  { %v886_v49 = vmax.f32 %v764_v47, 0.0 }
 0x16c   :  { %v1520_v51 = vpack.c.bf16 %v886_v49, %v885_v48  ;;  %v674_v52 = vpop.f32.mrf.mxu2 }
 0x16d   :  { %v843_v53 = vpop.f32.mrf.mxu3 }
 0x16e   :  { %1628 = vst [vmem:[%s2209_s2 + $0x60] sm:$0xff] %v1520_v51   ;;  %v844_v54 = vadd.f32 %v843_v53, %v674_v52  ;;  %v597_v55 = vpop.f32.mrf.mxu0 }
 0x16f   :  { %v766_v56 = vpop.f32.mrf.mxu1 }
 0x170   :  { %v918_v58 = vmax.f32 %v844_v54, 0.0  ;;  %v767_v62 = vadd.f32 %v766_v56, %v597_v55 }
 0x172   :  { %v1600_v59 = vpack.c.bf16 %v918_v58, %v917_v57  ;;  %v887_v2 = vmax.f32 %v767_v62, 0.0 }
 0x174   :  { %1644 = vst [vmem:[%s2209_s2 + $0xe0] sm:$0xff] %v1600_v59   ;;  %v677_v60 = vpop.f32.mrf.mxu2 }
 0x175   :  { %v846_v61 = vpop.f32.mrf.mxu3 }
 0x176   :  { %v599_v63 = vpop.f32.mrf.mxu0  ;;  %v847_v4 = vadd.f32 %v846_v61, %v677_v60 }
 0x177   :  { %v768_v0 = vpop.f32.mrf.mxu1 }
 0x178   :  { %v769_v1 = vadd.f32 %v768_v0, %v599_v63  ;;  %v919_v11 = vmax.f32 %v847_v4, 0.0 }
 0x17a   :  { %v888_v3 = vmax.f32 %v769_v1, 0.0 }
 0x17c   :  { %v1525_v5 = vpack.c.bf16 %v888_v3, %v887_v2  ;;  %v679_v6 = vpop.f32.mrf.mxu2 }
 0x17d   :  { %v848_v7 = vpop.f32.mrf.mxu3 }
 0x17e   :  { %1629 = vst [vmem:[%s2209_s2 + $0x68] sm:$0xff] %v1525_v5   ;;  %v849_v8 = vadd.f32 %v848_v7, %v679_v6  ;;  %v602_v9 = vpop.f32.mrf.mxu0 }
 0x17f   :  { %v771_v10 = vpop.f32.mrf.mxu1 }
 0x180   :  { %v920_v12 = vmax.f32 %v849_v8, 0.0  ;;  %v772_v16 = vadd.f32 %v771_v10, %v602_v9 }
 0x182   :  { %v1605_v13 = vpack.c.bf16 %v920_v12, %v919_v11  ;;  %v889_v20 = vmax.f32 %v772_v16, 0.0 }
 0x184   :  { %1645 = vst [vmem:[%s2209_s2 + $0xe8] sm:$0xff] %v1605_v13   ;;  %v682_v14 = vpop.f32.mrf.mxu2 }
 0x185   :  { %v851_v15 = vpop.f32.mrf.mxu3 }
 0x186   :  { %v604_v17 = vpop.f32.mrf.mxu0  ;;  %v852_v22 = vadd.f32 %v851_v15, %v682_v14 }
 0x187   :  { %v773_v18 = vpop.f32.mrf.mxu1 }
 0x188   :  { %v774_v19 = vadd.f32 %v773_v18, %v604_v17  ;;  %v921_v29 = vmax.f32 %v852_v22, 0.0 }
 0x18a   :  { %v890_v21 = vmax.f32 %v774_v19, 0.0 }
 0x18c   :  { %v1530_v23 = vpack.c.bf16 %v890_v21, %v889_v20  ;;  %v684_v24 = vpop.f32.mrf.mxu2 }
 0x18d   :  { %v853_v25 = vpop.f32.mrf.mxu3 }
 0x18e   :  { %1630 = vst [vmem:[%s2209_s2 + $0x70] sm:$0xff] %v1530_v23   ;;  %v854_v26 = vadd.f32 %v853_v25, %v684_v24  ;;  %v607_v27 = vpop.f32.mrf.mxu0 }
 0x18f   :  { %v776_v28 = vpop.f32.mrf.mxu1 }
 0x190   :  { %v922_v30 = vmax.f32 %v854_v26, 0.0  ;;  %v777_v34 = vadd.f32 %v776_v28, %v607_v27 }
 0x192   :  { %v1610_v31 = vpack.c.bf16 %v922_v30, %v921_v29  ;;  %v891_v38 = vmax.f32 %v777_v34, 0.0 }
 0x194   :  { %1646 = vst [vmem:[%s2209_s2 + $0xf0] sm:$0xff] %v1610_v31   ;;  %v687_v32 = vpop.f32.mrf.mxu2 }
 0x195   :  { %v856_v33 = vpop.f32.mrf.mxu3 }
 0x196   :  { %v609_v35 = vpop.f32.mrf.mxu0  ;;  %v857_v40 = vadd.f32 %v856_v33, %v687_v32 }
 0x197   :  { %v778_v36 = vpop.f32.mrf.mxu1 }
 0x198   :  { %v779_v37 = vadd.f32 %v778_v36, %v609_v35  ;;  %v923_v45 = vmax.f32 %v857_v40, 0.0 }
 0x19a   :  { %v892_v39 = vmax.f32 %v779_v37, 0.0 }
 0x19c   :  { %v1535_v41 = vpack.c.bf16 %v892_v39, %v891_v38  ;;  %v689_v42 = vpop.f32.mrf.mxu2 }
 0x19d   :  { %v858_v43 = vpop.f32.mrf.mxu3 }
 0x19e   :  { %1631 = vst [vmem:[%s2209_s2 + $0x78] sm:$0xff] %v1535_v41   ;;  %v859_v44 = vadd.f32 %v858_v43, %v689_v42 }
 0x1a0   :  { %v924_v46 = vmax.f32 %v859_v44, 0.0 }
 0x1a2   :  { %v1615_v47 = vpack.c.bf16 %v924_v46, %v923_v45 }
 0x1a4   :  { %1647 = vst [vmem:[%s2209_s2 + $0xf8] sm:$0xff] %v1615_v47  }

// kernel: resnet_forward.13
= control target key start
LH: loop header
LB: loop body
LE: loop exit
PB: predicated region body
PF: predicated region fallthrough
CT: control target
= control target key end

     0   :  { %s478_s1 = inlined_call_operand.vmem [shape: bf16[128,128], index: 1, kind: input, shape index: {}]   ;;  %s479_s0 = inlined_call_operand.vmem [shape: bf16[128,128], index: 0, kind: input, shape index: {}]   ;;  %s480_s2 = inlined_call_operand.vmem [shape: bf16[128,128], index: 2, kind: output, shape index: {}]  }
   0x1   :  { %v319_v0 = vld [vmem:[%s478_s1 + $0x38] sm:$0xff]  ;;  %v318_v1 = vld [vmem:[%s478_s1 + $0x30] sm:$0xff]  ;;  %v317_v2 = vld [vmem:[%s478_s1 + $0x28] sm:$0xff] }
   0x2   :  { %139 = vmatpush.bf16.msra.mxu0 %v319_v0  ;;  %367 = vmatpush.bf16.msra.mxu1 %v319_v0  ;;  %v316_v3 = vld [vmem:[%s478_s1 + $0x20] sm:$0xff]  ;;  %v315_v4 = vld [vmem:[%s478_s1 + $0x18] sm:$0xff]  ;;  %v314_v5 = vld [vmem:[%s478_s1 + $0x10] sm:$0xff] }
   0x3   :  { %368 = vmatpush.bf16.msra.mxu2 %v319_v0  ;;  %369 = vmatpush.bf16.msra.mxu3 %v319_v0  ;;  %v313_v6 = vld [vmem:[%s478_s1 + $0x8] sm:$0xff]  ;;  %v312_v7 = vld [vmem:[%s478_s1] sm:$0xff]  ;;  %v306_v9 = vld [vmem:[%s479_s0 + $0x10] sm:$0xff] }
   0x4   :  { %v304_v8 = vld [vmem:[%s479_s0] sm:$0xff]  ;;  %v310_v11 = vld [vmem:[%s479_s0 + $0x30] sm:$0xff]  ;;  %v305_v12 = vld [vmem:[%s479_s0 + $0x8] sm:$0xff] }
   0x5   :  { %v308_v10 = vld [vmem:[%s479_s0 + $0x20] sm:$0xff]  ;;  %v307_v13 = vld [vmem:[%s479_s0 + $0x18] sm:$0xff]  ;;  %v309_v14 = vld [vmem:[%s479_s0 + $0x28] sm:$0xff] }
   0x6   :  { %140 = vmatpush.bf16.msra.mxu0 %v318_v1  ;;  %370 = vmatpush.bf16.msra.mxu1 %v318_v1  ;;  %v311_v15 = vld [vmem:[%s479_s0 + $0x38] sm:$0xff] }
   0x7   :  { %371 = vmatpush.bf16.msra.mxu2 %v318_v1  ;;  %372 = vmatpush.bf16.msra.mxu3 %v318_v1 }
   0xa   :  { %141 = vmatpush.bf16.msra.mxu0 %v317_v2  ;;  %373 = vmatpush.bf16.msra.mxu1 %v317_v2 }
   0xb   :  { %374 = vmatpush.bf16.msra.mxu2 %v317_v2  ;;  %375 = vmatpush.bf16.msra.mxu3 %v317_v2 }
   0xe   :  { %142 = vmatpush.bf16.msra.mxu0 %v316_v3  ;;  %376 = vmatpush.bf16.msra.mxu1 %v316_v3 }
   0xf   :  { %377 = vmatpush.bf16.msra.mxu2 %v316_v3  ;;  %378 = vmatpush.bf16.msra.mxu3 %v316_v3 }
  0x12   :  { %143 = vmatpush.bf16.msra.mxu0 %v315_v4  ;;  %379 = vmatpush.bf16.msra.mxu1 %v315_v4 }
  0x13   :  { %380 = vmatpush.bf16.msra.mxu2 %v315_v4  ;;  %381 = vmatpush.bf16.msra.mxu3 %v315_v4 }
  0x16   :  { %144 = vmatpush.bf16.msra.mxu0 %v314_v5  ;;  %382 = vmatpush.bf16.msra.mxu1 %v314_v5 }
  0x17   :  { %383 = vmatpush.bf16.msra.mxu2 %v314_v5  ;;  %384 = vmatpush.bf16.msra.mxu3 %v314_v5 }
  0x1a   :  { %145 = vmatpush.bf16.msra.mxu0 %v313_v6  ;;  %385 = vmatpush.bf16.msra.mxu1 %v313_v6 }
  0x1b   :  { %386 = vmatpush.bf16.msra.mxu2 %v313_v6  ;;  %387 = vmatpush.bf16.msra.mxu3 %v313_v6 }
  0x1e   :  { %146 = vmatpush.bf16.msra.mxu0 %v312_v7  ;;  %388 = vmatpush.bf16.msra.mxu1 %v312_v7 }
  0x1f   :  { %389 = vmatpush.bf16.msra.mxu2 %v312_v7  ;;  %390 = vmatpush.bf16.msra.mxu3 %v312_v7 }
  0x21   :  { %147 = vmatmul.bf16.vlgmr.msra.gmra.mxu0 %v304_v8  ;;  %157 = vmatmul.bf16.vlgmr.msra.gmra.mxu1 %v306_v9 }
  0x22   :  { %167 = vmatmul.bf16.vlgmr.msra.gmra.mxu2 %v308_v10  ;;  %177 = vmatmul.bf16.vlgmr.msra.gmra.mxu3 %v310_v11 }
  0x31   :  { %152 = vmatmul.bf16.gmra.mxu0 %v305_v12  ;;  %162 = vmatmul.bf16.gmra.mxu1 %v307_v13 }
  0x32   :  { %172 = vmatmul.bf16.gmra.mxu2 %v309_v14  ;;  %182 = vmatmul.bf16.gmra.mxu3 %v311_v15 }
  0x9e   :  { %v148_v16 = vpop.f32.mrf.mxu0  ;;  %v158_v17 = vpop.f32.mrf.mxu1 }
  0x9f   :  { %v188_v22 = vmax.f32 %v148_v16, 0.0  ;;  %v192_v23 = vmax.f32 %v158_v17, 0.0 }
  0xa5   :  { %v168_v18 = vpop.f32.mrf.mxu2  ;;  %v178_v19 = vpop.f32.mrf.mxu3 }
  0xa6   :  { %v150_v20 = vpop.f32.mrf.mxu0  ;;  %v160_v21 = vpop.f32.mrf.mxu1  ;;  %v196_v30 = vmax.f32 %v168_v18, 0.0  ;;  %v200_v31 = vmax.f32 %v178_v19, 0.0 }
  0xa7   :  { %v189_v24 = vmax.f32 %v150_v20, 0.0  ;;  %v193_v25 = vmax.f32 %v160_v21, 0.0 }
  0xa9   :  { %v323_v26 = vpack.c.bf16 %v189_v24, %v188_v22  ;;  %v333_v27 = vpack.c.bf16 %v193_v25, %v192_v23 }
  0xab   :  { %324 = vst [vmem:[%s480_s2] sm:$0xff] %v323_v26  }
  0xac   :  { %361 = vst [vmem:[%s480_s2 + $0x10] sm:$0xff] %v333_v27  }
  0xad   :  { %v170_v28 = vpop.f32.mrf.mxu2  ;;  %v180_v29 = vpop.f32.mrf.mxu3 }
  0xae   :  { %v197_v32 = vmax.f32 %v170_v28, 0.0  ;;  %v201_v33 = vmax.f32 %v180_v29, 0.0  ;;  %v153_v34 = vpop.f32.mrf.mxu0  ;;  %v163_v35 = vpop.f32.mrf.mxu1 }
  0xaf   :  { %v190_v42 = vmax.f32 %v153_v34, 0.0  ;;  %v194_v43 = vmax.f32 %v163_v35, 0.0 }
  0xb0   :  { %v343_v36 = vpack.c.bf16 %v197_v32, %v196_v30  ;;  %v353_v37 = vpack.c.bf16 %v201_v33, %v200_v31 }
  0xb2   :  { %363 = vst [vmem:[%s480_s2 + $0x20] sm:$0xff] %v343_v36  }
  0xb3   :  { %365 = vst [vmem:[%s480_s2 + $0x30] sm:$0xff] %v353_v37  }
  0xb5   :  { %v173_v38 = vpop.f32.mrf.mxu2  ;;  %v183_v39 = vpop.f32.mrf.mxu3 }
  0xb6   :  { %v155_v40 = vpop.f32.mrf.mxu0  ;;  %v165_v41 = vpop.f32.mrf.mxu1  ;;  %v198_v50 = vmax.f32 %v173_v38, 0.0  ;;  %v202_v51 = vmax.f32 %v183_v39, 0.0 }
  0xb7   :  { %v191_v44 = vmax.f32 %v155_v40, 0.0  ;;  %v195_v45 = vmax.f32 %v165_v41, 0.0 }
  0xb9   :  { %v328_v46 = vpack.c.bf16 %v191_v44, %v190_v42  ;;  %v338_v47 = vpack.c.bf16 %v195_v45, %v194_v43 }
  0xbb   :  { %360 = vst [vmem:[%s480_s2 + $0x8] sm:$0xff] %v328_v46  }
  0xbc   :  { %362 = vst [vmem:[%s480_s2 + $0x18] sm:$0xff] %v338_v47  }
  0xbd   :  { %v175_v48 = vpop.f32.mrf.mxu2  ;;  %v185_v49 = vpop.f32.mrf.mxu3 }
  0xbe   :  { %v199_v52 = vmax.f32 %v175_v48, 0.0  ;;  %v203_v53 = vmax.f32 %v185_v49, 0.0 }
  0xc0   :  { %v348_v54 = vpack.c.bf16 %v199_v52, %v198_v50  ;;  %v358_v55 = vpack.c.bf16 %v203_v53, %v202_v51 }
  0xc2   :  { %364 = vst [vmem:[%s480_s2 + $0x28] sm:$0xff] %v348_v54  }
  0xc3   :  { %366 = vst [vmem:[%s480_s2 + $0x38] sm:$0xff] %v358_v55  }

// kernel: resnet_forward.14
= control target key start
LH: loop header
LB: loop body
LE: loop exit
PB: predicated region body
PF: predicated region fallthrough
CT: control target
= control target key end

     0   :  { %s1790_s1 = inlined_call_operand.vmem [shape: bf16[640,128], index: 1, kind: input, shape index: {}]   ;;  %s1791_s0 = inlined_call_operand.vmem [shape: bf16[128,640], index: 0, kind: input, shape index: {}]   ;;  %s1792_s2 = inlined_call_operand.vmem [shape: bf16[128,128], index: 2, kind: output, shape index: {}]  }
   0x1   :  { %v1251_v0 = vld [vmem:[%s1790_s1 + $0x38] sm:$0xff]  ;;  %v1250_v1 = vld [vmem:[%s1790_s1 + $0x30] sm:$0xff]  ;;  %v1249_v2 = vld [vmem:[%s1790_s1 + $0x28] sm:$0xff] }
   0x2   :  { %1331 = vmatpush.bf16.msra.mxu1 %v1251_v0  ;;  %1332 = vmatpush.bf16.msra.mxu2 %v1251_v0  ;;  %v1248_v3 = vld [vmem:[%s1790_s1 + $0x20] sm:$0xff]  ;;  %v1247_v4 = vld [vmem:[%s1790_s1 + $0x18] sm:$0xff]  ;;  %v1246_v5 = vld [vmem:[%s1790_s1 + $0x10] sm:$0xff] }
   0x3   :  { %1333 = vmatpush.bf16.msra.mxu3 %v1251_v0  ;;  %587 = vmatpush.bf16.msra.mxu0 %v1251_v0  ;;  %v1245_v6 = vld [vmem:[%s1790_s1 + $0x8] sm:$0xff]  ;;  %v1244_v7 = vld [vmem:[%s1790_s1] sm:$0xff]  ;;  %v926_v8 = vld [vmem:[%s1791_s0 + $0x50] sm:$0xf] }
   0x4   :  { %v1216_v9 = vld [vmem:[%s1791_s0 + $0x60] sm:$0xf0]  ;;  %v966_v10 = vld [vmem:[%s1791_s0 + $0xa0] sm:$0xf]  ;;  %v1226_v11 = vld [vmem:[%s1791_s0 + $0xb0] sm:$0xf0] }
   0x5   :  { %v1006_v12 = vld [vmem:[%s1791_s0 + $0xf0] sm:$0xf]  ;;  %v1236_v13 = vld [vmem:[%s1791_s0 + $0x100] sm:$0xf0]  ;;  %v886_v14 = vld [vmem:[%s1791_s0] sm:$0xf]  ;;  %v927_v18 = vor.u32 %v1216_v9, %v926_v8  ;;  %v967_v19 = vor.u32 %v1226_v11, %v966_v10 }
   0x6   :  { %1334 = vmatpush.bf16.msra.mxu1 %v1250_v1  ;;  %1335 = vmatpush.bf16.msra.mxu2 %v1250_v1  ;;  %v1206_v15 = vld [vmem:[%s1791_s0 + $0x10] sm:$0xf0]  ;;  %v1267_v16 = vld [vmem:[%s1790_s1 + $0xb8] sm:$0xff]  ;;  %v1007_v20 = vor.u32 %v1236_v13, %v1006_v12  ;;  %v1265_v28 = vld [vmem:[%s1790_s1 + $0xa8] sm:$0xff] }
   0x7   :  { %1336 = vmatpush.bf16.msra.mxu3 %v1250_v1  ;;  %588 = vmatpush.bf16.msra.mxu0 %v1250_v1  ;;  %v1259_v17 = vld [vmem:[%s1790_s1 + $0x78] sm:$0xff]  ;;  %v887_v21 = vor.u32 %v1206_v15, %v886_v14  ;;  %v1266_v24 = vld [vmem:[%s1790_s1 + $0xb0] sm:$0xff]  ;;  %v1257_v29 = vld [vmem:[%s1790_s1 + $0x68] sm:$0xff] }
   0x8   :  { %v1275_v22 = vld [vmem:[%s1790_s1 + $0xf8] sm:$0xff]  ;;  %v1258_v25 = vld [vmem:[%s1790_s1 + $0x70] sm:$0xff]  ;;  %v1273_v30 = vld [vmem:[%s1790_s1 + $0xe8] sm:$0xff] }
   0x9   :  { %v1283_v23 = vld [vmem:[%s1790_s1 + $0x138] sm:$0xff]  ;;  %v1274_v26 = vld [vmem:[%s1790_s1 + $0xf0] sm:$0xff]  ;;  %v1281_v31 = vld [vmem:[%s1790_s1 + $0x128] sm:$0xff] }
   0xa   :  { %1337 = vmatpush.bf16.msra.mxu1 %v1249_v2  ;;  %1338 = vmatpush.bf16.msra.mxu2 %v1249_v2  ;;  %v1282_v27 = vld [vmem:[%s1790_s1 + $0x130] sm:$0xff]  ;;  %v1264_v32 = vld [vmem:[%s1790_s1 + $0xa0] sm:$0xff]  ;;  %v946_v36 = vld [vmem:[%s1791_s0 + $0x78] sm:$0xf] }
   0xb   :  { %1339 = vmatpush.bf16.msra.mxu3 %v1249_v2  ;;  %589 = vmatpush.bf16.msra.mxu0 %v1249_v2  ;;  %v1256_v33 = vld [vmem:[%s1790_s1 + $0x60] sm:$0xff]  ;;  %v1221_v37 = vld [vmem:[%s1791_s0 + $0x88] sm:$0xf0]  ;;  %v986_v38 = vld [vmem:[%s1791_s0 + $0xc8] sm:$0xf] }
   0xc   :  { %v1272_v34 = vld [vmem:[%s1790_s1 + $0xe0] sm:$0xff]  ;;  %v1231_v39 = vld [vmem:[%s1791_s0 + $0xd8] sm:$0xf0]  ;;  %v1026_v40 = vld [vmem:[%s1791_s0 + $0x118] sm:$0xf]  ;;  %v947_v46 = vor.u32 %v1221_v37, %v946_v36 }
   0xd   :  { %v1280_v35 = vld [vmem:[%s1790_s1 + $0x120] sm:$0xff]  ;;  %v1241_v41 = vld [vmem:[%s1791_s0 + $0x128] sm:$0xf0]  ;;  %v906_v42 = vld [vmem:[%s1791_s0 + $0x28] sm:$0xf]  ;;  %v987_v47 = vor.u32 %v1231_v39, %v986_v38 }
   0xe   :  { %1340 = vmatpush.bf16.msra.mxu1 %v1248_v3  ;;  %1341 = vmatpush.bf16.msra.mxu2 %v1248_v3  ;;  %v1211_v43 = vld [vmem:[%s1791_s0 + $0x38] sm:$0xf0]  ;;  %v1027_v48 = vor.u32 %v1241_v41, %v1026_v40  ;;  %v1262_v52 = vld [vmem:[%s1790_s1 + $0x90] sm:$0xff]  ;;  %v1261_v56 = vld [vmem:[%s1790_s1 + $0x88] sm:$0xff] }
   0xf   :  { %1342 = vmatpush.bf16.msra.mxu3 %v1248_v3  ;;  %590 = vmatpush.bf16.msra.mxu0 %v1248_v3  ;;  %v1263_v44 = vld [vmem:[%s1790_s1 + $0x98] sm:$0xff]  ;;  %v907_v49 = vor.u32 %v1211_v43, %v906_v42  ;;  %v1254_v53 = vld [vmem:[%s1790_s1 + $0x50] sm:$0xff]  ;;  %v1253_v57 = vld [vmem:[%s1790_s1 + $0x48] sm:$0xff] }
  0x10   :  { %v1255_v45 = vld [vmem:[%s1790_s1 + $0x58] sm:$0xff]  ;;  %v1270_v54 = vld [vmem:[%s1790_s1 + $0xd0] sm:$0xff]  ;;  %v1269_v58 = vld [vmem:[%s1790_s1 + $0xc8] sm:$0xff] }
  0x11   :  { %v1271_v50 = vld [vmem:[%s1790_s1 + $0xd8] sm:$0xff]  ;;  %v1278_v55 = vld [vmem:[%s1790_s1 + $0x110] sm:$0xff]  ;;  %v1277_v59 = vld [vmem:[%s1790_s1 + $0x108] sm:$0xff] }
  0x12   :  { %1343 = vmatpush.bf16.msra.mxu1 %v1247_v4  ;;  %1344 = vmatpush.bf16.msra.mxu2 %v1247_v4  ;;  %v1279_v51 = vld [vmem:[%s1790_s1 + $0x118] sm:$0xff]  ;;  %v1260_v60 = vld [vmem:[%s1790_s1 + $0x80] sm:$0xff]  ;;  %v894_v2 = vld [vmem:[%s1791_s0 + $0x8] sm:$0xf] }
  0x13   :  { %1345 = vmatpush.bf16.msra.mxu3 %v1247_v4  ;;  %591 = vmatpush.bf16.msra.mxu0 %v1247_v4  ;;  %v1252_v61 = vld [vmem:[%s1790_s1 + $0x40] sm:$0xff]  ;;  %v888_v1 = vld [vmem:[%s1791_s0 + $0x14] sm:$0xf0]  ;;  %v1207_v3 = vld [vmem:[%s1791_s0 + $0x18] sm:$0xf0] }
  0x14   :  { %v1268_v62 = vld [vmem:[%s1790_s1 + $0xc0] sm:$0xff]  ;;  %v1205_v4 = vld [vmem:[%s1791_s0 + $0xc] sm:$0xf]  ;;  %v895_v9 = vor.u32 %v1207_v3, %v894_v2  ;;  %v914_v14 = vld [vmem:[%s1791_s0 + $0x30] sm:$0xf] }
  0x15   :  { %v1276_v63 = vld [vmem:[%s1790_s1 + $0x100] sm:$0xff]  ;;  %v1209_v12 = vld [vmem:[%s1791_s0 + $0x2c] sm:$0xf]  ;;  %v1219_v36 = vld [vmem:[%s1791_s0 + $0x7c] sm:$0xf] }
  0x16   :  { %1346 = vmatpush.bf16.msra.mxu1 %v1246_v5  ;;  %1347 = vmatpush.bf16.msra.mxu2 %v1246_v5  ;;  %v1204_v0 = vld [vmem:[%s1791_s0 + $0x4] sm:$0xf]  ;;  %v908_v13 = vld [vmem:[%s1791_s0 + $0x3c] sm:$0xf0]  ;;  %v948_v37 = vld [vmem:[%s1791_s0 + $0x8c] sm:$0xf0] }
  0x17   :  { %1348 = vmatpush.bf16.msra.mxu3 %v1246_v5  ;;  %592 = vmatpush.bf16.msra.mxu0 %v1246_v5  ;;  %v896_v5 = vld [vmem:[%s1791_s0 + $0x1c] sm:$0xf0]  ;;  %v891_v8 = vor.u32 %v1204_v0, %v888_v1  ;;  %v1212_v15 = vld [vmem:[%s1791_s0 + $0x40] sm:$0xf0]  ;;  %v1222_v39 = vld [vmem:[%s1791_s0 + $0x90] sm:$0xf0] }
  0x18   :  { %v899_v10 = vor.u32 %v1205_v4, %v896_v5  ;;  %v954_v38 = vld [vmem:[%s1791_s0 + $0x80] sm:$0xf]  ;;  %v1220_v40 = vld [vmem:[%s1791_s0 + $0x84] sm:$0xf]  ;;  %v956_v41 = vld [vmem:[%s1791_s0 + $0x94] sm:$0xf0] }
  0x19   :  { %v962_v42 = vld [vmem:[%s1791_s0 + $0x88] sm:$0xf]  ;;  %v1223_v43 = vld [vmem:[%s1791_s0 + $0x98] sm:$0xf0]  ;;  %v1230_v0 = vld [vmem:[%s1791_s0 + $0xd4] sm:$0xf] }
  0x1a   :  { %1349 = vmatpush.bf16.msra.mxu1 %v1245_v6  ;;  %1350 = vmatpush.bf16.msra.mxu2 %v1245_v6  ;;  %v996_v1 = vld [vmem:[%s1791_s0 + $0xe4] sm:$0xf0]  ;;  %v1002_v2 = vld [vmem:[%s1791_s0 + $0xd8] sm:$0xf]  ;;  %v1233_v3 = vld [vmem:[%s1791_s0 + $0xe8] sm:$0xf0] }
  0x1b   :  { %1351 = vmatpush.bf16.msra.mxu3 %v1245_v6  ;;  %593 = vmatpush.bf16.msra.mxu0 %v1245_v6  ;;  %v902_v6 = vld [vmem:[%s1791_s0 + $0x10] sm:$0xf] }
  0x1e   :  { %1352 = vmatpush.bf16.msra.mxu1 %v1244_v7  ;;  %1353 = vmatpush.bf16.msra.mxu2 %v1244_v7 }
  0x1f   :  { %1354 = vmatpush.bf16.msra.mxu3 %v1244_v7  ;;  %594 = vmatpush.bf16.msra.mxu0 %v1244_v7  ;;  %v1208_v7 = vld [vmem:[%s1791_s0 + $0x20] sm:$0xf0] }
  0x20   :  { %v903_v11 = vor.u32 %v1208_v7, %v902_v6  ;;  %v999_v6 = vor.u32 %v1230_v0, %v996_v1  ;;  %v1003_v7 = vor.u32 %v1233_v3, %v1002_v2 }
  0x21   :  { %605 = vmatmul.bf16.vlgmr.msra.gmra.mxu1 %v927_v18  ;;  %615 = vmatmul.bf16.vlgmr.msra.gmra.mxu2 %v967_v19  ;;  %v922_v18 = vld [vmem:[%s1791_s0 + $0x38] sm:$0xf]  ;;  %v1213_v19 = vld [vmem:[%s1791_s0 + $0x48] sm:$0xf0] }
  0x22   :  { %685 = vmatpush.bf16.msrb.mxu2 %v1267_v16  ;;  %636 = vmatpush.bf16.msrb.mxu1 %v1259_v17  ;;  %v1210_v16 = vld [vmem:[%s1791_s0 + $0x34] sm:$0xf]  ;;  %v916_v17 = vld [vmem:[%s1791_s0 + $0x44] sm:$0xf0] }
  0x23   :  { %625 = vmatmul.bf16.vlgmr.msra.gmra.mxu3 %v1007_v20  ;;  %595 = vmatmul.bf16.vlgmr.msra.gmra.mxu0 %v887_v21  ;;  %v911_v20 = vor.u32 %v1209_v12, %v908_v13  ;;  %v915_v21 = vor.u32 %v1212_v15, %v914_v14  ;;  %v1235_v12 = vld [vmem:[%s1791_s0 + $0xfc] sm:$0xf]  ;;  %v1016_v13 = vld [vmem:[%s1791_s0 + $0x10c] sm:$0xf0]  ;;  %v1022_v14 = vld [vmem:[%s1791_s0 + $0x100] sm:$0xf] }
  0x24   :  { %734 = vmatpush.bf16.msrb.mxu3 %v1275_v22  ;;  %783 = vmatpush.bf16.msrb.mxu0 %v1283_v23  ;;  %v919_v22 = vor.u32 %v1210_v16, %v916_v17  ;;  %v923_v23 = vor.u32 %v1213_v19, %v922_v18  ;;  %v1238_v15 = vld [vmem:[%s1791_s0 + $0x110] sm:$0xf0]  ;;  %v1019_v19 = vor.u32 %v1235_v12, %v1016_v13 }
  0x26   :  { %686 = vmatpush.bf16.msrb.mxu2 %v1266_v24  ;;  %637 = vmatpush.bf16.msrb.mxu1 %v1258_v25  ;;  %v1214_v24 = vld [vmem:[%s1791_s0 + $0x54] sm:$0xf]  ;;  %v928_v25 = vld [vmem:[%s1791_s0 + $0x64] sm:$0xf0] }
  0x28   :  { %735 = vmatpush.bf16.msrb.mxu3 %v1274_v26  ;;  %784 = vmatpush.bf16.msrb.mxu0 %v1282_v27  ;;  %v934_v26 = vld [vmem:[%s1791_s0 + $0x58] sm:$0xf]  ;;  %v1217_v27 = vld [vmem:[%s1791_s0 + $0x68] sm:$0xf0] }
  0x2a   :  { %687 = vmatpush.bf16.msrb.mxu2 %v1265_v28  ;;  %638 = vmatpush.bf16.msrb.mxu1 %v1257_v29  ;;  %v1215_v28 = vld [vmem:[%s1791_s0 + $0x5c] sm:$0xf]  ;;  %v936_v29 = vld [vmem:[%s1791_s0 + $0x6c] sm:$0xf0] }
  0x2c   :  { %736 = vmatpush.bf16.msrb.mxu3 %v1273_v30  ;;  %785 = vmatpush.bf16.msrb.mxu0 %v1281_v31  ;;  %v942_v30 = vld [vmem:[%s1791_s0 + $0x60] sm:$0xf]  ;;  %v1218_v31 = vld [vmem:[%s1791_s0 + $0x70] sm:$0xf0] }
  0x2e   :  { %688 = vmatpush.bf16.msrb.mxu2 %v1264_v32  ;;  %639 = vmatpush.bf16.msrb.mxu1 %v1256_v33  ;;  %v931_v32 = vor.u32 %v1214_v24, %v928_v25  ;;  %v935_v33 = vor.u32 %v1217_v27, %v934_v26  ;;  %v1239_v26 = vld [vmem:[%s1791_s0 + $0x11c] sm:$0xf]  ;;  %v1028_v27 = vld [vmem:[%s1791_s0 + $0x12c] sm:$0xf0] }
  0x30   :  { %737 = vmatpush.bf16.msrb.mxu3 %v1272_v34  ;;  %786 = vmatpush.bf16.msrb.mxu0 %v1280_v35  ;;  %v939_v34 = vor.u32 %v1215_v28, %v936_v29  ;;  %v943_v35 = vor.u32 %v1218_v31, %v942_v30  ;;  %v1034_v28 = vld [vmem:[%s1791_s0 + $0x120] sm:$0xf]  ;;  %v1242_v29 = vld [vmem:[%s1791_s0 + $0x130] sm:$0xf0]  ;;  %v1240_v30 = vld [vmem:[%s1791_s0 + $0x124] sm:$0xf] }
  0x31   :  { %610 = vmatmul.bf16.gmra.mxu1 %v947_v46  ;;  %620 = vmatmul.bf16.gmra.mxu2 %v987_v47  ;;  %v959_v46 = vor.u32 %v1220_v40, %v956_v41  ;;  %v963_v47 = vor.u32 %v1223_v43, %v962_v42  ;;  %v1036_v31 = vld [vmem:[%s1791_s0 + $0x134] sm:$0xf0] }
  0x32   :  { %689 = vmatpush.bf16.msrb.mxu2 %v1263_v44  ;;  %640 = vmatpush.bf16.msrb.mxu1 %v1255_v45  ;;  %v951_v44 = vor.u32 %v1219_v36, %v948_v37  ;;  %v955_v45 = vor.u32 %v1222_v39, %v954_v38  ;;  %v1031_v36 = vor.u32 %v1239_v26, %v1028_v27 }
  0x33   :  { %630 = vmatmul.bf16.gmra.mxu3 %v1027_v48  ;;  %600 = vmatmul.bf16.gmra.mxu0 %v907_v49  ;;  %v1224_v48 = vld [vmem:[%s1791_s0 + $0xa4] sm:$0xf]  ;;  %v968_v49 = vld [vmem:[%s1791_s0 + $0xb4] sm:$0xf0]  ;;  %v1035_v37 = vor.u32 %v1242_v29, %v1034_v28  ;;  %v1039_v39 = vor.u32 %v1240_v30, %v1036_v31 }
  0x34   :  { %738 = vmatpush.bf16.msrb.mxu3 %v1271_v50  ;;  %787 = vmatpush.bf16.msrb.mxu0 %v1279_v51  ;;  %v974_v50 = vld [vmem:[%s1791_s0 + $0xa8] sm:$0xf]  ;;  %v1227_v51 = vld [vmem:[%s1791_s0 + $0xb8] sm:$0xf0] }
  0x36   :  { %690 = vmatpush.bf16.msrb.mxu2 %v1262_v52  ;;  %641 = vmatpush.bf16.msrb.mxu1 %v1254_v53  ;;  %v1225_v52 = vld [vmem:[%s1791_s0 + $0xac] sm:$0xf]  ;;  %v976_v53 = vld [vmem:[%s1791_s0 + $0xbc] sm:$0xf0] }
  0x38   :  { %739 = vmatpush.bf16.msrb.mxu3 %v1270_v54  ;;  %788 = vmatpush.bf16.msrb.mxu0 %v1278_v55  ;;  %v982_v54 = vld [vmem:[%s1791_s0 + $0xb0] sm:$0xf]  ;;  %v1228_v55 = vld [vmem:[%s1791_s0 + $0xc0] sm:$0xf0] }
  0x3a   :  { %691 = vmatpush.bf16.msrb.mxu2 %v1261_v56  ;;  %642 = vmatpush.bf16.msrb.mxu1 %v1253_v57  ;;  %v971_v56 = vor.u32 %v1224_v48, %v968_v49  ;;  %v975_v57 = vor.u32 %v1227_v51, %v974_v50 }
  0x3c   :  { %740 = vmatpush.bf16.msrb.mxu3 %v1269_v58  ;;  %789 = vmatpush.bf16.msrb.mxu0 %v1277_v59  ;;  %v979_v58 = vor.u32 %v1225_v52, %v976_v53  ;;  %v983_v59 = vor.u32 %v1228_v55, %v982_v54 }
  0x3e   :  { %692 = vmatpush.bf16.msrb.mxu2 %v1260_v60  ;;  %643 = vmatpush.bf16.msrb.mxu1 %v1252_v61  ;;  %v1229_v60 = vld [vmem:[%s1791_s0 + $0xcc] sm:$0xf]  ;;  %v988_v61 = vld [vmem:[%s1791_s0 + $0xdc] sm:$0xf0] }
  0x3f   :  { %v991_v4 = vor.u32 %v1229_v60, %v988_v61 }
  0x40   :  { %741 = vmatpush.bf16.msrb.mxu3 %v1268_v62  ;;  %790 = vmatpush.bf16.msrb.mxu0 %v1276_v63  ;;  %v994_v62 = vld [vmem:[%s1791_s0 + $0xd0] sm:$0xf]  ;;  %v1232_v63 = vld [vmem:[%s1791_s0 + $0xe0] sm:$0xf0] }
  0x41   :  { %644 = vmatmul.bf16.vlgmr.msrb.gmra.mxu1 %v891_v8  ;;  %693 = vmatmul.bf16.vlgmr.msrb.gmra.mxu2 %v895_v9  ;;  %v995_v5 = vor.u32 %v1232_v63, %v994_v62  ;;  %v1234_v8 = vld [vmem:[%s1791_s0 + $0xf4] sm:$0xf]  ;;  %v1008_v9 = vld [vmem:[%s1791_s0 + $0x104] sm:$0xf0] }
  0x42   :  { %v1011_v16 = vor.u32 %v1234_v8, %v1008_v9 }
  0x43   :  { %742 = vmatmul.bf16.vlgmr.msrb.gmra.mxu3 %v899_v10  ;;  %791 = vmatmul.bf16.vlgmr.msrb.gmra.mxu0 %v903_v11  ;;  %v1014_v10 = vld [vmem:[%s1791_s0 + $0xf8] sm:$0xf]  ;;  %v1237_v11 = vld [vmem:[%s1791_s0 + $0x108] sm:$0xf0] }
  0x44   :  { %v1015_v17 = vor.u32 %v1237_v11, %v1014_v10 }
  0x51   :  { %649 = vmatmul.bf16.gmra.mxu1 %v911_v20  ;;  %698 = vmatmul.bf16.gmra.mxu2 %v915_v21  ;;  %v1023_v20 = vor.u32 %v1238_v15, %v1022_v14 }
  0x53   :  { %747 = vmatmul.bf16.gmra.mxu3 %v919_v22  ;;  %796 = vmatmul.bf16.gmra.mxu0 %v923_v23 }
  0x61   :  { %654 = vmatmul.bf16.gmra.mxu1 %v931_v32  ;;  %703 = vmatmul.bf16.gmra.mxu2 %v935_v33  ;;  %v1042_v32 = vld [vmem:[%s1791_s0 + $0x128] sm:$0xf]  ;;  %v1243_v33 = vld [vmem:[%s1791_s0 + $0x138] sm:$0xf0] }
  0x62   :  { %v1043_v40 = vor.u32 %v1243_v33, %v1042_v32 }
  0x63   :  { %752 = vmatmul.bf16.gmra.mxu3 %v939_v34  ;;  %801 = vmatmul.bf16.gmra.mxu0 %v943_v35 }
  0x71   :  { %659 = vmatmul.bf16.gmra.mxu1 %v951_v44  ;;  %708 = vmatmul.bf16.gmra.mxu2 %v955_v45 }
  0x73   :  { %757 = vmatmul.bf16.gmra.mxu3 %v959_v46  ;;  %806 = vmatmul.bf16.gmra.mxu0 %v963_v47 }
  0x81   :  { %664 = vmatmul.bf16.gmra.mxu1 %v971_v56  ;;  %713 = vmatmul.bf16.gmra.mxu2 %v975_v57 }
  0x83   :  { %762 = vmatmul.bf16.gmra.mxu3 %v979_v58  ;;  %811 = vmatmul.bf16.gmra.mxu0 %v983_v59 }
  0x91   :  { %669 = vmatmul.bf16.gmra.mxu1 %v991_v4  ;;  %718 = vmatmul.bf16.gmra.mxu2 %v995_v5 }
  0x93   :  { %767 = vmatmul.bf16.gmra.mxu3 %v999_v6  ;;  %816 = vmatmul.bf16.gmra.mxu0 %v1003_v7 }
  0x9e   :  { %v1706_v18 = vpop.f32.mrf.mxu1 }
  0xa0   :  { %v596_v21 = vpop.f32.mrf.mxu0 }
  0xa1   :  { %674 = vmatmul.bf16.gmra.mxu1 %v1011_v16  ;;  %723 = vmatmul.bf16.gmra.mxu2 %v1015_v17 }
  0xa3   :  { %772 = vmatmul.bf16.gmra.mxu3 %v1019_v19  ;;  %821 = vmatmul.bf16.gmra.mxu0 %v1023_v20 }
  0xa4   :  { %v1708_v22 = vpop.f32.mrf.mxu2 }
  0xa6   :  { %v1710_v23 = vpop.f32.mrf.mxu3  ;;  %v1712_v24 = vpop.f32.mrf.mxu1 }
  0xa8   :  { %v598_v25 = vpop.f32.mrf.mxu0 }
  0xac   :  { %v1738_v34 = vpop.f32.mrf.mxu2 }
  0xae   :  { %v1740_v35 = vpop.f32.mrf.mxu3  ;;  %v1742_v38 = vpop.f32.mrf.mxu1 }
  0xb0   :  { %v601_v41 = vpop.f32.mrf.mxu0 }
  0xb1   :  { %679 = vmatmul.bf16.gmra.mxu1 %v1031_v36  ;;  %728 = vmatmul.bf16.gmra.mxu2 %v1035_v37 }
  0xb3   :  { %777 = vmatmul.bf16.gmra.mxu3 %v1039_v39  ;;  %826 = vmatmul.bf16.gmra.mxu0 %v1043_v40 }
  0xb4   :  { %v1744_v42 = vpop.f32.mrf.mxu2 }
  0xb6   :  { %v1746_v43 = vpop.f32.mrf.mxu3  ;;  %v1748_v44 = vpop.f32.mrf.mxu1 }
  0xb8   :  { %v603_v45 = vpop.f32.mrf.mxu0 }
  0xbc   :  { %v1750_v46 = vpop.f32.mrf.mxu2 }
  0xbe   :  { %v1752_v47 = vpop.f32.mrf.mxu3  ;;  %v645_v48 = vpop.f32.mrf.mxu1 }
  0xbf   :  { %v646_v51 = vadd.f32 %v645_v48, %v596_v21 }
  0xc0   :  { %v792_v49 = vpop.f32.mrf.mxu0 }
  0xc4   :  { %v694_v50 = vpop.f32.mrf.mxu2 }
  0xc5   :  { %v695_v54 = vadd.f32 %v694_v50, %v646_v51 }
  0xc6   :  { %v743_v52 = vpop.f32.mrf.mxu3  ;;  %v647_v53 = vpop.f32.mrf.mxu1 }
  0xc7   :  { %v744_v56 = vadd.f32 %v743_v52, %v695_v54  ;;  %v648_v57 = vadd.f32 %v647_v53, %v598_v25 }
  0xc8   :  { %v794_v55 = vpop.f32.mrf.mxu0 }
  0xc9   :  { %v793_v62 = vadd.f32 %v792_v49, %v744_v56 }
  0xcb   :  { %v832_v2 = vmax.f32 %v793_v62, 0.0 }
  0xcc   :  { %v696_v58 = vpop.f32.mrf.mxu2 }
  0xcd   :  { %v697_v59 = vadd.f32 %v696_v58, %v648_v57 }
  0xce   :  { %v745_v60 = vpop.f32.mrf.mxu3  ;;  %v650_v61 = vpop.f32.mrf.mxu1 }
  0xcf   :  { %v746_v63 = vadd.f32 %v745_v60, %v697_v59  ;;  %v651_v6 = vadd.f32 %v650_v61, %v601_v41 }
  0xd0   :  { %v797_v0 = vpop.f32.mrf.mxu0 }
  0xd1   :  { %v795_v1 = vadd.f32 %v794_v55, %v746_v63 }
  0xd3   :  { %v833_v3 = vmax.f32 %v795_v1, 0.0 }
  0xd4   :  { %v699_v4 = vpop.f32.mrf.mxu2 }
  0xd5   :  { %v1287_v5 = vpack.c.bf16 %v833_v3, %v832_v2  ;;  %v700_v9 = vadd.f32 %v699_v4, %v651_v6 }
  0xd6   :  { %v748_v7 = vpop.f32.mrf.mxu3  ;;  %v652_v8 = vpop.f32.mrf.mxu1 }
  0xd7   :  { %1288 = vst [vmem:[%s1792_s2] sm:$0xff] %v1287_v5   ;;  %v749_v11 = vadd.f32 %v748_v7, %v700_v9  ;;  %v653_v12 = vadd.f32 %v652_v8, %v603_v45 }
  0xd8   :  { %v799_v10 = vpop.f32.mrf.mxu0 }
  0xd9   :  { %v798_v17 = vadd.f32 %v797_v0, %v749_v11 }
  0xdb   :  { %v834_v25 = vmax.f32 %v798_v17, 0.0 }
  0xdc   :  { %v701_v13 = vpop.f32.mrf.mxu2 }
  0xdd   :  { %v702_v14 = vadd.f32 %v701_v13, %v653_v12 }
  0xde   :  { %v750_v15 = vpop.f32.mrf.mxu3  ;;  %v655_v16 = vpop.f32.mrf.mxu1 }
  0xdf   :  { %v751_v19 = vadd.f32 %v750_v15, %v702_v14  ;;  %v656_v29 = vadd.f32 %v655_v16, %v1706_v18 }
  0xe0   :  { %v802_v20 = vpop.f32.mrf.mxu0 }
  0xe1   :  { %v800_v21 = vadd.f32 %v799_v10, %v751_v19 }
  0xe3   :  { %v835_v26 = vmax.f32 %v800_v21, 0.0 }
  0xe4   :  { %v704_v27 = vpop.f32.mrf.mxu2 }
  0xe5   :  { %v1292_v28 = vpack.c.bf16 %v835_v26, %v834_v25  ;;  %v705_v32 = vadd.f32 %v704_v27, %v656_v29 }
  0xe6   :  { %v753_v30 = vpop.f32.mrf.mxu3  ;;  %v657_v31 = vpop.f32.mrf.mxu1 }
  0xe7   :  { %1324 = vst [vmem:[%s1792_s2 + $0x8] sm:$0xff] %v1292_v28   ;;  %v754_v36 = vadd.f32 %v753_v30, %v705_v32  ;;  %v658_v37 = vadd.f32 %v657_v31, %v1712_v24 }
  0xe8   :  { %v804_v33 = vpop.f32.mrf.mxu0 }
  0xe9   :  { %v803_v48 = vadd.f32 %v802_v20, %v754_v36 }
  0xeb   :  { %v836_v18 = vmax.f32 %v803_v48, 0.0 }
  0xec   :  { %v706_v39 = vpop.f32.mrf.mxu2 }
  0xed   :  { %v707_v40 = vadd.f32 %v706_v39, %v658_v37 }
  0xee   :  { %v755_v41 = vpop.f32.mrf.mxu3  ;;  %v660_v45 = vpop.f32.mrf.mxu1 }
  0xef   :  { %v756_v49 = vadd.f32 %v755_v41, %v707_v40  ;;  %v661_v55 = vadd.f32 %v660_v45, %v1742_v38 }
  0xf0   :  { %v807_v50 = vpop.f32.mrf.mxu0 }
  0xf1   :  { %v805_v51 = vadd.f32 %v804_v33, %v756_v49 }
  0xf3   :  { %v837_v52 = vmax.f32 %v805_v51, 0.0 }
  0xf4   :  { %v709_v53 = vpop.f32.mrf.mxu2 }
  0xf5   :  { %v1297_v54 = vpack.c.bf16 %v837_v52, %v836_v18  ;;  %v710_v24 = vadd.f32 %v709_v53, %v661_v55 }
  0xf6   :  { %v758_v56 = vpop.f32.mrf.mxu3  ;;  %v662_v57 = vpop.f32.mrf.mxu1 }
  0xf7   :  { %1325 = vst [vmem:[%s1792_s2 + $0x10] sm:$0xff] %v1297_v54   ;;  %v759_v59 = vadd.f32 %v758_v56, %v710_v24  ;;  %v663_v60 = vadd.f32 %v662_v57, %v1748_v44 }
  0xf8   :  { %v809_v58 = vpop.f32.mrf.mxu0 }
  0xf9   :  { %v808_v1 = vadd.f32 %v807_v50, %v759_v59 }
  0xfb   :  { %v838_v38 = vmax.f32 %v808_v1, 0.0 }
  0xfc   :  { %v711_v61 = vpop.f32.mrf.mxu2 }
  0xfd   :  { %v712_v62 = vadd.f32 %v711_v61, %v663_v60 }
  0xfe   :  { %v760_v63 = vpop.f32.mrf.mxu3  ;;  %v665_v0 = vpop.f32.mrf.mxu1 }
  0xff   :  { %v761_v2 = vadd.f32 %v760_v63, %v712_v62  ;;  %v666_v8 = vadd.f32 %v665_v0, %v1708_v22 }
 0x100   :  { %v812_v3 = vpop.f32.mrf.mxu0 }
 0x101   :  { %v810_v4 = vadd.f32 %v809_v58, %v761_v2 }
 0x103   :  { %v839_v5 = vmax.f32 %v810_v4, 0.0 }
 0x104   :  { %v714_v6 = vpop.f32.mrf.mxu2 }
 0x105   :  { %v1302_v7 = vpack.c.bf16 %v839_v5, %v838_v38  ;;  %v715_v44 = vadd.f32 %v714_v6, %v666_v8 }
 0x106   :  { %v763_v9 = vpop.f32.mrf.mxu3  ;;  %v667_v10 = vpop.f32.mrf.mxu1 }
 0x107   :  { %1326 = vst [vmem:[%s1792_s2 + $0x18] sm:$0xff] %v1302_v7   ;;  %v764_v12 = vadd.f32 %v763_v9, %v715_v44  ;;  %v668_v13 = vadd.f32 %v667_v10, %v1738_v34 }
 0x108   :  { %v814_v11 = vpop.f32.mrf.mxu0 }
 0x109   :  { %v813_v19 = vadd.f32 %v812_v3, %v764_v12 }
 0x10b   :  { %v840_v22 = vmax.f32 %v813_v19, 0.0 }
 0x10c   :  { %v716_v14 = vpop.f32.mrf.mxu2 }
 0x10d   :  { %v717_v15 = vadd.f32 %v716_v14, %v668_v13 }
 0x10e   :  { %v765_v16 = vpop.f32.mrf.mxu3  ;;  %v670_v17 = vpop.f32.mrf.mxu1 }
 0x10f   :  { %v766_v20 = vadd.f32 %v765_v16, %v717_v15  ;;  %v671_v29 = vadd.f32 %v670_v17, %v1744_v42 }
 0x110   :  { %v817_v21 = vpop.f32.mrf.mxu0 }
 0x111   :  { %v815_v25 = vadd.f32 %v814_v11, %v766_v20 }
 0x113   :  { %v841_v26 = vmax.f32 %v815_v25, 0.0 }
 0x114   :  { %v719_v27 = vpop.f32.mrf.mxu2 }
 0x115   :  { %v1307_v28 = vpack.c.bf16 %v841_v26, %v840_v22  ;;  %v720_v34 = vadd.f32 %v719_v27, %v671_v29 }
 0x116   :  { %v768_v30 = vpop.f32.mrf.mxu3  ;;  %v672_v31 = vpop.f32.mrf.mxu1 }
 0x117   :  { %1327 = vst [vmem:[%s1792_s2 + $0x20] sm:$0xff] %v1307_v28   ;;  %v769_v33 = vadd.f32 %v768_v30, %v720_v34  ;;  %v673_v36 = vadd.f32 %v672_v31, %v1750_v46 }
 0x118   :  { %v819_v32 = vpop.f32.mrf.mxu0 }
 0x119   :  { %v818_v45 = vadd.f32 %v817_v21, %v769_v33 }
 0x11b   :  { %v842_v42 = vmax.f32 %v818_v45, 0.0 }
 0x11c   :  { %v721_v37 = vpop.f32.mrf.mxu2 }
 0x11d   :  { %v722_v39 = vadd.f32 %v721_v37, %v673_v36 }
 0x11e   :  { %v770_v40 = vpop.f32.mrf.mxu3  ;;  %v675_v41 = vpop.f32.mrf.mxu1 }
 0x11f   :  { %v771_v48 = vadd.f32 %v770_v40, %v722_v39  ;;  %v676_v53 = vadd.f32 %v675_v41, %v1710_v23 }
 0x120   :  { %v822_v50 = vpop.f32.mrf.mxu0 }
 0x121   :  { %v820_v49 = vadd.f32 %v819_v32, %v771_v48 }
 0x123   :  { %v843_v51 = vmax.f32 %v820_v49, 0.0 }
 0x124   :  { %v724_v18 = vpop.f32.mrf.mxu2 }
 0x125   :  { %v1312_v52 = vpack.c.bf16 %v843_v51, %v842_v42  ;;  %v725_v46 = vadd.f32 %v724_v18, %v676_v53 }
 0x126   :  { %v773_v54 = vpop.f32.mrf.mxu3  ;;  %v677_v55 = vpop.f32.mrf.mxu1 }
 0x127   :  { %1328 = vst [vmem:[%s1792_s2 + $0x28] sm:$0xff] %v1312_v52   ;;  %v774_v56 = vadd.f32 %v773_v54, %v725_v46  ;;  %v678_v57 = vadd.f32 %v677_v55, %v1740_v35 }
 0x128   :  { %v824_v24 = vpop.f32.mrf.mxu0 }
 0x129   :  { %v823_v62 = vadd.f32 %v822_v50, %v774_v56 }
 0x12b   :  { %v844_v1 = vmax.f32 %v823_v62, 0.0 }
 0x12c   :  { %v726_v58 = vpop.f32.mrf.mxu2 }
 0x12d   :  { %v727_v59 = vadd.f32 %v726_v58, %v678_v57 }
 0x12e   :  { %v775_v60 = vpop.f32.mrf.mxu3  ;;  %v680_v61 = vpop.f32.mrf.mxu1 }
 0x12f   :  { %v776_v63 = vadd.f32 %v775_v60, %v727_v59  ;;  %v681_v4 = vadd.f32 %v680_v61, %v1746_v43 }
 0x130   :  { %v827_v5 = vpop.f32.mrf.mxu0 }
 0x131   :  { %v825_v0 = vadd.f32 %v824_v24, %v776_v63 }
 0x133   :  { %v845_v23 = vmax.f32 %v825_v0, 0.0 }
 0x134   :  { %v729_v2 = vpop.f32.mrf.mxu2 }
 0x135   :  { %v1317_v3 = vpack.c.bf16 %v845_v23, %v844_v1  ;;  %v730_v35 = vadd.f32 %v729_v2, %v681_v4 }
 0x136   :  { %v778_v38 = vpop.f32.mrf.mxu3  ;;  %v682_v6 = vpop.f32.mrf.mxu1 }
 0x137   :  { %1329 = vst [vmem:[%s1792_s2 + $0x30] sm:$0xff] %v1317_v3   ;;  %v779_v7 = vadd.f32 %v778_v38, %v730_v35  ;;  %v683_v8 = vadd.f32 %v682_v6, %v1752_v47 }
 0x138   :  { %v829_v13 = vpop.f32.mrf.mxu0 }
 0x139   :  { %v828_v11 = vadd.f32 %v827_v5, %v779_v7 }
 0x13b   :  { %v846_v15 = vmax.f32 %v828_v11, 0.0 }
 0x13c   :  { %v731_v9 = vpop.f32.mrf.mxu2 }
 0x13d   :  { %v732_v10 = vadd.f32 %v731_v9, %v683_v8 }
 0x13e   :  { %v780_v44 = vpop.f32.mrf.mxu3 }
 0x13f   :  { %v781_v12 = vadd.f32 %v780_v44, %v732_v10 }
 0x141   :  { %v830_v14 = vadd.f32 %v829_v13, %v781_v12 }
 0x143   :  { %v847_v43 = vmax.f32 %v830_v14, 0.0 }
 0x145   :  { %v1322_v16 = vpack.c.bf16 %v847_v43, %v846_v15 }
 0x147   :  { %1330 = vst [vmem:[%s1792_s2 + $0x38] sm:$0xff] %v1322_v16  }

// kernel: resnet_forward.15
= control target key start
LH: loop header
LB: loop body
LE: loop exit
PB: predicated region body
PF: predicated region fallthrough
CT: control target
= control target key end

     0   :  { %s942_s9 = smov 0   ;;  %s944_s10 = smov 0   ;;  %s1096_s0 = inlined_call_operand.vmem [shape: bf16[128,128], index: 0, kind: input, shape index: {}]   ;;  %s1097_s1 = inlined_call_operand.vmem [shape: bf16[128,256], index: 1, kind: input, shape index: {}]   ;;  %s1098_s2 = inlined_call_operand.vmem [shape: bf16[128,256], index: 2, kind: output, shape index: {}]  }
   0x1   :  { %s946_s11 = smov 0   ;;  %s948_s12 = smov 0  }
   0x2   :  { %s950_s13 = smov 0  }
   0x3 LB: > { %s21_s14 = sadd.s32 1, %s921_s12  ;;  %s682_s15 = sadd.s32 4294967295, %s925_s13   ;;  %s925_s13 = sphi %s950_s13, %s12_s13   ;;  %s921_s12 = sphi %s948_s12, %s1103_s12   ;;  %s917_s11 = sphi %s946_s11, %s1102_s11   ;;  %s913_s10 = sphi %s944_s10, %s1101_s10   ;;  %s909_s9 = sphi %s942_s9, %s1100_s9  }
   0x4   : > { %p22_p0 = scmp.ge.s32.totalorder %s21_s14, 2  ;;  %p64_p1 = scmp.ne.s32.totalorder %s913_s10, %s909_s9 }
   0x5   : > { %p65_p2 = scmp.eq.s32.totalorder %s925_s13, 0  ;;  %p96_p4 = scmp.eq.s32.totalorder %s682_s15, 1 }
   0x6   : > { %s1105_s14 = smov (%p22_p0, %s21_s14), 0  ;;  %s57_s17 = sadd.s32 1, %s913_s10 }
   0x7   : > { %p66_p3 = por %p65_p2, %p64_p1  ;;  %s54_s16 = ssub.s32 %s921_s12, %s1105_s14 }
   0x8   : > { %p55_p5 = scmp.eq.s32.totalorder %s54_s16, 0  ;;  %p977_p6 = por %p96_p4, %p64_p1 }
   0x9   : > { %p686_p7 = scmp.ge.s32.totalorder %s925_s13, 2 }
   0xa   : > { %s982_s19 = scalar_select %p55_p5, %s913_s10, %s57_s17  }
   0xb   : > { %127 = sbr.rel (%p686_p7) target bundleno = 36 (0x24), region = 20 }
  0x10   : > { %130 = sbr.rel (!%p66_p3) target bundleno = 36 (0x24), region = 24  ;;  %s132_s20 = sand.u32 (%p66_p3), 1, %s913_s10  }
  0x11   : > { %s688_s21 = sshll.u32 (%p66_p3), %s921_s12, 2  ;;  %s687_s22 = sshll.u32 (%p66_p3), %s132_s20, 6 }
  0x12   : > { %s990_s25 = scalar_lea.vmem (%p66_p3), %s1097_s1, %s688_s21  ;;  %s134_s26 = scalar_lea.vmem (%p66_p3), [#allocation2], %s687_s22 }
  0x13   : > { %v153_v0 = vld [vmem:[%s990_s25] sm:$0xf] (%p66_p3)  ;;  %v155_v1 = vld [vmem:[%s990_s25 + $0x8] sm:$0xf] (%p66_p3)  ;;  %v157_v2 = vld [vmem:[%s990_s25 + $0x10] sm:$0xf] (%p66_p3) }
  0x14   : > { %154 = vst [vmem:[%s134_s26] sm:$0xf] (%p66_p3), %v153_v0  ;;  %v159_v3 = vld [vmem:[%s990_s25 + $0x18] sm:$0xf] (%p66_p3)  ;;  %v161_v4 = vld [vmem:[%s990_s25 + $0x20] sm:$0xf] (%p66_p3) }
  0x15   : > { %156 = vst [vmem:[%s134_s26 + $0x4] sm:$0xf] %v155_v1  ;;  %v163_v5 = vld [vmem:[%s990_s25 + $0x28] sm:$0xf]  ;;  %v165_v6 = vld [vmem:[%s990_s25 + $0x30] sm:$0xf] }
  0x16   : > { %158 = vst [vmem:[%s134_s26 + $0x8] sm:$0xf] %v157_v2  ;;  %v167_v7 = vld [vmem:[%s990_s25 + $0x38] sm:$0xf]  ;;  %v169_v8 = vld [vmem:[%s990_s25 + $0x40] sm:$0xf] }
  0x17   : > { %160 = vst [vmem:[%s134_s26 + $0xc] sm:$0xf] %v159_v3  ;;  %v171_v9 = vld [vmem:[%s990_s25 + $0x48] sm:$0xf]  ;;  %v173_v10 = vld [vmem:[%s990_s25 + $0x50] sm:$0xf] }
  0x18   : > { %162 = vst [vmem:[%s134_s26 + $0x10] sm:$0xf] %v161_v4  ;;  %v175_v11 = vld [vmem:[%s990_s25 + $0x58] sm:$0xf]  ;;  %v177_v12 = vld [vmem:[%s990_s25 + $0x60] sm:$0xf] }
  0x19   : > { %164 = vst [vmem:[%s134_s26 + $0x14] sm:$0xf] %v163_v5  ;;  %v179_v13 = vld [vmem:[%s990_s25 + $0x68] sm:$0xf]  ;;  %v181_v14 = vld [vmem:[%s990_s25 + $0x70] sm:$0xf] }
  0x1a   : > { %166 = vst [vmem:[%s134_s26 + $0x18] sm:$0xf] %v165_v6  ;;  %v183_v15 = vld [vmem:[%s990_s25 + $0x78] sm:$0xf] }
  0x1b   : > { %168 = vst [vmem:[%s134_s26 + $0x1c] sm:$0xf] %v167_v7 }
  0x1c   : > { %170 = vst [vmem:[%s134_s26 + $0x20] sm:$0xf] %v169_v8 }
  0x1d   : > { %172 = vst [vmem:[%s134_s26 + $0x24] sm:$0xf] %v171_v9 }
  0x1e   : > { %174 = vst [vmem:[%s134_s26 + $0x28] sm:$0xf] %v173_v10 }
  0x1f   : > { %176 = vst [vmem:[%s134_s26 + $0x2c] sm:$0xf] %v175_v11 }
  0x20   : > { %178 = vst [vmem:[%s134_s26 + $0x30] sm:$0xf] %v177_v12 }
  0x21   : > { %180 = vst [vmem:[%s134_s26 + $0x34] sm:$0xf] %v179_v13 }
  0x22   : > { %182 = vst [vmem:[%s134_s26 + $0x38] sm:$0xf] %v181_v14 }
  0x23   : > { %184 = vst [vmem:[%s134_s26 + $0x3c] sm:$0xf] %v183_v15 }
  0x24 PF: > { %p689_p8 = scmp.ge.s32.totalorder %s925_s13, 1  ;;  %p239_p9 = scmp.lt.s32.totalorder %s925_s13, 3 }
  0x26   : > { %p240_p10 = pnand %p689_p8, %p239_p9 }
  0x27   : > { %s246_s27 = sand.u32 (!%p240_p10), 1, %s909_s9  }
  0x28   : > { %243 = sbr.rel (%p240_p10) target bundleno = 248 (0xf8), region = 65  ;;  %s1011_s28 = sshll.u32 (!%p240_p10), %s246_s27, 6 }
  0x29   : > { %s1014_s29 = scalar_lea.vmem (!%p240_p10), [#allocation2], %s1011_s28  ;;  %s1049_s25 = scalar_lea.vmem (!%p240_p10), [#allocation3], %s1011_s28 }
  0x2d   : > { %v775_v16 = vld [vmem:[%s1014_s29 + $0x38] sm:$0xff]  ;;  %v774_v17 = vld [vmem:[%s1014_s29 + $0x30] sm:$0xff]  ;;  %v773_v18 = vld [vmem:[%s1014_s29 + $0x28] sm:$0xff]  ;;  %s757_s26 = sshll.u32 (%p977_p6), %s917_s11, 2 }
  0x2e   : > { %406 = vmatpush.bf16.msra.mxu0 %v775_v16  ;;  %823 = vmatpush.bf16.msra.mxu1 %v775_v16  ;;  %v772_v19 = vld [vmem:[%s1014_s29 + $0x20] sm:$0xff]  ;;  %v771_v20 = vld [vmem:[%s1014_s29 + $0x18] sm:$0xff]  ;;  %v770_v21 = vld [vmem:[%s1014_s29 + $0x10] sm:$0xff] }
  0x2f   : > { %824 = vmatpush.bf16.msra.mxu2 %v775_v16  ;;  %825 = vmatpush.bf16.msra.mxu3 %v775_v16  ;;  %v769_v22 = vld [vmem:[%s1014_s29 + $0x8] sm:$0xff]  ;;  %v768_v23 = vld [vmem:[%s1014_s29] sm:$0xff]  ;;  %v762_v25 = vld [vmem:[%s1096_s0 + $0x10] sm:$0xff]  ;;  %s498_s29 = scalar_lea.vmem (%p977_p6), %s1098_s2, %s757_s26 }
  0x30   : > { %v760_v24 = vld [vmem:[%s1096_s0] sm:$0xff]  ;;  %v766_v27 = vld [vmem:[%s1096_s0 + $0x30] sm:$0xff]  ;;  %v761_v28 = vld [vmem:[%s1096_s0 + $0x8] sm:$0xff] }
  0x31   : > { %v764_v26 = vld [vmem:[%s1096_s0 + $0x20] sm:$0xff]  ;;  %v763_v29 = vld [vmem:[%s1096_s0 + $0x18] sm:$0xff]  ;;  %v765_v30 = vld [vmem:[%s1096_s0 + $0x28] sm:$0xff] }
  0x32   : > { %407 = vmatpush.bf16.msra.mxu0 %v774_v17  ;;  %826 = vmatpush.bf16.msra.mxu1 %v774_v17  ;;  %v767_v31 = vld [vmem:[%s1096_s0 + $0x38] sm:$0xff] }
  0x33   : > { %827 = vmatpush.bf16.msra.mxu2 %v774_v17  ;;  %828 = vmatpush.bf16.msra.mxu3 %v774_v17 }
  0x36   : > { %408 = vmatpush.bf16.msra.mxu0 %v773_v18  ;;  %829 = vmatpush.bf16.msra.mxu1 %v773_v18 }
  0x37   : > { %830 = vmatpush.bf16.msra.mxu2 %v773_v18  ;;  %831 = vmatpush.bf16.msra.mxu3 %v773_v18 }
  0x3a   : > { %409 = vmatpush.bf16.msra.mxu0 %v772_v19  ;;  %832 = vmatpush.bf16.msra.mxu1 %v772_v19 }
  0x3b   : > { %833 = vmatpush.bf16.msra.mxu2 %v772_v19  ;;  %834 = vmatpush.bf16.msra.mxu3 %v772_v19 }
  0x3e   : > { %410 = vmatpush.bf16.msra.mxu0 %v771_v20  ;;  %835 = vmatpush.bf16.msra.mxu1 %v771_v20 }
  0x3f   : > { %836 = vmatpush.bf16.msra.mxu2 %v771_v20  ;;  %837 = vmatpush.bf16.msra.mxu3 %v771_v20 }
  0x42   : > { %411 = vmatpush.bf16.msra.mxu0 %v770_v21  ;;  %838 = vmatpush.bf16.msra.mxu1 %v770_v21 }
  0x43   : > { %839 = vmatpush.bf16.msra.mxu2 %v770_v21  ;;  %840 = vmatpush.bf16.msra.mxu3 %v770_v21 }
  0x46   : > { %412 = vmatpush.bf16.msra.mxu0 %v769_v22  ;;  %841 = vmatpush.bf16.msra.mxu1 %v769_v22 }
  0x47   : > { %842 = vmatpush.bf16.msra.mxu2 %v769_v22  ;;  %843 = vmatpush.bf16.msra.mxu3 %v769_v22 }
  0x4a   : > { %413 = vmatpush.bf16.msra.mxu0 %v768_v23  ;;  %844 = vmatpush.bf16.msra.mxu1 %v768_v23 }
  0x4b   : > { %845 = vmatpush.bf16.msra.mxu2 %v768_v23  ;;  %846 = vmatpush.bf16.msra.mxu3 %v768_v23 }
  0x4d   : > { %414 = vmatmul.bf16.vlgmr.msra.gmra.mxu0 %v760_v24  ;;  %424 = vmatmul.bf16.vlgmr.msra.gmra.mxu1 %v762_v25 }
  0x4e   : > { %434 = vmatmul.bf16.vlgmr.msra.gmra.mxu2 %v764_v26  ;;  %444 = vmatmul.bf16.vlgmr.msra.gmra.mxu3 %v766_v27 }
  0x5d   : > { %419 = vmatmul.bf16.gmra.mxu0 %v761_v28  ;;  %429 = vmatmul.bf16.gmra.mxu1 %v763_v29 }
  0x5e   : > { %439 = vmatmul.bf16.gmra.mxu2 %v765_v30  ;;  %449 = vmatmul.bf16.gmra.mxu3 %v767_v31 }
  0xca   : > { %v415_v32 = vpop.f32.mrf.mxu0  ;;  %v425_v33 = vpop.f32.mrf.mxu1 }
  0xd1   : > { %v435_v34 = vpop.f32.mrf.mxu2  ;;  %v445_v35 = vpop.f32.mrf.mxu3 }
  0xd2   : > { %v417_v36 = vpop.f32.mrf.mxu0  ;;  %v427_v37 = vpop.f32.mrf.mxu1 }
  0xd3   : > { %v779_v38 = vpack.c.bf16 %v417_v36, %v415_v32  ;;  %v789_v39 = vpack.c.bf16 %v427_v37, %v425_v33 }
  0xd5   : > { %780 = vst [vmem:[%s1049_s25] sm:$0xff] %v779_v38  }
  0xd6   : > { %817 = vst [vmem:[%s1049_s25 + $0x10] sm:$0xff] %v789_v39  }
  0xd9   : > { %v437_v40 = vpop.f32.mrf.mxu2  ;;  %v447_v41 = vpop.f32.mrf.mxu3 }
  0xda   : > { %v799_v42 = vpack.c.bf16 %v437_v40, %v435_v34  ;;  %v809_v43 = vpack.c.bf16 %v447_v41, %v445_v35  ;;  %v420_v44 = vpop.f32.mrf.mxu0  ;;  %v430_v45 = vpop.f32.mrf.mxu1 }
  0xdc   : > { %819 = vst [vmem:[%s1049_s25 + $0x20] sm:$0xff] %v799_v42   ;;  %v515_v56 = vld [vmem:[%s1049_s25] sm:$0xf] (%p977_p6)  ;;  %v517_v57 = vld [vmem:[%s1049_s25 + $0x4] sm:$0xf] (%p977_p6) }
  0xdd   : > { %821 = vst [vmem:[%s1049_s25 + $0x30] sm:$0xff] %v809_v43   ;;  %v523_v60 = vld [vmem:[%s1049_s25 + $0x10] sm:$0xf] (%p977_p6)  ;;  %v525_v61 = vld [vmem:[%s1049_s25 + $0x14] sm:$0xf] (%p977_p6) }
  0xde   : > { %516 = vst [vmem:[%s498_s29] sm:$0xf] (%p977_p6), %v515_v56 }
  0xdf   : > { %518 = vst [vmem:[%s498_s29 + $0x8] sm:$0xf] (%p977_p6), %v517_v57 }
  0xe0   : > { %524 = vst [vmem:[%s498_s29 + $0x20] sm:$0xf] (%p977_p6), %v523_v60 }
  0xe1   : > { %v440_v46 = vpop.f32.mrf.mxu2  ;;  %v450_v47 = vpop.f32.mrf.mxu3  ;;  %526 = vst [vmem:[%s498_s29 + $0x28] sm:$0xf] (%p977_p6), %v525_v61 }
  0xe2   : > { %v422_v48 = vpop.f32.mrf.mxu0  ;;  %v432_v49 = vpop.f32.mrf.mxu1 }
  0xe3   : > { %v784_v50 = vpack.c.bf16 %v422_v48, %v420_v44  ;;  %v794_v51 = vpack.c.bf16 %v432_v49, %v430_v45  ;;  %v531_v0 = vld [vmem:[%s1049_s25 + $0x20] sm:$0xf] (%p977_p6)  ;;  %v533_v1 = vld [vmem:[%s1049_s25 + $0x24] sm:$0xf] (%p977_p6) }
  0xe4   : > { %532 = vst [vmem:[%s498_s29 + $0x40] sm:$0xf] (%p977_p6), %v531_v0  ;;  %v539_v4 = vld [vmem:[%s1049_s25 + $0x30] sm:$0xf] (%p977_p6)  ;;  %v541_v5 = vld [vmem:[%s1049_s25 + $0x34] sm:$0xf] (%p977_p6) }
  0xe5   : > { %816 = vst [vmem:[%s1049_s25 + $0x8] sm:$0xff] %v784_v50  }
  0xe6   : > { %818 = vst [vmem:[%s1049_s25 + $0x18] sm:$0xff] %v794_v51  }
  0xe7   : > { %534 = vst [vmem:[%s498_s29 + $0x48] sm:$0xf] (%p977_p6), %v533_v1 }
  0xe8   : > { %540 = vst [vmem:[%s498_s29 + $0x60] sm:$0xf] (%p977_p6), %v539_v4 }
  0xe9   : > { %v442_v52 = vpop.f32.mrf.mxu2  ;;  %v452_v53 = vpop.f32.mrf.mxu3  ;;  %493 = sbr.rel (!%p977_p6) target bundleno = 248 (0xf8), region = 73  ;;  %542 = vst [vmem:[%s498_s29 + $0x68] sm:$0xf] (%p977_p6), %v541_v5 }
  0xea   : > { %v804_v54 = vpack.c.bf16 %v442_v52, %v440_v46  ;;  %v814_v55 = vpack.c.bf16 %v452_v53, %v450_v47 }
  0xec   : > { %820 = vst [vmem:[%s1049_s25 + $0x28] sm:$0xff] %v804_v54   ;;  %v519_v58 = vld [vmem:[%s1049_s25 + $0x8] sm:$0xf] (%p977_p6)  ;;  %v521_v59 = vld [vmem:[%s1049_s25 + $0xc] sm:$0xf] (%p977_p6) }
  0xed   : > { %822 = vst [vmem:[%s1049_s25 + $0x38] sm:$0xff] %v814_v55   ;;  %v527_v62 = vld [vmem:[%s1049_s25 + $0x18] sm:$0xf] (%p977_p6)  ;;  %v529_v63 = vld [vmem:[%s1049_s25 + $0x1c] sm:$0xf] (%p977_p6) }
  0xee   : > { %520 = vst [vmem:[%s498_s29 + $0x10] sm:$0xf] %v519_v58 }
  0xef   : > { %522 = vst [vmem:[%s498_s29 + $0x18] sm:$0xf] %v521_v59 }
  0xf0   : > { %528 = vst [vmem:[%s498_s29 + $0x30] sm:$0xf] %v527_v62 }
  0xf1   : > { %530 = vst [vmem:[%s498_s29 + $0x38] sm:$0xf] %v529_v63 }
  0xf3   : > { %v535_v2 = vld [vmem:[%s1049_s25 + $0x28] sm:$0xf]  ;;  %v537_v3 = vld [vmem:[%s1049_s25 + $0x2c] sm:$0xf] }
  0xf4   : > { %536 = vst [vmem:[%s498_s29 + $0x50] sm:$0xf] %v535_v2  ;;  %v543_v6 = vld [vmem:[%s1049_s25 + $0x38] sm:$0xf]  ;;  %v545_v7 = vld [vmem:[%s1049_s25 + $0x3c] sm:$0xf] }
  0xf5   : > { %538 = vst [vmem:[%s498_s29 + $0x58] sm:$0xf] %v537_v3 }
  0xf6   : > { %544 = vst [vmem:[%s498_s29 + $0x70] sm:$0xf] %v543_v6 }
  0xf7   : > { %546 = vst [vmem:[%s498_s29 + $0x78] sm:$0xf] %v545_v7 }
  0xf8 PF: > { %s12_s13 = sadd.s32 1, %s925_s13   ;;  %s1100_s9 = smov %s913_s10 }
  0xf9   : > { %p9_p11 = scmp.ge.s32.totalorder %s12_s13, 4   ;;  %s1101_s10 = smov %s982_s19 }
  0xfa   : > { %s1102_s11 = smov %s921_s12  ;;  %s1103_s12 = smov %s1105_s14 }
  0xfb   :  { %11 = sbr.rel (!%p9_p11) target bundleno = 3 (0x3), region = 148 }

// kernel: resnet_forward.16
= control target key start
LH: loop header
LB: loop body
LE: loop exit
PB: predicated region body
PF: predicated region fallthrough
CT: control target
= control target key end

     0   :  { %s1213_s12 = smov 0   ;;  %s1215_s13 = smov 0   ;;  %s1409_s0 = inlined_call_operand.vmem [shape: bf16[128,128], index: 0, kind: input, shape index: {}]   ;;  %s1410_s1 = inlined_call_operand.vmem [shape: bf16[128,256], index: 1, kind: input, shape index: {}]   ;;  %s1411_s2 = inlined_call_operand.vmem [shape: bf16[128,256], index: 2, kind: input, shape index: {}]   ;;  %s1412_s3 = inlined_call_operand.vmem [shape: bf16[128,256], index: 3, kind: output, shape index: {}]  }
   0x1   :  { %s1217_s14 = smov 0   ;;  %s1219_s15 = smov 0  }
   0x2   :  { %s1221_s16 = smov 0  }
   0x3 LB: > { %s22_s17 = sadd.s32 1, %s1187_s15  ;;  %s906_s18 = sadd.s32 4294967295, %s1191_s16   ;;  %s1191_s16 = sphi %s1221_s16, %s13_s16   ;;  %s1187_s15 = sphi %s1219_s15, %s1418_s15   ;;  %s1183_s14 = sphi %s1217_s14, %s1417_s14   ;;  %s1179_s13 = sphi %s1215_s13, %s1416_s13   ;;  %s1175_s12 = sphi %s1213_s12, %s1415_s12  }
   0x4   : > { %p23_p0 = scmp.ge.s32.totalorder %s22_s17, 2  ;;  %p65_p1 = scmp.ne.s32.totalorder %s1179_s13, %s1175_s12 }
   0x5   : > { %p66_p2 = scmp.eq.s32.totalorder %s1191_s16, 0  ;;  %p125_p4 = scmp.eq.s32.totalorder %s906_s18, 1 }
   0x6   : > { %s1420_s17 = smov (%p23_p0, %s22_s17), 0  ;;  %s58_s21 = sadd.s32 1, %s1179_s13 }
   0x7   : > { %p1245_p3 = por %p66_p2, %p65_p1  ;;  %s55_s20 = ssub.s32 %s1187_s15, %s1420_s17 }
   0x8   : > { %p56_p5 = scmp.eq.s32.totalorder %s55_s20, 0  ;;  %p1252_p6 = por %p125_p4, %p65_p1 }
   0x9   : > { %p910_p7 = scmp.ge.s32.totalorder %s1191_s16, 2 }
   0xa   : > { %s1257_s23 = scalar_select %p56_p5, %s1179_s13, %s58_s21  }
   0xb   : > { %156 = sbr.rel (%p910_p7) target bundleno = 56 (0x38), region = 20 }
  0x10   : > { %159 = sbr.rel (!%p1245_p3) target bundleno = 36 (0x24), region = 24  ;;  %s161_s24 = sand.u32 (%p1245_p3), 1, %s1179_s13  }
  0x11   : > { %s912_s25 = sshll.u32 (%p1245_p3), %s1187_s15, 2  ;;  %s911_s26 = sshll.u32 (%p1245_p3), %s161_s24, 6 }
  0x12   : > { %s1267_s29 = scalar_lea.vmem (%p1245_p3), %s1410_s1, %s912_s25  ;;  %s163_s30 = scalar_lea.vmem (%p1245_p3), [#allocation2], %s911_s26 }
  0x13   : > { %v182_v0 = vld [vmem:[%s1267_s29] sm:$0xf] (%p1245_p3)  ;;  %v184_v1 = vld [vmem:[%s1267_s29 + $0x8] sm:$0xf] (%p1245_p3)  ;;  %v186_v2 = vld [vmem:[%s1267_s29 + $0x10] sm:$0xf] (%p1245_p3) }
  0x14   : > { %183 = vst [vmem:[%s163_s30] sm:$0xf] (%p1245_p3), %v182_v0  ;;  %v188_v3 = vld [vmem:[%s1267_s29 + $0x18] sm:$0xf] (%p1245_p3)  ;;  %v190_v4 = vld [vmem:[%s1267_s29 + $0x20] sm:$0xf] (%p1245_p3) }
  0x15   : > { %185 = vst [vmem:[%s163_s30 + $0x4] sm:$0xf] %v184_v1  ;;  %v192_v5 = vld [vmem:[%s1267_s29 + $0x28] sm:$0xf]  ;;  %v194_v6 = vld [vmem:[%s1267_s29 + $0x30] sm:$0xf] }
  0x16   : > { %187 = vst [vmem:[%s163_s30 + $0x8] sm:$0xf] %v186_v2  ;;  %v196_v7 = vld [vmem:[%s1267_s29 + $0x38] sm:$0xf]  ;;  %v198_v8 = vld [vmem:[%s1267_s29 + $0x40] sm:$0xf] }
  0x17   : > { %189 = vst [vmem:[%s163_s30 + $0xc] sm:$0xf] %v188_v3  ;;  %v200_v9 = vld [vmem:[%s1267_s29 + $0x48] sm:$0xf]  ;;  %v202_v10 = vld [vmem:[%s1267_s29 + $0x50] sm:$0xf] }
  0x18   : > { %191 = vst [vmem:[%s163_s30 + $0x10] sm:$0xf] %v190_v4  ;;  %v204_v11 = vld [vmem:[%s1267_s29 + $0x58] sm:$0xf]  ;;  %v206_v12 = vld [vmem:[%s1267_s29 + $0x60] sm:$0xf] }
  0x19   : > { %193 = vst [vmem:[%s163_s30 + $0x14] sm:$0xf] %v192_v5  ;;  %v208_v13 = vld [vmem:[%s1267_s29 + $0x68] sm:$0xf]  ;;  %v210_v14 = vld [vmem:[%s1267_s29 + $0x70] sm:$0xf] }
  0x1a   : > { %195 = vst [vmem:[%s163_s30 + $0x18] sm:$0xf] %v194_v6  ;;  %v212_v15 = vld [vmem:[%s1267_s29 + $0x78] sm:$0xf] }
  0x1b   : > { %197 = vst [vmem:[%s163_s30 + $0x1c] sm:$0xf] %v196_v7 }
  0x1c   : > { %199 = vst [vmem:[%s163_s30 + $0x20] sm:$0xf] %v198_v8 }
  0x1d   : > { %201 = vst [vmem:[%s163_s30 + $0x24] sm:$0xf] %v200_v9 }
  0x1e   : > { %203 = vst [vmem:[%s163_s30 + $0x28] sm:$0xf] %v202_v10 }
  0x1f   : > { %205 = vst [vmem:[%s163_s30 + $0x2c] sm:$0xf] %v204_v11 }
  0x20   : > { %207 = vst [vmem:[%s163_s30 + $0x30] sm:$0xf] %v206_v12 }
  0x21   : > { %209 = vst [vmem:[%s163_s30 + $0x34] sm:$0xf] %v208_v13 }
  0x22   : > { %211 = vst [vmem:[%s163_s30 + $0x38] sm:$0xf] %v210_v14 }
  0x23   : > { %213 = vst [vmem:[%s163_s30 + $0x3c] sm:$0xf] %v212_v15 }
  0x24 PF: > { %269 = sbr.rel (!%p1245_p3) target bundleno = 56 (0x38), region = 65  ;;  %s271_s4 = sand.u32 (%p1245_p3), 1, %s1179_s13  }
  0x25   : > { %s914_s5 = sshll.u32 (%p1245_p3), %s1187_s15, 2  ;;  %s913_s6 = sshll.u32 (%p1245_p3), %s271_s4, 6 }
  0x26   : > { %s1292_s9 = scalar_lea.vmem (%p1245_p3), %s1411_s2, %s914_s5  ;;  %s273_s10 = scalar_lea.vmem (%p1245_p3), [#allocation3], %s913_s6 }
  0x27   : > { %v295_v16 = vld [vmem:[%s1292_s9] sm:$0xf] (%p1245_p3)  ;;  %v297_v17 = vld [vmem:[%s1292_s9 + $0x8] sm:$0xf] (%p1245_p3)  ;;  %v299_v18 = vld [vmem:[%s1292_s9 + $0x10] sm:$0xf] (%p1245_p3) }
  0x28   : > { %296 = vst [vmem:[%s273_s10] sm:$0xf] (%p1245_p3), %v295_v16  ;;  %v301_v19 = vld [vmem:[%s1292_s9 + $0x18] sm:$0xf] (%p1245_p3)  ;;  %v303_v20 = vld [vmem:[%s1292_s9 + $0x20] sm:$0xf] (%p1245_p3) }
  0x29   : > { %298 = vst [vmem:[%s273_s10 + $0x4] sm:$0xf] %v297_v17  ;;  %v305_v21 = vld [vmem:[%s1292_s9 + $0x28] sm:$0xf]  ;;  %v307_v22 = vld [vmem:[%s1292_s9 + $0x30] sm:$0xf] }
  0x2a   : > { %300 = vst [vmem:[%s273_s10 + $0x8] sm:$0xf] %v299_v18  ;;  %v309_v23 = vld [vmem:[%s1292_s9 + $0x38] sm:$0xf]  ;;  %v311_v24 = vld [vmem:[%s1292_s9 + $0x40] sm:$0xf] }
  0x2b   : > { %302 = vst [vmem:[%s273_s10 + $0xc] sm:$0xf] %v301_v19  ;;  %v313_v25 = vld [vmem:[%s1292_s9 + $0x48] sm:$0xf]  ;;  %v315_v26 = vld [vmem:[%s1292_s9 + $0x50] sm:$0xf] }
  0x2c   : > { %304 = vst [vmem:[%s273_s10 + $0x10] sm:$0xf] %v303_v20  ;;  %v317_v27 = vld [vmem:[%s1292_s9 + $0x58] sm:$0xf]  ;;  %v319_v28 = vld [vmem:[%s1292_s9 + $0x60] sm:$0xf] }
  0x2d   : > { %306 = vst [vmem:[%s273_s10 + $0x14] sm:$0xf] %v305_v21  ;;  %v321_v29 = vld [vmem:[%s1292_s9 + $0x68] sm:$0xf]  ;;  %v323_v30 = vld [vmem:[%s1292_s9 + $0x70] sm:$0xf] }
  0x2e   : > { %308 = vst [vmem:[%s273_s10 + $0x18] sm:$0xf] %v307_v22  ;;  %v325_v31 = vld [vmem:[%s1292_s9 + $0x78] sm:$0xf] }
  0x2f   : > { %310 = vst [vmem:[%s273_s10 + $0x1c] sm:$0xf] %v309_v23 }
  0x30   : > { %312 = vst [vmem:[%s273_s10 + $0x20] sm:$0xf] %v311_v24 }
  0x31   : > { %314 = vst [vmem:[%s273_s10 + $0x24] sm:$0xf] %v313_v25 }
  0x32   : > { %316 = vst [vmem:[%s273_s10 + $0x28] sm:$0xf] %v315_v26 }
  0x33   : > { %318 = vst [vmem:[%s273_s10 + $0x2c] sm:$0xf] %v317_v27 }
  0x34   : > { %320 = vst [vmem:[%s273_s10 + $0x30] sm:$0xf] %v319_v28 }
  0x35   : > { %322 = vst [vmem:[%s273_s10 + $0x34] sm:$0xf] %v321_v29 }
  0x36   : > { %324 = vst [vmem:[%s273_s10 + $0x38] sm:$0xf] %v323_v30 }
  0x37   : > { %326 = vst [vmem:[%s273_s10 + $0x3c] sm:$0xf] %v325_v31 }
  0x38 PF: > { %p915_p8 = scmp.ge.s32.totalorder %s1191_s16, 1  ;;  %p381_p9 = scmp.lt.s32.totalorder %s1191_s16, 3 }
  0x3a   : > { %p382_p10 = pnand %p915_p8, %p381_p9 }
  0x3b   : > { %s388_s11 = sand.u32 (!%p382_p10), 1, %s1175_s12  }
  0x3c   : > { %385 = sbr.rel (%p382_p10) target bundleno = 272 (0x110), region = 106  ;;  %s1313_s18 = sshll.u32 (!%p382_p10), %s388_s11, 6 }
  0x3d   : > { %s1316_s19 = scalar_lea.vmem (!%p382_p10), [#allocation2], %s1313_s18  ;;  %s1351_s10 = scalar_lea.vmem (!%p382_p10), [#allocation3], %s1313_s18 }
  0x3e   : > { %s1358_s11 = scalar_lea.vmem (!%p382_p10), [#allocation4], %s1313_s18 }
  0x41   : > { %v1002_v32 = vld [vmem:[%s1316_s19 + $0x38] sm:$0xff]  ;;  %v1001_v33 = vld [vmem:[%s1316_s19 + $0x30] sm:$0xff]  ;;  %v1000_v34 = vld [vmem:[%s1316_s19 + $0x28] sm:$0xff]  ;;  %s984_s18 = sshll.u32 (%p1252_p6), %s1183_s14, 2 }
  0x42   : > { %594 = vmatpush.bf16.msra.mxu0 %v1002_v32  ;;  %1089 = vmatpush.bf16.msra.mxu1 %v1002_v32  ;;  %v999_v35 = vld [vmem:[%s1316_s19 + $0x20] sm:$0xff]  ;;  %v998_v36 = vld [vmem:[%s1316_s19 + $0x18] sm:$0xff]  ;;  %v997_v37 = vld [vmem:[%s1316_s19 + $0x10] sm:$0xff]  ;;  %s702_s20 = scalar_lea.vmem (%p1252_p6), %s1412_s3, %s984_s18 }
  0x43   : > { %1090 = vmatpush.bf16.msra.mxu2 %v1002_v32  ;;  %1091 = vmatpush.bf16.msra.mxu3 %v1002_v32  ;;  %v996_v38 = vld [vmem:[%s1316_s19 + $0x8] sm:$0xff]  ;;  %v995_v39 = vld [vmem:[%s1316_s19] sm:$0xff]  ;;  %v989_v41 = vld [vmem:[%s1409_s0 + $0x10] sm:$0xff] }
  0x44   : > { %v987_v40 = vld [vmem:[%s1409_s0] sm:$0xff]  ;;  %v993_v43 = vld [vmem:[%s1409_s0 + $0x30] sm:$0xff]  ;;  %v988_v44 = vld [vmem:[%s1409_s0 + $0x8] sm:$0xff] }
  0x45   : > { %v991_v42 = vld [vmem:[%s1409_s0 + $0x20] sm:$0xff]  ;;  %v990_v45 = vld [vmem:[%s1409_s0 + $0x18] sm:$0xff]  ;;  %v992_v46 = vld [vmem:[%s1409_s0 + $0x28] sm:$0xff] }
  0x46   : > { %595 = vmatpush.bf16.msra.mxu0 %v1001_v33  ;;  %1092 = vmatpush.bf16.msra.mxu1 %v1001_v33  ;;  %v994_v47 = vld [vmem:[%s1409_s0 + $0x38] sm:$0xff]  ;;  %v1004_v48 = vld [vmem:[%s1351_s10] sm:$0xff]   ;;  %v1076_v50 = vld [vmem:[%s1351_s10 + $0x10] sm:$0xff]  }
  0x47   : > { %1093 = vmatpush.bf16.msra.mxu2 %v1001_v33  ;;  %1094 = vmatpush.bf16.msra.mxu3 %v1001_v33  ;;  %v1005_v52 = vunpack.c.l.bf16 %v1004_v48  ;;  %v1013_v53 = vunpack.c.l.bf16 %v1076_v50  ;;  %v1006_v54 = vunpack.c.h.bf16 %v1004_v48  ;;  %v1014_v55 = vunpack.c.h.bf16 %v1076_v50  ;;  %v1078_v58 = vld [vmem:[%s1351_s10 + $0x20] sm:$0xff]   ;;  %v1080_v60 = vld [vmem:[%s1351_s10 + $0x30] sm:$0xff]   ;;  %v1075_v18 = vld [vmem:[%s1351_s10 + $0x8] sm:$0xff]  }
  0x48   : > { %v1021_v2 = vunpack.c.l.bf16 %v1078_v58  ;;  %v1029_v3 = vunpack.c.l.bf16 %v1080_v60  ;;  %v1022_v8 = vunpack.c.h.bf16 %v1078_v58  ;;  %v1030_v9 = vunpack.c.h.bf16 %v1080_v60  ;;  %v1077_v20 = vld [vmem:[%s1351_s10 + $0x18] sm:$0xff]  }
  0x49   : > { %v1009_v26 = vunpack.c.l.bf16 %v1075_v18  ;;  %v1017_v27 = vunpack.c.l.bf16 %v1077_v20  ;;  %v1010_v30 = vunpack.c.h.bf16 %v1075_v18  ;;  %v1018_v31 = vunpack.c.h.bf16 %v1077_v20 }
  0x4a   : > { %596 = vmatpush.bf16.msra.mxu0 %v1000_v34  ;;  %1095 = vmatpush.bf16.msra.mxu1 %v1000_v34 }
  0x4b   : > { %1096 = vmatpush.bf16.msra.mxu2 %v1000_v34  ;;  %1097 = vmatpush.bf16.msra.mxu3 %v1000_v34  ;;  %v1079_v34 = vld [vmem:[%s1351_s10 + $0x28] sm:$0xff]  }
  0x4c   : > { %v1026_v48 = vunpack.c.h.bf16 %v1079_v34 }
  0x4e   : > { %597 = vmatpush.bf16.msra.mxu0 %v999_v35  ;;  %1098 = vmatpush.bf16.msra.mxu1 %v999_v35 }
  0x4f   : > { %1099 = vmatpush.bf16.msra.mxu2 %v999_v35  ;;  %1100 = vmatpush.bf16.msra.mxu3 %v999_v35 }
  0x52   : > { %598 = vmatpush.bf16.msra.mxu0 %v998_v36  ;;  %1101 = vmatpush.bf16.msra.mxu1 %v998_v36 }
  0x53   : > { %1102 = vmatpush.bf16.msra.mxu2 %v998_v36  ;;  %1103 = vmatpush.bf16.msra.mxu3 %v998_v36  ;;  %v1081_v36 = vld [vmem:[%s1351_s10 + $0x38] sm:$0xff]  }
  0x56   : > { %599 = vmatpush.bf16.msra.mxu0 %v997_v37  ;;  %1104 = vmatpush.bf16.msra.mxu1 %v997_v37 }
  0x57   : > { %1105 = vmatpush.bf16.msra.mxu2 %v997_v37  ;;  %1106 = vmatpush.bf16.msra.mxu3 %v997_v37 }
  0x5a   : > { %600 = vmatpush.bf16.msra.mxu0 %v996_v38  ;;  %1107 = vmatpush.bf16.msra.mxu1 %v996_v38 }
  0x5b   : > { %1108 = vmatpush.bf16.msra.mxu2 %v996_v38  ;;  %1109 = vmatpush.bf16.msra.mxu3 %v996_v38 }
  0x5e   : > { %601 = vmatpush.bf16.msra.mxu0 %v995_v39  ;;  %1110 = vmatpush.bf16.msra.mxu1 %v995_v39 }
  0x5f   : > { %1111 = vmatpush.bf16.msra.mxu2 %v995_v39  ;;  %1112 = vmatpush.bf16.msra.mxu3 %v995_v39 }
  0x61   : > { %602 = vmatmul.bf16.vlgmr.msra.gmra.mxu0 %v987_v40  ;;  %612 = vmatmul.bf16.vlgmr.msra.gmra.mxu1 %v989_v41 }
  0x62   : > { %622 = vmatmul.bf16.vlgmr.msra.gmra.mxu2 %v991_v42  ;;  %632 = vmatmul.bf16.vlgmr.msra.gmra.mxu3 %v993_v43  ;;  %v1025_v42 = vunpack.c.l.bf16 %v1079_v34  ;;  %v1033_v43 = vunpack.c.l.bf16 %v1081_v36 }
  0x71   : > { %607 = vmatmul.bf16.gmra.mxu0 %v988_v44  ;;  %617 = vmatmul.bf16.gmra.mxu1 %v990_v45 }
  0x72   : > { %627 = vmatmul.bf16.gmra.mxu2 %v992_v46  ;;  %637 = vmatmul.bf16.gmra.mxu3 %v994_v47 }
  0xde   : > { %v603_v49 = vpop.f32.mrf.mxu0  ;;  %v613_v51 = vpop.f32.mrf.mxu1 }
  0xdf   : > { %v604_v56 = vadd.f32 %v1005_v52, %v603_v49  ;;  %v614_v57 = vadd.f32 %v1013_v53, %v613_v51  ;;  %v1034_v49 = vunpack.c.h.bf16 %v1081_v36 }
  0xe1   : > { %v643_v4 = vmax.f32 %v604_v56, 0.0  ;;  %v647_v5 = vmax.f32 %v614_v57, 0.0 }
  0xe5   : > { %v623_v59 = vpop.f32.mrf.mxu2  ;;  %v633_v61 = vpop.f32.mrf.mxu3 }
  0xe6   : > { %v605_v62 = vpop.f32.mrf.mxu0  ;;  %v615_v63 = vpop.f32.mrf.mxu1  ;;  %v624_v12 = vadd.f32 %v1021_v2, %v623_v59  ;;  %v634_v13 = vadd.f32 %v1029_v3, %v633_v61 }
  0xe7   : > { %v606_v0 = vadd.f32 %v1006_v54, %v605_v62  ;;  %v616_v1 = vadd.f32 %v1014_v55, %v615_v63 }
  0xe8   : > { %v651_v22 = vmax.f32 %v624_v12, 0.0  ;;  %v655_v23 = vmax.f32 %v634_v13, 0.0 }
  0xe9   : > { %v644_v6 = vmax.f32 %v606_v0, 0.0  ;;  %v648_v7 = vmax.f32 %v616_v1, 0.0 }
  0xeb   : > { %v1038_v10 = vpack.c.bf16 %v644_v6, %v643_v4  ;;  %v1048_v11 = vpack.c.bf16 %v648_v7, %v647_v5 }
  0xed   : > { %1039 = vst [vmem:[%s1358_s11] sm:$0xff] %v1038_v10   ;;  %v625_v14 = vpop.f32.mrf.mxu2  ;;  %v635_v15 = vpop.f32.mrf.mxu3 }
  0xee   : > { %1083 = vst [vmem:[%s1358_s11 + $0x10] sm:$0xff] %v1048_v11   ;;  %v626_v16 = vadd.f32 %v1022_v8, %v625_v14  ;;  %v636_v17 = vadd.f32 %v1030_v9, %v635_v15  ;;  %v608_v19 = vpop.f32.mrf.mxu0  ;;  %v618_v21 = vpop.f32.mrf.mxu1 }
  0xef   : > { %v609_v32 = vadd.f32 %v1009_v26, %v608_v19  ;;  %v619_v33 = vadd.f32 %v1017_v27, %v618_v21 }
  0xf0   : > { %v652_v24 = vmax.f32 %v626_v16, 0.0  ;;  %v656_v25 = vmax.f32 %v636_v17, 0.0 }
  0xf1   : > { %v645_v44 = vmax.f32 %v609_v32, 0.0  ;;  %v649_v45 = vmax.f32 %v619_v33, 0.0 }
  0xf2   : > { %v1058_v28 = vpack.c.bf16 %v652_v24, %v651_v22  ;;  %v1068_v29 = vpack.c.bf16 %v656_v25, %v655_v23 }
  0xf4   : > { %1085 = vst [vmem:[%s1358_s11 + $0x20] sm:$0xff] %v1058_v28   ;;  %v719_v0 = vld [vmem:[%s1358_s11] sm:$0xf] (%p1252_p6)  ;;  %v721_v1 = vld [vmem:[%s1358_s11 + $0x4] sm:$0xf] (%p1252_p6) }
  0xf5   : > { %1087 = vst [vmem:[%s1358_s11 + $0x30] sm:$0xff] %v1068_v29   ;;  %v628_v35 = vpop.f32.mrf.mxu2  ;;  %v638_v37 = vpop.f32.mrf.mxu3  ;;  %v727_v4 = vld [vmem:[%s1358_s11 + $0x10] sm:$0xf] (%p1252_p6)  ;;  %v729_v5 = vld [vmem:[%s1358_s11 + $0x14] sm:$0xf] (%p1252_p6) }
  0xf6   : > { %v610_v38 = vpop.f32.mrf.mxu0  ;;  %v620_v39 = vpop.f32.mrf.mxu1  ;;  %v629_v52 = vadd.f32 %v1025_v42, %v628_v35  ;;  %v639_v53 = vadd.f32 %v1033_v43, %v638_v37  ;;  %720 = vst [vmem:[%s702_s20] sm:$0xf] (%p1252_p6), %v719_v0 }
  0xf7   : > { %v611_v40 = vadd.f32 %v1010_v30, %v610_v38  ;;  %v621_v41 = vadd.f32 %v1018_v31, %v620_v39  ;;  %722 = vst [vmem:[%s702_s20 + $0x8] sm:$0xf] (%p1252_p6), %v721_v1 }
  0xf8   : > { %v653_v58 = vmax.f32 %v629_v52, 0.0  ;;  %v657_v59 = vmax.f32 %v639_v53, 0.0  ;;  %728 = vst [vmem:[%s702_s20 + $0x20] sm:$0xf] (%p1252_p6), %v727_v4 }
  0xf9   : > { %v646_v46 = vmax.f32 %v611_v40, 0.0  ;;  %v650_v47 = vmax.f32 %v621_v41, 0.0  ;;  %730 = vst [vmem:[%s702_s20 + $0x28] sm:$0xf] (%p1252_p6), %v729_v5 }
  0xfb   : > { %v1043_v50 = vpack.c.bf16 %v646_v46, %v645_v44  ;;  %v1053_v51 = vpack.c.bf16 %v650_v47, %v649_v45  ;;  %v735_v8 = vld [vmem:[%s1358_s11 + $0x20] sm:$0xf] (%p1252_p6)  ;;  %v737_v9 = vld [vmem:[%s1358_s11 + $0x24] sm:$0xf] (%p1252_p6) }
  0xfc   : > { %736 = vst [vmem:[%s702_s20 + $0x40] sm:$0xf] (%p1252_p6), %v735_v8  ;;  %v743_v12 = vld [vmem:[%s1358_s11 + $0x30] sm:$0xf] (%p1252_p6)  ;;  %v745_v13 = vld [vmem:[%s1358_s11 + $0x34] sm:$0xf] (%p1252_p6) }
  0xfd   : > { %1082 = vst [vmem:[%s1358_s11 + $0x8] sm:$0xff] %v1043_v50   ;;  %v630_v54 = vpop.f32.mrf.mxu2  ;;  %v640_v55 = vpop.f32.mrf.mxu3 }
  0xfe   : > { %1084 = vst [vmem:[%s1358_s11 + $0x18] sm:$0xff] %v1053_v51   ;;  %v631_v56 = vadd.f32 %v1026_v48, %v630_v54  ;;  %v641_v57 = vadd.f32 %v1034_v49, %v640_v55 }
  0xff   : > { %738 = vst [vmem:[%s702_s20 + $0x48] sm:$0xf] (%p1252_p6), %v737_v9 }
 0x100   : > { %v654_v60 = vmax.f32 %v631_v56, 0.0  ;;  %v658_v61 = vmax.f32 %v641_v57, 0.0  ;;  %744 = vst [vmem:[%s702_s20 + $0x60] sm:$0xf] (%p1252_p6), %v743_v12 }
 0x101   : > { %697 = sbr.rel (!%p1252_p6) target bundleno = 272 (0x110), region = 118  ;;  %746 = vst [vmem:[%s702_s20 + $0x68] sm:$0xf] (%p1252_p6), %v745_v13 }
 0x102   : > { %v1063_v62 = vpack.c.bf16 %v654_v60, %v653_v58  ;;  %v1073_v63 = vpack.c.bf16 %v658_v61, %v657_v59 }
 0x104   : > { %1086 = vst [vmem:[%s1358_s11 + $0x28] sm:$0xff] %v1063_v62   ;;  %v723_v2 = vld [vmem:[%s1358_s11 + $0x8] sm:$0xf] (%p1252_p6)  ;;  %v725_v3 = vld [vmem:[%s1358_s11 + $0xc] sm:$0xf] (%p1252_p6) }
 0x105   : > { %1088 = vst [vmem:[%s1358_s11 + $0x38] sm:$0xff] %v1073_v63   ;;  %v731_v6 = vld [vmem:[%s1358_s11 + $0x18] sm:$0xf] (%p1252_p6)  ;;  %v733_v7 = vld [vmem:[%s1358_s11 + $0x1c] sm:$0xf] (%p1252_p6) }
 0x106   : > { %724 = vst [vmem:[%s702_s20 + $0x10] sm:$0xf] %v723_v2 }
 0x107   : > { %726 = vst [vmem:[%s702_s20 + $0x18] sm:$0xf] %v725_v3 }
 0x108   : > { %732 = vst [vmem:[%s702_s20 + $0x30] sm:$0xf] %v731_v6 }
 0x109   : > { %734 = vst [vmem:[%s702_s20 + $0x38] sm:$0xf] %v733_v7 }
 0x10b   : > { %v739_v10 = vld [vmem:[%s1358_s11 + $0x28] sm:$0xf]  ;;  %v741_v11 = vld [vmem:[%s1358_s11 + $0x2c] sm:$0xf] }
 0x10c   : > { %740 = vst [vmem:[%s702_s20 + $0x50] sm:$0xf] %v739_v10  ;;  %v747_v14 = vld [vmem:[%s1358_s11 + $0x38] sm:$0xf]  ;;  %v749_v15 = vld [vmem:[%s1358_s11 + $0x3c] sm:$0xf] }
 0x10d   : > { %742 = vst [vmem:[%s702_s20 + $0x58] sm:$0xf] %v741_v11 }
 0x10e   : > { %748 = vst [vmem:[%s702_s20 + $0x70] sm:$0xf] %v747_v14 }
 0x10f   : > { %750 = vst [vmem:[%s702_s20 + $0x78] sm:$0xf] %v749_v15 }
 0x110 PF: > { %s13_s16 = sadd.s32 1, %s1191_s16   ;;  %s1415_s12 = smov %s1179_s13 }
 0x111   : > { %p10_p11 = scmp.ge.s32.totalorder %s13_s16, 4   ;;  %s1416_s13 = smov %s1257_s23 }
 0x112   : > { %s1417_s14 = smov %s1187_s15  ;;  %s1418_s15 = smov %s1420_s17 }
 0x113   :  { %12 = sbr.rel (!%p10_p11) target bundleno = 3 (0x3), region = 201 }

// kernel: resnet_forward.17
= control target key start
LH: loop header
LB: loop body
LE: loop exit
PB: predicated region body
PF: predicated region fallthrough
CT: control target
= control target key end

     0   :  { %s791_s1 = inlined_call_operand.vmem [shape: bf16[256,128], index: 1, kind: input, shape index: {}]   ;;  %s792_s0 = inlined_call_operand.vmem [shape: bf16[128,256], index: 0, kind: input, shape index: {}]   ;;  %s793_s2 = inlined_call_operand.vmem [shape: bf16[128,128], index: 2, kind: output, shape index: {}]  }
   0x1   :  { %v536_v0 = vld [vmem:[%s791_s1 + $0x38] sm:$0xff]  ;;  %v535_v2 = vld [vmem:[%s791_s1 + $0x30] sm:$0xff]  ;;  %v534_v4 = vld [vmem:[%s791_s1 + $0x28] sm:$0xff] }
   0x2   :  { %v544_v1 = vld [vmem:[%s791_s1 + $0x78] sm:$0xff]  ;;  %235 = vmatpush.bf16.msra.mxu0 %v536_v0  ;;  %592 = vmatpush.bf16.msra.mxu2 %v536_v0  ;;  %v543_v3 = vld [vmem:[%s791_s1 + $0x70] sm:$0xff]  ;;  %v542_v5 = vld [vmem:[%s791_s1 + $0x68] sm:$0xff] }
   0x3   :  { %284 = vmatpush.bf16.msra.mxu1 %v544_v1  ;;  %600 = vmatpush.bf16.msra.mxu3 %v544_v1  ;;  %v533_v6 = vld [vmem:[%s791_s1 + $0x20] sm:$0xff]  ;;  %v532_v8 = vld [vmem:[%s791_s1 + $0x18] sm:$0xff]  ;;  %v531_v10 = vld [vmem:[%s791_s1 + $0x10] sm:$0xff] }
   0x4   :  { %v541_v7 = vld [vmem:[%s791_s1 + $0x60] sm:$0xff]  ;;  %v540_v9 = vld [vmem:[%s791_s1 + $0x58] sm:$0xff]  ;;  %v539_v11 = vld [vmem:[%s791_s1 + $0x50] sm:$0xff] }
   0x5   :  { %v530_v12 = vld [vmem:[%s791_s1 + $0x8] sm:$0xff]  ;;  %v529_v14 = vld [vmem:[%s791_s1] sm:$0xff]  ;;  %v395_v28 = vld [vmem:[%s792_s0 + $0x10] sm:$0xf] }
   0x6   :  { %236 = vmatpush.bf16.msra.mxu0 %v535_v2  ;;  %593 = vmatpush.bf16.msra.mxu2 %v535_v2  ;;  %v538_v13 = vld [vmem:[%s791_s1 + $0x48] sm:$0xff]  ;;  %v537_v15 = vld [vmem:[%s791_s1 + $0x40] sm:$0xff]  ;;  %v516_v29 = vld [vmem:[%s792_s0 + $0x14] sm:$0xf0] }
   0x7   :  { %285 = vmatpush.bf16.msra.mxu1 %v543_v3  ;;  %601 = vmatpush.bf16.msra.mxu3 %v543_v3  ;;  %v387_v16 = vld [vmem:[%s792_s0] sm:$0xf]  ;;  %v514_v17 = vld [vmem:[%s792_s0 + $0x4] sm:$0xf0]  ;;  %v513_v20 = vld [vmem:[%s792_s0 + $0x4] sm:$0xf]  ;;  %v396_v36 = vor.u32 %v516_v29, %v395_v28 }
   0x8   :  { %v419_v18 = vld [vmem:[%s792_s0 + $0x40] sm:$0xf]  ;;  %v522_v19 = vld [vmem:[%s792_s0 + $0x44] sm:$0xf0]  ;;  %v389_v21 = vld [vmem:[%s792_s0 + $0x8] sm:$0xf0]  ;;  %v388_v24 = vor.u32 %v514_v17, %v387_v16 }
   0x9   :  { %v521_v22 = vld [vmem:[%s792_s0 + $0x44] sm:$0xf]  ;;  %v421_v23 = vld [vmem:[%s792_s0 + $0x48] sm:$0xf0]  ;;  %v420_v25 = vor.u32 %v522_v19, %v419_v18  ;;  %v392_v26 = vor.u32 %v513_v20, %v389_v21  ;;  %v427_v30 = vld [vmem:[%s792_s0 + $0x50] sm:$0xf] }
   0xa   :  { %237 = vmatpush.bf16.msra.mxu0 %v534_v4  ;;  %594 = vmatpush.bf16.msra.mxu2 %v534_v4  ;;  %v424_v27 = vor.u32 %v521_v22, %v421_v23  ;;  %v524_v31 = vld [vmem:[%s792_s0 + $0x54] sm:$0xf0]  ;;  %v515_v32 = vld [vmem:[%s792_s0 + $0x14] sm:$0xf]  ;;  %v397_v33 = vld [vmem:[%s792_s0 + $0x18] sm:$0xf0] }
   0xb   :  { %286 = vmatpush.bf16.msra.mxu1 %v542_v5  ;;  %602 = vmatpush.bf16.msra.mxu3 %v542_v5  ;;  %v523_v34 = vld [vmem:[%s792_s0 + $0x54] sm:$0xf]  ;;  %v429_v35 = vld [vmem:[%s792_s0 + $0x58] sm:$0xf0]  ;;  %v428_v37 = vor.u32 %v524_v31, %v427_v30  ;;  %v400_v38 = vor.u32 %v515_v32, %v397_v33  ;;  %v403_v40 = vld [vmem:[%s792_s0 + $0x20] sm:$0xf] }
   0xc   :  { %v432_v39 = vor.u32 %v523_v34, %v429_v35  ;;  %v518_v41 = vld [vmem:[%s792_s0 + $0x24] sm:$0xf0]  ;;  %v435_v42 = vld [vmem:[%s792_s0 + $0x60] sm:$0xf]  ;;  %v517_v44 = vld [vmem:[%s792_s0 + $0x24] sm:$0xf] }
   0xd   :  { %v526_v43 = vld [vmem:[%s792_s0 + $0x64] sm:$0xf0]  ;;  %v405_v45 = vld [vmem:[%s792_s0 + $0x28] sm:$0xf0]  ;;  %v525_v46 = vld [vmem:[%s792_s0 + $0x64] sm:$0xf]  ;;  %v404_v48 = vor.u32 %v518_v41, %v403_v40 }
   0xe   :  { %238 = vmatpush.bf16.msra.mxu0 %v533_v6  ;;  %595 = vmatpush.bf16.msra.mxu2 %v533_v6  ;;  %v437_v47 = vld [vmem:[%s792_s0 + $0x68] sm:$0xf0]  ;;  %v436_v49 = vor.u32 %v526_v43, %v435_v42  ;;  %v408_v50 = vor.u32 %v517_v44, %v405_v45  ;;  %v411_v52 = vld [vmem:[%s792_s0 + $0x30] sm:$0xf]  ;;  %v520_v53 = vld [vmem:[%s792_s0 + $0x34] sm:$0xf0] }
   0xf   :  { %287 = vmatpush.bf16.msra.mxu1 %v541_v7  ;;  %603 = vmatpush.bf16.msra.mxu3 %v541_v7  ;;  %v440_v51 = vor.u32 %v525_v46, %v437_v47  ;;  %v443_v54 = vld [vmem:[%s792_s0 + $0x70] sm:$0xf]  ;;  %v528_v55 = vld [vmem:[%s792_s0 + $0x74] sm:$0xf0]  ;;  %v519_v56 = vld [vmem:[%s792_s0 + $0x34] sm:$0xf]  ;;  %v412_v60 = vor.u32 %v520_v53, %v411_v52 }
  0x10   :  { %v413_v57 = vld [vmem:[%s792_s0 + $0x38] sm:$0xf0]  ;;  %v527_v58 = vld [vmem:[%s792_s0 + $0x74] sm:$0xf]  ;;  %v444_v61 = vor.u32 %v528_v55, %v443_v54 }
  0x11   :  { %v445_v59 = vld [vmem:[%s792_s0 + $0x78] sm:$0xf0]  ;;  %v416_v62 = vor.u32 %v519_v56, %v413_v57 }
  0x12   :  { %239 = vmatpush.bf16.msra.mxu0 %v532_v8  ;;  %596 = vmatpush.bf16.msra.mxu2 %v532_v8  ;;  %v448_v63 = vor.u32 %v527_v58, %v445_v59 }
  0x13   :  { %288 = vmatpush.bf16.msra.mxu1 %v540_v9  ;;  %604 = vmatpush.bf16.msra.mxu3 %v540_v9 }
  0x16   :  { %240 = vmatpush.bf16.msra.mxu0 %v531_v10  ;;  %597 = vmatpush.bf16.msra.mxu2 %v531_v10 }
  0x17   :  { %289 = vmatpush.bf16.msra.mxu1 %v539_v11  ;;  %605 = vmatpush.bf16.msra.mxu3 %v539_v11 }
  0x1a   :  { %241 = vmatpush.bf16.msra.mxu0 %v530_v12  ;;  %598 = vmatpush.bf16.msra.mxu2 %v530_v12 }
  0x1b   :  { %290 = vmatpush.bf16.msra.mxu1 %v538_v13  ;;  %606 = vmatpush.bf16.msra.mxu3 %v538_v13 }
  0x1e   :  { %242 = vmatpush.bf16.msra.mxu0 %v529_v14  ;;  %599 = vmatpush.bf16.msra.mxu2 %v529_v14 }
  0x1f   :  { %291 = vmatpush.bf16.msra.mxu1 %v537_v15  ;;  %607 = vmatpush.bf16.msra.mxu3 %v537_v15 }
  0x21   :  { %243 = vmatmul.bf16.vlgmr.msra.gmra.mxu0 %v388_v24  ;;  %263 = vmatmul.bf16.vlgmr.msra.gmra.mxu2 %v420_v25 }
  0x22   :  { %292 = vmatmul.bf16.vlgmr.msra.gmra.mxu1 %v392_v26  ;;  %312 = vmatmul.bf16.vlgmr.msra.gmra.mxu3 %v424_v27 }
  0x31   :  { %248 = vmatmul.bf16.gmra.mxu0 %v396_v36  ;;  %268 = vmatmul.bf16.gmra.mxu2 %v428_v37 }
  0x32   :  { %297 = vmatmul.bf16.gmra.mxu1 %v400_v38  ;;  %317 = vmatmul.bf16.gmra.mxu3 %v432_v39 }
  0x41   :  { %253 = vmatmul.bf16.gmra.mxu0 %v404_v48  ;;  %273 = vmatmul.bf16.gmra.mxu2 %v436_v49 }
  0x42   :  { %302 = vmatmul.bf16.gmra.mxu1 %v408_v50  ;;  %322 = vmatmul.bf16.gmra.mxu3 %v440_v51 }
  0x51   :  { %258 = vmatmul.bf16.gmra.mxu0 %v412_v60  ;;  %278 = vmatmul.bf16.gmra.mxu2 %v444_v61 }
  0x52   :  { %307 = vmatmul.bf16.gmra.mxu1 %v416_v62  ;;  %327 = vmatmul.bf16.gmra.mxu3 %v448_v63 }
  0x9e   :  { %v244_v0 = vpop.f32.mrf.mxu0 }
  0x9f   :  { %v293_v1 = vpop.f32.mrf.mxu1 }
  0xa0   :  { %v294_v4 = vadd.f32 %v293_v1, %v244_v0 }
  0xa2   :  { %v333_v8 = vmax.f32 %v294_v4, 0.0 }
  0xa4   :  { %v264_v2 = vpop.f32.mrf.mxu2 }
  0xa5   :  { %v313_v3 = vpop.f32.mrf.mxu3 }
  0xa6   :  { %v246_v5 = vpop.f32.mrf.mxu0  ;;  %v314_v10 = vadd.f32 %v313_v3, %v264_v2 }
  0xa7   :  { %v295_v6 = vpop.f32.mrf.mxu1 }
  0xa8   :  { %v296_v7 = vadd.f32 %v295_v6, %v246_v5  ;;  %v341_v17 = vmax.f32 %v314_v10, 0.0 }
  0xaa   :  { %v334_v9 = vmax.f32 %v296_v7, 0.0 }
  0xac   :  { %v548_v11 = vpack.c.bf16 %v334_v9, %v333_v8  ;;  %v266_v12 = vpop.f32.mrf.mxu2 }
  0xad   :  { %v315_v13 = vpop.f32.mrf.mxu3 }
  0xae   :  { %549 = vst [vmem:[%s793_s2] sm:$0xff] %v548_v11   ;;  %v316_v14 = vadd.f32 %v315_v13, %v266_v12  ;;  %v249_v15 = vpop.f32.mrf.mxu0 }
  0xaf   :  { %v298_v16 = vpop.f32.mrf.mxu1 }
  0xb0   :  { %v342_v18 = vmax.f32 %v316_v14, 0.0  ;;  %v299_v22 = vadd.f32 %v298_v16, %v249_v15 }
  0xb2   :  { %v568_v19 = vpack.c.bf16 %v342_v18, %v341_v17  ;;  %v335_v26 = vmax.f32 %v299_v22, 0.0 }
  0xb4   :  { %588 = vst [vmem:[%s793_s2 + $0x20] sm:$0xff] %v568_v19   ;;  %v269_v20 = vpop.f32.mrf.mxu2 }
  0xb5   :  { %v318_v21 = vpop.f32.mrf.mxu3 }
  0xb6   :  { %v251_v23 = vpop.f32.mrf.mxu0  ;;  %v319_v28 = vadd.f32 %v318_v21, %v269_v20 }
  0xb7   :  { %v300_v24 = vpop.f32.mrf.mxu1 }
  0xb8   :  { %v301_v25 = vadd.f32 %v300_v24, %v251_v23  ;;  %v343_v35 = vmax.f32 %v319_v28, 0.0 }
  0xba   :  { %v336_v27 = vmax.f32 %v301_v25, 0.0 }
  0xbc   :  { %v553_v29 = vpack.c.bf16 %v336_v27, %v335_v26  ;;  %v271_v30 = vpop.f32.mrf.mxu2 }
  0xbd   :  { %v320_v31 = vpop.f32.mrf.mxu3 }
  0xbe   :  { %585 = vst [vmem:[%s793_s2 + $0x8] sm:$0xff] %v553_v29   ;;  %v321_v32 = vadd.f32 %v320_v31, %v271_v30  ;;  %v254_v33 = vpop.f32.mrf.mxu0 }
  0xbf   :  { %v303_v34 = vpop.f32.mrf.mxu1 }
  0xc0   :  { %v344_v36 = vmax.f32 %v321_v32, 0.0  ;;  %v304_v40 = vadd.f32 %v303_v34, %v254_v33 }
  0xc2   :  { %v573_v37 = vpack.c.bf16 %v344_v36, %v343_v35  ;;  %v337_v44 = vmax.f32 %v304_v40, 0.0 }
  0xc4   :  { %589 = vst [vmem:[%s793_s2 + $0x28] sm:$0xff] %v573_v37   ;;  %v274_v38 = vpop.f32.mrf.mxu2 }
  0xc5   :  { %v323_v39 = vpop.f32.mrf.mxu3 }
  0xc6   :  { %v256_v41 = vpop.f32.mrf.mxu0  ;;  %v324_v46 = vadd.f32 %v323_v39, %v274_v38 }
  0xc7   :  { %v305_v42 = vpop.f32.mrf.mxu1 }
  0xc8   :  { %v306_v43 = vadd.f32 %v305_v42, %v256_v41  ;;  %v345_v53 = vmax.f32 %v324_v46, 0.0 }
  0xca   :  { %v338_v45 = vmax.f32 %v306_v43, 0.0 }
  0xcc   :  { %v558_v47 = vpack.c.bf16 %v338_v45, %v337_v44  ;;  %v276_v48 = vpop.f32.mrf.mxu2 }
  0xcd   :  { %v325_v49 = vpop.f32.mrf.mxu3 }
  0xce   :  { %586 = vst [vmem:[%s793_s2 + $0x10] sm:$0xff] %v558_v47   ;;  %v326_v50 = vadd.f32 %v325_v49, %v276_v48  ;;  %v259_v51 = vpop.f32.mrf.mxu0 }
  0xcf   :  { %v308_v52 = vpop.f32.mrf.mxu1 }
  0xd0   :  { %v346_v54 = vmax.f32 %v326_v50, 0.0  ;;  %v309_v58 = vadd.f32 %v308_v52, %v259_v51 }
  0xd2   :  { %v578_v55 = vpack.c.bf16 %v346_v54, %v345_v53  ;;  %v339_v62 = vmax.f32 %v309_v58, 0.0 }
  0xd4   :  { %590 = vst [vmem:[%s793_s2 + $0x30] sm:$0xff] %v578_v55   ;;  %v279_v56 = vpop.f32.mrf.mxu2 }
  0xd5   :  { %v328_v57 = vpop.f32.mrf.mxu3 }
  0xd6   :  { %v261_v59 = vpop.f32.mrf.mxu0  ;;  %v329_v0 = vadd.f32 %v328_v57, %v279_v56 }
  0xd7   :  { %v310_v60 = vpop.f32.mrf.mxu1 }
  0xd8   :  { %v311_v61 = vadd.f32 %v310_v60, %v261_v59  ;;  %v347_v5 = vmax.f32 %v329_v0, 0.0 }
  0xda   :  { %v340_v63 = vmax.f32 %v311_v61, 0.0 }
  0xdc   :  { %v563_v1 = vpack.c.bf16 %v340_v63, %v339_v62  ;;  %v281_v2 = vpop.f32.mrf.mxu2 }
  0xdd   :  { %v330_v3 = vpop.f32.mrf.mxu3 }
  0xde   :  { %587 = vst [vmem:[%s793_s2 + $0x18] sm:$0xff] %v563_v1   ;;  %v331_v4 = vadd.f32 %v330_v3, %v281_v2 }
  0xe0   :  { %v348_v6 = vmax.f32 %v331_v4, 0.0 }
  0xe2   :  { %v583_v7 = vpack.c.bf16 %v348_v6, %v347_v5 }
  0xe4   :  { %591 = vst [vmem:[%s793_s2 + $0x38] sm:$0xff] %v583_v7  }

</bundles_post_ra>
